<compile_context>
chip_gen: v5e
topology: v5e:2x2
jax: 0.10.0
libtpu: 0.0.40
codegen_flags: <defaults>
</compile_context>

<pallas_src>
import functools

import jax
import jax.numpy as jnp
from jax.experimental import pallas as pl

BN_EPS = 1e-5


# ---------------------------------------------------------------------------
# small helpers
# ---------------------------------------------------------------------------
def _bn_fold(c):
    """Inference-mode BN with init stats (gamma=1, beta=0, mean=0, var=1)."""
    scale = jnp.full((1, c), 1.0 / (1.0 + BN_EPS) ** 0.5, jnp.float32)
    bias = jnp.zeros((1, c), jnp.float32)
    return scale, bias


# ----- in-kernel value-level helpers (no strided / fancy ref indexing) -------
def _pad_hw1(x):
    """Zero-pad H and W by 1 using concatenation (Mosaic & interpret safe)."""
    n, h, w, c = x.shape
    zr = jnp.zeros((n, 1, w, c), x.dtype)
    x = jnp.concatenate([zr, x, zr], axis=1)
    zc = jnp.zeros((n, h + 2, 1, c), x.dtype)
    return jnp.concatenate([zc, x, zc], axis=2)


def _im2col_s1(xpad, h, w):
    """3x3 / stride-1 patch matrix from a padded NHWC value: (n*h*w, 9*c)."""
    n = xpad.shape[0]
    c = xpad.shape[-1]
    taps = [xpad[:, kh:kh + h, kw:kw + w, :]
            for kh in range(3) for kw in range(3)]
    a = jnp.concatenate(taps, axis=-1)          # (n, h, w, 9c), (kh,kw,cin) order
    return a.reshape(n * h * w, 9 * c)


# ---------------------------------------------------------------------------
# Pallas kernels
# ---------------------------------------------------------------------------
def stem_kernel(n, ho, wo, hp, wp, a_ref, w_ref, s_ref, b_ref, o_ref):
    """conv7x7/s2 (pre-gathered patches) + BN + ReLU + maxpool3x3/s2/p1."""
    acc = jnp.dot(a_ref[...], w_ref[...], preferred_element_type=jnp.float32)
    h = jnp.maximum(acc * s_ref[...] + b_ref[...], 0.0)            # (M, Cout)
    cout = h.shape[-1]
    # Post-ReLU values are >= 0, so zero padding is valid for the max-pool.
    hp4 = _pad_hw1(h.reshape(n, ho, wo, cout))                     # (n, ho+2, wo+2, C)

    rows = []
    for po in range(hp):
        rmax = jnp.maximum(jnp.maximum(hp4[:, 2 * po], hp4[:, 2 * po + 1]),
                           hp4[:, 2 * po + 2])                     # (n, wo+2, C)
        cols = []
        for qo in range(wp):
            cmax = jnp.maximum(jnp.maximum(rmax[:, 2 * qo], rmax[:, 2 * qo + 1]),
                               rmax[:, 2 * qo + 2])                # (n, C)
            cols.append(cmax[:, None, :])
        rows.append(jnp.concatenate(cols, axis=1)[:, None])        # (n,1,wp,C)
    o_ref[...] = jnp.concatenate(rows, axis=1)                     # (n,hp,wp,C)


def block_kernel(post_add, n, h, w, x_ref, w1_ref, s1_ref, b1_ref,
                 w2_ref, s2_ref, b2_ref, o_ref):
    """Stride-1 BasicBlock, fully fused: conv1+BN+ReLU + conv2+BN + add + ReLU.

    If post_add: additionally returns identity + block_output
    (MyNet.forward's  'out': x + self.out(x)).
    """
    x = x_ref[...]                                                 # (n,h,w,c) f32
    cin = x.shape[-1]
    planes = w1_ref.shape[-1]
    m = n * h * w

    a1 = _im2col_s1(_pad_hw1(x), h, w).astype(jnp.bfloat16)
    h1 = jnp.dot(a1, w1_ref[...], preferred_element_type=jnp.float32)
    h1 = jnp.maximum(h1 * s1_ref[...] + b1_ref[...], 0.0)          # (m, planes)

    a2 = _im2col_s1(_pad_hw1(h1.reshape(n, h, w, planes)), h, w)
    z = jnp.dot(a2.astype(jnp.bfloat16), w2_ref[...],
                preferred_element_type=jnp.float32)
    z = z * s2_ref[...] + b2_ref[...]

    idt = x.reshape(m, cin)                                        # cin == planes
    out = jnp.maximum(z + idt, 0.0)
    if post_add:
        out = out + idt
    o_ref[...] = out.reshape(n, h, w, planes)


def down_block_kernel(n, ho, wo, a1_ref, xd_ref, w1_ref, s1_ref, b1_ref,
                      w2_ref, s2_ref, b2_ref, wd_ref, sd_ref, bd_ref, o_ref):
    """Stride-2 BasicBlock with 1x1/s2 downsample (stride-2 gathers done in XLA)."""
    planes = w1_ref.shape[-1]

    h1 = jnp.dot(a1_ref[...], w1_ref[...], preferred_element_type=jnp.float32)
    h1 = jnp.maximum(h1 * s1_ref[...] + b1_ref[...], 0.0)

    a2 = _im2col_s1(_pad_hw1(h1.reshape(n, ho, wo, planes)), ho, wo)
    z = jnp.dot(a2.astype(jnp.bfloat16), w2_ref[...],
                preferred_element_type=jnp.float32)
    z = z * s2_ref[...] + b2_ref[...]

    idt = jnp.dot(xd_ref[...], wd_ref[...], preferred_element_type=jnp.float32)
    idt = idt * sd_ref[...] + bd_ref[...]

    o_ref[...] = jnp.maximum(z + idt, 0.0).reshape(n, ho, wo, planes)


def fusion_kernel(x1_ref, x2_ref, w11_ref, w12_ref, w21_ref, w22_ref, o_ref):
    """FusionModule: per-half SE gate + softmax-of-two fusion + ReLU."""
    x1 = x1_ref[...]                                               # (n,h,w,c) f32
    x2 = x2_ref[...]
    n, h, w, c = x1.shape

    def se_gate(x, wa, wb):
        g = jnp.mean(x.reshape(n, h * w, c), axis=1)               # global avg (n,c)
        u = jnp.dot(g.astype(jnp.bfloat16), wa,
                    preferred_element_type=jnp.float32)
        u = jnp.maximum(u, 0.0)
        v = jnp.dot(u.astype(jnp.bfloat16), wb,
                    preferred_element_type=jnp.float32)
        v = 1.0 / (1.0 + jnp.exp(-v))                              # sigmoid
        return v[:, None, None, :]

    x1s = x1 * se_gate(x1, w11_ref[...], w12_ref[...])
    x2s = x2 * se_gate(x2, w21_ref[...], w22_ref[...])

    e1 = jnp.exp(x1s)
    e2 = jnp.exp(x2s)
    out = (x1 * e1 + x2 * e2) / (e1 + e2)                          # identities*softmax
    o_ref[...] = jnp.maximum(out, 0.0)


# ---------------------------------------------------------------------------
# wrappers (pallas_call plumbing; activations are NHWC f32 between kernels)
# ---------------------------------------------------------------------------
def stem_forward(x, w2d, scale, bias):
    """conv7x7/s2/p3 (bias=False) + BN + ReLU + maxpool3x3/s2/p1.  NHWC."""
    n, hgt, wid, cin = x.shape
    k, s, p = 7, 2, 3
    ho = (hgt + 2 * p - k) // s + 1
    wo = (wid + 2 * p - k) // s + 1
    cout = w2d.shape[-1]
    hp_ = (ho + 2 - 3) // 2 + 1
    wp_ = (wo + 2 - 3) // 2 + 1

    # 3-channel stem: the 49-tap gather is a few tens of KB, so it is done once
    # in XLA and the 7x7 conv runs as a single dense bf16 MXU matmul in-kernel.
    xp = jnp.pad(x, ((0, 0), (p, p), (p, p), (0, 0)))
    cols = [xp[:, kh:kh + (ho - 1) * s + 1:s, kw:kw + (wo - 1) * s + 1:s, :]
            for kh in range(k) for kw in range(k)]
    a = jnp.concatenate(cols, axis=-1).reshape(n * ho * wo, k * k * cin)
    a = a.astype(jnp.bfloat16)

    return pl.pallas_call(
        functools.partial(stem_kernel, n, ho, wo, hp_, wp_),
        out_shape=jax.ShapeDtypeStruct((n, hp_, wp_, cout), jnp.float32),
    )(a, w2d, scale, bias)


def basic_block_forward(x, p, post_add=False):
    """One fused BasicBlock pallas_call.  x: NHWC f32."""
    n, h, w, cin = x.shape
    planes = p["bn1_s"].shape[-1]

    if "down_w" not in p:                       # stride 1, identity residual
        return pl.pallas_call(
            functools.partial(block_kernel, post_add, n, h, w),
            out_shape=jax.ShapeDtypeStruct((n, h, w, planes), jnp.float32),
        )(x, p["conv1_w"], p["bn1_s"], p["bn1_b"],
          p["conv2_w"], p["bn2_s"], p["bn2_b"])

    # stride-2 block with 1x1/s2 downsample: stride-2 gathers staged in XLA
    stride = p["stride"]
    ho = (h + 2 - 3) // stride + 1
    wo = (w + 2 - 3) // stride + 1
    xpad = jnp.pad(x, ((0, 0), (1, 1), (1, 1), (0, 0)))
    taps = [xpad[:, kh:kh + (ho - 1) * stride + 1:stride,
                 kw:kw + (wo - 1) * stride + 1:stride, :]
            for kh in range(3) for kw in range(3)]
    a1 = jnp.concatenate(taps, axis=-1).reshape(n * ho * wo, 9 * cin)
    a1 = a1.astype(jnp.bfloat16)
    xd = x[:, ::stride, ::stride, :].reshape(n * ho * wo, cin).astype(jnp.bfloat16)

    return pl.pallas_call(
        functools.partial(down_block_kernel, n, ho, wo),
        out_shape=jax.ShapeDtypeStruct((n, ho, wo, planes), jnp.float32),
    )(a1, xd, p["conv1_w"], p["bn1_s"], p["bn1_b"],
      p["conv2_w"], p["bn2_s"], p["bn2_b"],
      p["down_w"], p["dbn_s"], p["dbn_b"])


def fusion_forward(x1, x2, p):
    return pl.pallas_call(
        fusion_kernel,
        out_shape=jax.ShapeDtypeStruct(x1.shape, jnp.float32),
    )(x1, x2, p["fc1_w1"], p["fc1_w2"], p["fc2_w1"], p["fc2_w2"])


# ---------------------------------------------------------------------------
# parameters (deterministic; mirror the PyTorch inits)
# ---------------------------------------------------------------------------
class KeyGen:
    def __init__(self, key):
        self.key = key

    def __call__(self):
        self.key, sub = jax.random.split(self.key)
        return sub


def conv_weight(kg, k, cin, cout):
    # kaiming_normal_(mode='fan_out', nonlinearity='relu'); stored flattened
    # (kh, kw, cin) x cout in bf16 so each conv is one bf16 MXU matmul.
    std = (2.0 / (k * k * cout)) ** 0.5
    w = std * jax.random.normal(kg(), (k, k, cin, cout), jnp.float32)
    return w.reshape(k * k * cin, cout).astype(jnp.bfloat16)


def linear_weight(kg, cin, cout):
    bound = 1.0 / (cin ** 0.5)              # nn.Linear default init (bias=False)
    w = jax.random.uniform(kg(), (cin, cout), jnp.float32, -bound, bound)
    return w.astype(jnp.bfloat16)


def make_block_params(kg, inplanes, planes, stride):
    p = {"stride": stride,
         "conv1_w": conv_weight(kg, 3, inplanes, planes),
         "conv2_w": conv_weight(kg, 3, planes, planes)}
    p["bn1_s"], p["bn1_b"] = _bn_fold(planes)
    p["bn2_s"], p["bn2_b"] = _bn_fold(planes)
    if stride != 1 or inplanes != planes:   # BasicBlock.expansion == 1
        p["down_w"] = conv_weight(kg, 1, inplanes, planes)
        p["dbn_s"], p["dbn_b"] = _bn_fold(planes)
    return p


def make_branch_params(kg):
    bp = {"stem_w": conv_weight(kg, 7, 3, 64)}
    bp["stem_s"], bp["stem_b"] = _bn_fold(64)
    # layer*_1: 2 x BasicBlock(64 -> 64)
    bp["layer_a"] = [make_block_params(kg, 64, 64, 1),
                     make_block_params(kg, 64, 64, 1)]
    # layer*_2: BasicBlock(64 -> 128, stride 2, downsample), BasicBlock(128)
    bp["layer_b"] = [make_block_params(kg, 64, 128, 2),
                     make_block_params(kg, 128, 128, 1)]
    return bp


def make_mynet_params(key):
    kg = KeyGen(key)
    params = {"branch1": make_branch_params(kg),
              "branch2": make_branch_params(kg)}
    red = 16
    params["fusion"] = {"fc1_w1": linear_weight(kg, 128, 128 // red),
                        "fc1_w2": linear_weight(kg, 128 // red, 128),
                        "fc2_w1": linear_weight(kg, 128, 128 // red),
                        "fc2_w2": linear_weight(kg, 128 // red, 128)}
    # self.out = BasicBlock(out_set=128, 128): stride 1, no downsample
    params["out_block"] = make_block_params(kg, 128, 128, 1)
    return params


# ---------------------------------------------------------------------------
# forward pass (MyNet.forward with out_set = 128)
# ---------------------------------------------------------------------------
def mynet_forward(x_nchw, params):
    x = jnp.transpose(x_nchw, (0, 2, 3, 1)).astype(jnp.float32)   # NHWC
    c = x.shape[-1] // 2
    x1, x2 = x[..., :c], x[..., c:]

    def branch(xb, bp):
        h = stem_forward(xb, bp["stem_w"], bp["stem_s"], bp["stem_b"])
        for blk in bp["layer_a"]:
            h = basic_block_forward(h, blk)
        for blk in bp["layer_b"]:
            h = basic_block_forward(h, blk)
        return h

    f1 = branch(x1, params["branch1"])
    f2 = branch(x2, params["branch2"])

    # torch.cat([f1, f2], 1) followed by FusionModule's immediate re-split is a
    # no-op; the halves are passed straight in.
    fused = fusion_forward(f1, f2, params["fusion"])

    # forward(): return {'out': x + self.out(x)} -- the final add is fused into
    # the out-block's epilogue (post_add=True).
    out = basic_block_forward(fused, params["out_block"], post_add=True)
    return {"out": jnp.transpose(out, (0, 3, 1, 2))}


# ---------------------------------------------------------------------------
if __name__ == "__main__":
    key = jax.random.PRNGKey(0)
    k_param, k_input = jax.random.split(key)

    params = make_mynet_params(k_param)

    # NCHW input: 6 channels (two 3-channel halves), 16x16 spatial, batch 2
    x = jax.random.normal(k_input, (2, 6, 16, 16), jnp.float32)

    fwd = jax.jit(functools.partial(mynet_forward, params=params))
    out = fwd(x)["out"]
    out = jax.block_until_ready(out)

    assert out.shape == (2, 128, 2, 2)
    assert bool(jnp.all(jnp.isfinite(out)))
    print("KERNEL_OK")
</pallas_src>

<mosaic_0001>
module attributes {stable_mosaic.version = 11 : i64} {
  func.func @stem_kernel(%arg0: memref<128x147xbf16, #tpu.memory_space<vmem>>, %arg1: memref<147x64xbf16, #tpu.memory_space<vmem>>, %arg2: memref<1x64xf32, #tpu.memory_space<vmem>>, %arg3: memref<1x64xf32, #tpu.memory_space<vmem>>, %arg4: memref<2x4x4x64xf32, #tpu.memory_space<vmem>>) attributes {dimension_semantics = [], scalar_prefetch = 0 : i64, scratch_operands = 0 : i64, tpu.core_type = #tpu.core_type<tc>} {
    %c0 = arith.constant 0 : index
    %c0_0 = arith.constant 0 : index
    %0 = vector.load %arg0[%c0, %c0_0] : memref<128x147xbf16, #tpu.memory_space<vmem>>, vector<128x147xbf16>
    %c0_1 = arith.constant 0 : index
    %c0_2 = arith.constant 0 : index
    %1 = vector.load %arg1[%c0_1, %c0_2] : memref<147x64xbf16, #tpu.memory_space<vmem>>, vector<147x64xbf16>
    %cst = arith.constant dense<0.000000e+00> : vector<128x64xf32>
    %2 = tpu.matmul %0, %1, %cst {dimension_numbers = #tpu.dot_dimension_numbers<[1], [0], [0], [1], [0, 0, 1, 1], [], []>} : vector<128x147xbf16>, vector<147x64xbf16>, vector<128x64xf32> -> vector<128x64xf32>
    %c0_3 = arith.constant 0 : index
    %c0_4 = arith.constant 0 : index
    %3 = vector.load %arg2[%c0_3, %c0_4] : memref<1x64xf32, #tpu.memory_space<vmem>>, vector<1x64xf32>
    %4 = vector.broadcast %3 : vector<1x64xf32> to vector<128x64xf32>
    %5 = arith.mulf %2, %4 : vector<128x64xf32>
    %c0_5 = arith.constant 0 : index
    %c0_6 = arith.constant 0 : index
    %6 = vector.load %arg3[%c0_5, %c0_6] : memref<1x64xf32, #tpu.memory_space<vmem>>, vector<1x64xf32>
    %7 = vector.broadcast %6 : vector<1x64xf32> to vector<128x64xf32>
    %8 = arith.addf %5, %7 : vector<128x64xf32>
    %cst_7 = arith.constant 0.000000e+00 : f32
    %9 = vector.broadcast %cst_7 : f32 to vector<128x64xf32>
    %10 = arith.maximumf %8, %9 : vector<128x64xf32>
    %11 = vector.shape_cast %10 : vector<128x64xf32> to vector<2x8x8x64xf32>
    %cst_8 = arith.constant 0.000000e+00 : f32
    %12 = vector.broadcast %cst_8 : f32 to vector<2x1x8x64xf32>
    %13 = tpu.concatenate %12, %11, %12 in 1 : vector<2x1x8x64xf32>, vector<2x8x8x64xf32>, vector<2x1x8x64xf32> -> vector<2x10x8x64xf32>
    %cst_9 = arith.constant 0.000000e+00 : f32
    %14 = vector.broadcast %cst_9 : f32 to vector<2x10x1x64xf32>
    %15 = tpu.concatenate %14, %13, %14 in 2 : vector<2x10x1x64xf32>, vector<2x10x8x64xf32>, vector<2x10x1x64xf32> -> vector<2x10x10x64xf32>
    %16 = vector.extract_strided_slice %15 {offsets = [0, 0, 0, 0], sizes = [2, 1, 10, 64], strides = [1, 1, 1, 1]} : vector<2x10x10x64xf32> to vector<2x1x10x64xf32>
    %17 = vector.shape_cast %16 : vector<2x1x10x64xf32> to vector<2x10x64xf32>
    %18 = vector.extract_strided_slice %15 {offsets = [0, 1, 0, 0], sizes = [2, 1, 10, 64], strides = [1, 1, 1, 1]} : vector<2x10x10x64xf32> to vector<2x1x10x64xf32>
    %19 = vector.shape_cast %18 : vector<2x1x10x64xf32> to vector<2x10x64xf32>
    %20 = arith.maximumf %17, %19 : vector<2x10x64xf32>
    %21 = vector.extract_strided_slice %15 {offsets = [0, 2, 0, 0], sizes = [2, 1, 10, 64], strides = [1, 1, 1, 1]} : vector<2x10x10x64xf32> to vector<2x1x10x64xf32>
    %22 = vector.shape_cast %21 : vector<2x1x10x64xf32> to vector<2x10x64xf32>
    %23 = arith.maximumf %20, %22 : vector<2x10x64xf32>
    %24 = vector.extract_strided_slice %23 {offsets = [0, 0, 0], sizes = [2, 1, 64], strides = [1, 1, 1]} : vector<2x10x64xf32> to vector<2x1x64xf32>
    %25 = vector.shape_cast %24 : vector<2x1x64xf32> to vector<2x64xf32>
    %26 = vector.extract_strided_slice %23 {offsets = [0, 1, 0], sizes = [2, 1, 64], strides = [1, 1, 1]} : vector<2x10x64xf32> to vector<2x1x64xf32>
    %27 = vector.shape_cast %26 : vector<2x1x64xf32> to vector<2x64xf32>
    %28 = arith.maximumf %25, %27 : vector<2x64xf32>
    %29 = vector.extract_strided_slice %23 {offsets = [0, 2, 0], sizes = [2, 1, 64], strides = [1, 1, 1]} : vector<2x10x64xf32> to vector<2x1x64xf32>
    %30 = vector.shape_cast %29 : vector<2x1x64xf32> to vector<2x64xf32>
    %31 = arith.maximumf %28, %30 : vector<2x64xf32>
    %32 = vector.shape_cast %31 : vector<2x64xf32> to vector<2x1x64xf32>
    %33 = vector.extract_strided_slice %23 {offsets = [0, 2, 0], sizes = [2, 1, 64], strides = [1, 1, 1]} : vector<2x10x64xf32> to vector<2x1x64xf32>
    %34 = vector.shape_cast %33 : vector<2x1x64xf32> to vector<2x64xf32>
    %35 = vector.extract_strided_slice %23 {offsets = [0, 3, 0], sizes = [2, 1, 64], strides = [1, 1, 1]} : vector<2x10x64xf32> to vector<2x1x64xf32>
    %36 = vector.shape_cast %35 : vector<2x1x64xf32> to vector<2x64xf32>
    %37 = arith.maximumf %34, %36 : vector<2x64xf32>
    %38 = vector.extract_strided_slice %23 {offsets = [0, 4, 0], sizes = [2, 1, 64], strides = [1, 1, 1]} : vector<2x10x64xf32> to vector<2x1x64xf32>
    %39 = vector.shape_cast %38 : vector<2x1x64xf32> to vector<2x64xf32>
    %40 = arith.maximumf %37, %39 : vector<2x64xf32>
    %41 = vector.shape_cast %40 : vector<2x64xf32> to vector<2x1x64xf32>
    %42 = vector.extract_strided_slice %23 {offsets = [0, 4, 0], sizes = [2, 1, 64], strides = [1, 1, 1]} : vector<2x10x64xf32> to vector<2x1x64xf32>
    %43 = vector.shape_cast %42 : vector<2x1x64xf32> to vector<2x64xf32>
    %44 = vector.extract_strided_slice %23 {offsets = [0, 5, 0], sizes = [2, 1, 64], strides = [1, 1, 1]} : vector<2x10x64xf32> to vector<2x1x64xf32>
    %45 = vector.shape_cast %44 : vector<2x1x64xf32> to vector<2x64xf32>
    %46 = arith.maximumf %43, %45 : vector<2x64xf32>
    %47 = vector.extract_strided_slice %23 {offsets = [0, 6, 0], sizes = [2, 1, 64], strides = [1, 1, 1]} : vector<2x10x64xf32> to vector<2x1x64xf32>
    %48 = vector.shape_cast %47 : vector<2x1x64xf32> to vector<2x64xf32>
    %49 = arith.maximumf %46, %48 : vector<2x64xf32>
    %50 = vector.shape_cast %49 : vector<2x64xf32> to vector<2x1x64xf32>
    %51 = vector.extract_strided_slice %23 {offsets = [0, 6, 0], sizes = [2, 1, 64], strides = [1, 1, 1]} : vector<2x10x64xf32> to vector<2x1x64xf32>
    %52 = vector.shape_cast %51 : vector<2x1x64xf32> to vector<2x64xf32>
    %53 = vector.extract_strided_slice %23 {offsets = [0, 7, 0], sizes = [2, 1, 64], strides = [1, 1, 1]} : vector<2x10x64xf32> to vector<2x1x64xf32>
    %54 = vector.shape_cast %53 : vector<2x1x64xf32> to vector<2x64xf32>
    %55 = arith.maximumf %52, %54 : vector<2x64xf32>
    %56 = vector.extract_strided_slice %23 {offsets = [0, 8, 0], sizes = [2, 1, 64], strides = [1, 1, 1]} : vector<2x10x64xf32> to vector<2x1x64xf32>
    %57 = vector.shape_cast %56 : vector<2x1x64xf32> to vector<2x64xf32>
    %58 = arith.maximumf %55, %57 : vector<2x64xf32>
    %59 = vector.shape_cast %58 : vector<2x64xf32> to vector<2x1x64xf32>
    %60 = tpu.concatenate %32, %41, %50, %59 in 1 : vector<2x1x64xf32>, vector<2x1x64xf32>, vector<2x1x64xf32>, vector<2x1x64xf32> -> vector<2x4x64xf32>
    %61 = vector.shape_cast %60 : vector<2x4x64xf32> to vector<2x1x4x64xf32>
    %62 = vector.extract_strided_slice %15 {offsets = [0, 2, 0, 0], sizes = [2, 1, 10, 64], strides = [1, 1, 1, 1]} : vector<2x10x10x64xf32> to vector<2x1x10x64xf32>
    %63 = vector.shape_cast %62 : vector<2x1x10x64xf32> to vector<2x10x64xf32>
    %64 = vector.extract_strided_slice %15 {offsets = [0, 3, 0, 0], sizes = [2, 1, 10, 64], strides = [1, 1, 1, 1]} : vector<2x10x10x64xf32> to vector<2x1x10x64xf32>
    %65 = vector.shape_cast %64 : vector<2x1x10x64xf32> to vector<2x10x64xf32>
    %66 = arith.maximumf %63, %65 : vector<2x10x64xf32>
    %67 = vector.extract_strided_slice %15 {offsets = [0, 4, 0, 0], sizes = [2, 1, 10, 64], strides = [1, 1, 1, 1]} : vector<2x10x10x64xf32> to vector<2x1x10x64xf32>
    %68 = vector.shape_cast %67 : vector<2x1x10x64xf32> to vector<2x10x64xf32>
    %69 = arith.maximumf %66, %68 : vector<2x10x64xf32>
    %70 = vector.extract_strided_slice %69 {offsets = [0, 0, 0], sizes = [2, 1, 64], strides = [1, 1, 1]} : vector<2x10x64xf32> to vector<2x1x64xf32>
    %71 = vector.shape_cast %70 : vector<2x1x64xf32> to vector<2x64xf32>
    %72 = vector.extract_strided_slice %69 {offsets = [0, 1, 0], sizes = [2, 1, 64], strides = [1, 1, 1]} : vector<2x10x64xf32> to vector<2x1x64xf32>
    %73 = vector.shape_cast %72 : vector<2x1x64xf32> to vector<2x64xf32>
    %74 = arith.maximumf %71, %73 : vector<2x64xf32>
    %75 = vector.extract_strided_slice %69 {offsets = [0, 2, 0], sizes = [2, 1, 64], strides = [1, 1, 1]} : vector<2x10x64xf32> to vector<2x1x64xf32>
    %76 = vector.shape_cast %75 : vector<2x1x64xf32> to vector<2x64xf32>
    %77 = arith.maximumf %74, %76 : vector<2x64xf32>
    %78 = vector.shape_cast %77 : vector<2x64xf32> to vector<2x1x64xf32>
    %79 = vector.extract_strided_slice %69 {offsets = [0, 2, 0], sizes = [2, 1, 64], strides = [1, 1, 1]} : vector<2x10x64xf32> to vector<2x1x64xf32>
    %80 = vector.shape_cast %79 : vector<2x1x64xf32> to vector<2x64xf32>
    %81 = vector.extract_strided_slice %69 {offsets = [0, 3, 0], sizes = [2, 1, 64], strides = [1, 1, 1]} : vector<2x10x64xf32> to vector<2x1x64xf32>
    %82 = vector.shape_cast %81 : vector<2x1x64xf32> to vector<2x64xf32>
    %83 = arith.maximumf %80, %82 : vector<2x64xf32>
    %84 = vector.extract_strided_slice %69 {offsets = [0, 4, 0], sizes = [2, 1, 64], strides = [1, 1, 1]} : vector<2x10x64xf32> to vector<2x1x64xf32>
    %85 = vector.shape_cast %84 : vector<2x1x64xf32> to vector<2x64xf32>
    %86 = arith.maximumf %83, %85 : vector<2x64xf32>
    %87 = vector.shape_cast %86 : vector<2x64xf32> to vector<2x1x64xf32>
    %88 = vector.extract_strided_slice %69 {offsets = [0, 4, 0], sizes = [2, 1, 64], strides = [1, 1, 1]} : vector<2x10x64xf32> to vector<2x1x64xf32>
    %89 = vector.shape_cast %88 : vector<2x1x64xf32> to vector<2x64xf32>
    %90 = vector.extract_strided_slice %69 {offsets = [0, 5, 0], sizes = [2, 1, 64], strides = [1, 1, 1]} : vector<2x10x64xf32> to vector<2x1x64xf32>
    %91 = vector.shape_cast %90 : vector<2x1x64xf32> to vector<2x64xf32>
    %92 = arith.maximumf %89, %91 : vector<2x64xf32>
    %93 = vector.extract_strided_slice %69 {offsets = [0, 6, 0], sizes = [2, 1, 64], strides = [1, 1, 1]} : vector<2x10x64xf32> to vector<2x1x64xf32>
    %94 = vector.shape_cast %93 : vector<2x1x64xf32> to vector<2x64xf32>
    %95 = arith.maximumf %92, %94 : vector<2x64xf32>
    %96 = vector.shape_cast %95 : vector<2x64xf32> to vector<2x1x64xf32>
    %97 = vector.extract_strided_slice %69 {offsets = [0, 6, 0], sizes = [2, 1, 64], strides = [1, 1, 1]} : vector<2x10x64xf32> to vector<2x1x64xf32>
    %98 = vector.shape_cast %97 : vector<2x1x64xf32> to vector<2x64xf32>
    %99 = vector.extract_strided_slice %69 {offsets = [0, 7, 0], sizes = [2, 1, 64], strides = [1, 1, 1]} : vector<2x10x64xf32> to vector<2x1x64xf32>
    %100 = vector.shape_cast %99 : vector<2x1x64xf32> to vector<2x64xf32>
    %101 = arith.maximumf %98, %100 : vector<2x64xf32>
    %102 = vector.extract_strided_slice %69 {offsets = [0, 8, 0], sizes = [2, 1, 64], strides = [1, 1, 1]} : vector<2x10x64xf32> to vector<2x1x64xf32>
    %103 = vector.shape_cast %102 : vector<2x1x64xf32> to vector<2x64xf32>
    %104 = arith.maximumf %101, %103 : vector<2x64xf32>
    %105 = vector.shape_cast %104 : vector<2x64xf32> to vector<2x1x64xf32>
    %106 = tpu.concatenate %78, %87, %96, %105 in 1 : vector<2x1x64xf32>, vector<2x1x64xf32>, vector<2x1x64xf32>, vector<2x1x64xf32> -> vector<2x4x64xf32>
    %107 = vector.shape_cast %106 : vector<2x4x64xf32> to vector<2x1x4x64xf32>
    %108 = vector.extract_strided_slice %15 {offsets = [0, 4, 0, 0], sizes = [2, 1, 10, 64], strides = [1, 1, 1, 1]} : vector<2x10x10x64xf32> to vector<2x1x10x64xf32>
    %109 = vector.shape_cast %108 : vector<2x1x10x64xf32> to vector<2x10x64xf32>
    %110 = vector.extract_strided_slice %15 {offsets = [0, 5, 0, 0], sizes = [2, 1, 10, 64], strides = [1, 1, 1, 1]} : vector<2x10x10x64xf32> to vector<2x1x10x64xf32>
    %111 = vector.shape_cast %110 : vector<2x1x10x64xf32> to vector<2x10x64xf32>
    %112 = arith.maximumf %109, %111 : vector<2x10x64xf32>
    %113 = vector.extract_strided_slice %15 {offsets = [0, 6, 0, 0], sizes = [2, 1, 10, 64], strides = [1, 1, 1, 1]} : vector<2x10x10x64xf32> to vector<2x1x10x64xf32>
    %114 = vector.shape_cast %113 : vector<2x1x10x64xf32> to vector<2x10x64xf32>
    %115 = arith.maximumf %112, %114 : vector<2x10x64xf32>
    %116 = vector.extract_strided_slice %115 {offsets = [0, 0, 0], sizes = [2, 1, 64], strides = [1, 1, 1]} : vector<2x10x64xf32> to vector<2x1x64xf32>
    %117 = vector.shape_cast %116 : vector<2x1x64xf32> to vector<2x64xf32>
    %118 = vector.extract_strided_slice %115 {offsets = [0, 1, 0], sizes = [2, 1, 64], strides = [1, 1, 1]} : vector<2x10x64xf32> to vector<2x1x64xf32>
    %119 = vector.shape_cast %118 : vector<2x1x64xf32> to vector<2x64xf32>
    %120 = arith.maximumf %117, %119 : vector<2x64xf32>
    %121 = vector.extract_strided_slice %115 {offsets = [0, 2, 0], sizes = [2, 1, 64], strides = [1, 1, 1]} : vector<2x10x64xf32> to vector<2x1x64xf32>
    %122 = vector.shape_cast %121 : vector<2x1x64xf32> to vector<2x64xf32>
    %123 = arith.maximumf %120, %122 : vector<2x64xf32>
    %124 = vector.shape_cast %123 : vector<2x64xf32> to vector<2x1x64xf32>
    %125 = vector.extract_strided_slice %115 {offsets = [0, 2, 0], sizes = [2, 1, 64], strides = [1, 1, 1]} : vector<2x10x64xf32> to vector<2x1x64xf32>
    %126 = vector.shape_cast %125 : vector<2x1x64xf32> to vector<2x64xf32>
    %127 = vector.extract_strided_slice %115 {offsets = [0, 3, 0], sizes = [2, 1, 64], strides = [1, 1, 1]} : vector<2x10x64xf32> to vector<2x1x64xf32>
    %128 = vector.shape_cast %127 : vector<2x1x64xf32> to vector<2x64xf32>
    %129 = arith.maximumf %126, %128 : vector<2x64xf32>
    %130 = vector.extract_strided_slice %115 {offsets = [0, 4, 0], sizes = [2, 1, 64], strides = [1, 1, 1]} : vector<2x10x64xf32> to vector<2x1x64xf32>
    %131 = vector.shape_cast %130 : vector<2x1x64xf32> to vector<2x64xf32>
    %132 = arith.maximumf %129, %131 : vector<2x64xf32>
    %133 = vector.shape_cast %132 : vector<2x64xf32> to vector<2x1x64xf32>
    %134 = vector.extract_strided_slice %115 {offsets = [0, 4, 0], sizes = [2, 1, 64], strides = [1, 1, 1]} : vector<2x10x64xf32> to vector<2x1x64xf32>
    %135 = vector.shape_cast %134 : vector<2x1x64xf32> to vector<2x64xf32>
    %136 = vector.extract_strided_slice %115 {offsets = [0, 5, 0], sizes = [2, 1, 64], strides = [1, 1, 1]} : vector<2x10x64xf32> to vector<2x1x64xf32>
    %137 = vector.shape_cast %136 : vector<2x1x64xf32> to vector<2x64xf32>
    %138 = arith.maximumf %135, %137 : vector<2x64xf32>
    %139 = vector.extract_strided_slice %115 {offsets = [0, 6, 0], sizes = [2, 1, 64], strides = [1, 1, 1]} : vector<2x10x64xf32> to vector<2x1x64xf32>
    %140 = vector.shape_cast %139 : vector<2x1x64xf32> to vector<2x64xf32>
    %141 = arith.maximumf %138, %140 : vector<2x64xf32>
    %142 = vector.shape_cast %141 : vector<2x64xf32> to vector<2x1x64xf32>
    %143 = vector.extract_strided_slice %115 {offsets = [0, 6, 0], sizes = [2, 1, 64], strides = [1, 1, 1]} : vector<2x10x64xf32> to vector<2x1x64xf32>
    %144 = vector.shape_cast %143 : vector<2x1x64xf32> to vector<2x64xf32>
    %145 = vector.extract_strided_slice %115 {offsets = [0, 7, 0], sizes = [2, 1, 64], strides = [1, 1, 1]} : vector<2x10x64xf32> to vector<2x1x64xf32>
    %146 = vector.shape_cast %145 : vector<2x1x64xf32> to vector<2x64xf32>
    %147 = arith.maximumf %144, %146 : vector<2x64xf32>
    %148 = vector.extract_strided_slice %115 {offsets = [0, 8, 0], sizes = [2, 1, 64], strides = [1, 1, 1]} : vector<2x10x64xf32> to vector<2x1x64xf32>
    %149 = vector.shape_cast %148 : vector<2x1x64xf32> to vector<2x64xf32>
    %150 = arith.maximumf %147, %149 : vector<2x64xf32>
    %151 = vector.shape_cast %150 : vector<2x64xf32> to vector<2x1x64xf32>
    %152 = tpu.concatenate %124, %133, %142, %151 in 1 : vector<2x1x64xf32>, vector<2x1x64xf32>, vector<2x1x64xf32>, vector<2x1x64xf32> -> vector<2x4x64xf32>
    %153 = vector.shape_cast %152 : vector<2x4x64xf32> to vector<2x1x4x64xf32>
    %154 = vector.extract_strided_slice %15 {offsets = [0, 6, 0, 0], sizes = [2, 1, 10, 64], strides = [1, 1, 1, 1]} : vector<2x10x10x64xf32> to vector<2x1x10x64xf32>
    %155 = vector.shape_cast %154 : vector<2x1x10x64xf32> to vector<2x10x64xf32>
    %156 = vector.extract_strided_slice %15 {offsets = [0, 7, 0, 0], sizes = [2, 1, 10, 64], strides = [1, 1, 1, 1]} : vector<2x10x10x64xf32> to vector<2x1x10x64xf32>
    %157 = vector.shape_cast %156 : vector<2x1x10x64xf32> to vector<2x10x64xf32>
    %158 = arith.maximumf %155, %157 : vector<2x10x64xf32>
    %159 = vector.extract_strided_slice %15 {offsets = [0, 8, 0, 0], sizes = [2, 1, 10, 64], strides = [1, 1, 1, 1]} : vector<2x10x10x64xf32> to vector<2x1x10x64xf32>
    %160 = vector.shape_cast %159 : vector<2x1x10x64xf32> to vector<2x10x64xf32>
    %161 = arith.maximumf %158, %160 : vector<2x10x64xf32>
    %162 = vector.extract_strided_slice %161 {offsets = [0, 0, 0], sizes = [2, 1, 64], strides = [1, 1, 1]} : vector<2x10x64xf32> to vector<2x1x64xf32>
    %163 = vector.shape_cast %162 : vector<2x1x64xf32> to vector<2x64xf32>
    %164 = vector.extract_strided_slice %161 {offsets = [0, 1, 0], sizes = [2, 1, 64], strides = [1, 1, 1]} : vector<2x10x64xf32> to vector<2x1x64xf32>
    %165 = vector.shape_cast %164 : vector<2x1x64xf32> to vector<2x64xf32>
    %166 = arith.maximumf %163, %165 : vector<2x64xf32>
    %167 = vector.extract_strided_slice %161 {offsets = [0, 2, 0], sizes = [2, 1, 64], strides = [1, 1, 1]} : vector<2x10x64xf32> to vector<2x1x64xf32>
    %168 = vector.shape_cast %167 : vector<2x1x64xf32> to vector<2x64xf32>
    %169 = arith.maximumf %166, %168 : vector<2x64xf32>
    %170 = vector.shape_cast %169 : vector<2x64xf32> to vector<2x1x64xf32>
    %171 = vector.extract_strided_slice %161 {offsets = [0, 2, 0], sizes = [2, 1, 64], strides = [1, 1, 1]} : vector<2x10x64xf32> to vector<2x1x64xf32>
    %172 = vector.shape_cast %171 : vector<2x1x64xf32> to vector<2x64xf32>
    %173 = vector.extract_strided_slice %161 {offsets = [0, 3, 0], sizes = [2, 1, 64], strides = [1, 1, 1]} : vector<2x10x64xf32> to vector<2x1x64xf32>
    %174 = vector.shape_cast %173 : vector<2x1x64xf32> to vector<2x64xf32>
    %175 = arith.maximumf %172, %174 : vector<2x64xf32>
    %176 = vector.extract_strided_slice %161 {offsets = [0, 4, 0], sizes = [2, 1, 64], strides = [1, 1, 1]} : vector<2x10x64xf32> to vector<2x1x64xf32>
    %177 = vector.shape_cast %176 : vector<2x1x64xf32> to vector<2x64xf32>
    %178 = arith.maximumf %175, %177 : vector<2x64xf32>
    %179 = vector.shape_cast %178 : vector<2x64xf32> to vector<2x1x64xf32>
    %180 = vector.extract_strided_slice %161 {offsets = [0, 4, 0], sizes = [2, 1, 64], strides = [1, 1, 1]} : vector<2x10x64xf32> to vector<2x1x64xf32>
    %181 = vector.shape_cast %180 : vector<2x1x64xf32> to vector<2x64xf32>
    %182 = vector.extract_strided_slice %161 {offsets = [0, 5, 0], sizes = [2, 1, 64], strides = [1, 1, 1]} : vector<2x10x64xf32> to vector<2x1x64xf32>
    %183 = vector.shape_cast %182 : vector<2x1x64xf32> to vector<2x64xf32>
    %184 = arith.maximumf %181, %183 : vector<2x64xf32>
    %185 = vector.extract_strided_slice %161 {offsets = [0, 6, 0], sizes = [2, 1, 64], strides = [1, 1, 1]} : vector<2x10x64xf32> to vector<2x1x64xf32>
    %186 = vector.shape_cast %185 : vector<2x1x64xf32> to vector<2x64xf32>
    %187 = arith.maximumf %184, %186 : vector<2x64xf32>
    %188 = vector.shape_cast %187 : vector<2x64xf32> to vector<2x1x64xf32>
    %189 = vector.extract_strided_slice %161 {offsets = [0, 6, 0], sizes = [2, 1, 64], strides = [1, 1, 1]} : vector<2x10x64xf32> to vector<2x1x64xf32>
    %190 = vector.shape_cast %189 : vector<2x1x64xf32> to vector<2x64xf32>
    %191 = vector.extract_strided_slice %161 {offsets = [0, 7, 0], sizes = [2, 1, 64], strides = [1, 1, 1]} : vector<2x10x64xf32> to vector<2x1x64xf32>
    %192 = vector.shape_cast %191 : vector<2x1x64xf32> to vector<2x64xf32>
    %193 = arith.maximumf %190, %192 : vector<2x64xf32>
    %194 = vector.extract_strided_slice %161 {offsets = [0, 8, 0], sizes = [2, 1, 64], strides = [1, 1, 1]} : vector<2x10x64xf32> to vector<2x1x64xf32>
    %195 = vector.shape_cast %194 : vector<2x1x64xf32> to vector<2x64xf32>
    %196 = arith.maximumf %193, %195 : vector<2x64xf32>
    %197 = vector.shape_cast %196 : vector<2x64xf32> to vector<2x1x64xf32>
    %198 = tpu.concatenate %170, %179, %188, %197 in 1 : vector<2x1x64xf32>, vector<2x1x64xf32>, vector<2x1x64xf32>, vector<2x1x64xf32> -> vector<2x4x64xf32>
    %199 = vector.shape_cast %198 : vector<2x4x64xf32> to vector<2x1x4x64xf32>
    %200 = tpu.concatenate %61, %107, %153, %199 in 1 : vector<2x1x4x64xf32>, vector<2x1x4x64xf32>, vector<2x1x4x64xf32>, vector<2x1x4x64xf32> -> vector<2x4x4x64xf32>
    %c0_10 = arith.constant 0 : index
    %c0_11 = arith.constant 0 : index
    %c0_12 = arith.constant 0 : index
    %c0_13 = arith.constant 0 : index
    %201 = vector.load %arg4[%c0_10, %c0_11, %c0_12, %c0_13] : memref<2x4x4x64xf32, #tpu.memory_space<vmem>>, vector<2x4x4x64xf32>
    tpu.vector_store %arg4[%c0_10, %c0_11, %c0_12, %c0_13], %200 {strides = array<i32>} : memref<2x4x4x64xf32, #tpu.memory_space<vmem>>, vector<2x4x4x64xf32>,
    return
  }
}

module attributes {stable_mosaic.version = 11 : i64} {
  func.func @block_kernel(%arg0: memref<2x4x4x64xf32, #tpu.memory_space<vmem>>, %arg1: memref<576x64xbf16, #tpu.memory_space<vmem>>, %arg2: memref<1x64xf32, #tpu.memory_space<vmem>>, %arg3: memref<1x64xf32, #tpu.memory_space<vmem>>, %arg4: memref<576x64xbf16, #tpu.memory_space<vmem>>, %arg5: memref<1x64xf32, #tpu.memory_space<vmem>>, %arg6: memref<1x64xf32, #tpu.memory_space<vmem>>, %arg7: memref<2x4x4x64xf32, #tpu.memory_space<vmem>>) attributes {dimension_semantics = [], scalar_prefetch = 0 : i64, scratch_operands = 0 : i64, tpu.core_type = #tpu.core_type<tc>} {
    %c0 = arith.constant 0 : index
    %c0_0 = arith.constant 0 : index
    %c0_1 = arith.constant 0 : index
    %c0_2 = arith.constant 0 : index
    %0 = vector.load %arg0[%c0, %c0_0, %c0_1, %c0_2] : memref<2x4x4x64xf32, #tpu.memory_space<vmem>>, vector<2x4x4x64xf32>
    %cst = arith.constant 0.000000e+00 : f32
    %1 = vector.broadcast %cst : f32 to vector<2x1x4x64xf32>
    %2 = tpu.concatenate %1, %0, %1 in 1 : vector<2x1x4x64xf32>, vector<2x4x4x64xf32>, vector<2x1x4x64xf32> -> vector<2x6x4x64xf32>
    %cst_3 = arith.constant 0.000000e+00 : f32
    %3 = vector.broadcast %cst_3 : f32 to vector<2x6x1x64xf32>
    %4 = tpu.concatenate %3, %2, %3 in 2 : vector<2x6x1x64xf32>, vector<2x6x4x64xf32>, vector<2x6x1x64xf32> -> vector<2x6x6x64xf32>
    %5 = vector.extract_strided_slice %4 {offsets = [0, 0, 0, 0], sizes = [2, 4, 4, 64], strides = [1, 1, 1, 1]} : vector<2x6x6x64xf32> to vector<2x4x4x64xf32>
    %6 = vector.extract_strided_slice %4 {offsets = [0, 0, 1, 0], sizes = [2, 4, 4, 64], strides = [1, 1, 1, 1]} : vector<2x6x6x64xf32> to vector<2x4x4x64xf32>
    %7 = vector.extract_strided_slice %4 {offsets = [0, 0, 2, 0], sizes = [2, 4, 4, 64], strides = [1, 1, 1, 1]} : vector<2x6x6x64xf32> to vector<2x4x4x64xf32>
    %8 = vector.extract_strided_slice %4 {offsets = [0, 1, 0, 0], sizes = [2, 4, 4, 64], strides = [1, 1, 1, 1]} : vector<2x6x6x64xf32> to vector<2x4x4x64xf32>
    %9 = vector.extract_strided_slice %4 {offsets = [0, 1, 1, 0], sizes = [2, 4, 4, 64], strides = [1, 1, 1, 1]} : vector<2x6x6x64xf32> to vector<2x4x4x64xf32>
    %10 = vector.extract_strided_slice %4 {offsets = [0, 1, 2, 0], sizes = [2, 4, 4, 64], strides = [1, 1, 1, 1]} : vector<2x6x6x64xf32> to vector<2x4x4x64xf32>
    %11 = vector.extract_strided_slice %4 {offsets = [0, 2, 0, 0], sizes = [2, 4, 4, 64], strides = [1, 1, 1, 1]} : vector<2x6x6x64xf32> to vector<2x4x4x64xf32>
    %12 = vector.extract_strided_slice %4 {offsets = [0, 2, 1, 0], sizes = [2, 4, 4, 64], strides = [1, 1, 1, 1]} : vector<2x6x6x64xf32> to vector<2x4x4x64xf32>
    %13 = vector.extract_strided_slice %4 {offsets = [0, 2, 2, 0], sizes = [2, 4, 4, 64], strides = [1, 1, 1, 1]} : vector<2x6x6x64xf32> to vector<2x4x4x64xf32>
    %14 = tpu.concatenate %5, %6, %7, %8, %9, %10, %11, %12, %13 in 3 : vector<2x4x4x64xf32>, vector<2x4x4x64xf32>, vector<2x4x4x64xf32>, vector<2x4x4x64xf32>, vector<2x4x4x64xf32>, vector<2x4x4x64xf32>, vector<2x4x4x64xf32>, vector<2x4x4x64xf32>, vector<2x4x4x64xf32> -> vector<2x4x4x576xf32>
    %15 = vector.shape_cast %14 : vector<2x4x4x576xf32> to vector<32x576xf32>
    %16 = arith.truncf %15 : vector<32x576xf32> to vector<32x576xbf16>
    %c0_4 = arith.constant 0 : index
    %c0_5 = arith.constant 0 : index
    %17 = vector.load %arg1[%c0_4, %c0_5] : memref<576x64xbf16, #tpu.memory_space<vmem>>, vector<576x64xbf16>
    %cst_6 = arith.constant dense<0.000000e+00> : vector<32x64xf32>
    %18 = tpu.matmul %16, %17, %cst_6 {dimension_numbers = #tpu.dot_dimension_numbers<[1], [0], [0], [1], [0, 0, 1, 1], [], []>} : vector<32x576xbf16>, vector<576x64xbf16>, vector<32x64xf32> -> vector<32x64xf32>
    %c0_7 = arith.constant 0 : index
    %c0_8 = arith.constant 0 : index
    %19 = vector.load %arg2[%c0_7, %c0_8] : memref<1x64xf32, #tpu.memory_space<vmem>>, vector<1x64xf32>
    %20 = vector.broadcast %19 : vector<1x64xf32> to vector<32x64xf32>
    %21 = arith.mulf %18, %20 : vector<32x64xf32>
    %c0_9 = arith.constant 0 : index
    %c0_10 = arith.constant 0 : index
    %22 = vector.load %arg3[%c0_9, %c0_10] : memref<1x64xf32, #tpu.memory_space<vmem>>, vector<1x64xf32>
    %23 = vector.broadcast %22 : vector<1x64xf32> to vector<32x64xf32>
    %24 = arith.addf %21, %23 : vector<32x64xf32>
    %cst_11 = arith.constant 0.000000e+00 : f32
    %25 = vector.broadcast %cst_11 : f32 to vector<32x64xf32>
    %26 = arith.maximumf %24, %25 : vector<32x64xf32>
    %27 = vector.shape_cast %26 : vector<32x64xf32> to vector<2x4x4x64xf32>
    %cst_12 = arith.constant 0.000000e+00 : f32
    %28 = vector.broadcast %cst_12 : f32 to vector<2x1x4x64xf32>
    %29 = tpu.concatenate %28, %27, %28 in 1 : vector<2x1x4x64xf32>, vector<2x4x4x64xf32>, vector<2x1x4x64xf32> -> vector<2x6x4x64xf32>
    %cst_13 = arith.constant 0.000000e+00 : f32
    %30 = vector.broadcast %cst_13 : f32 to vector<2x6x1x64xf32>
    %31 = tpu.concatenate %30, %29, %30 in 2 : vector<2x6x1x64xf32>, vector<2x6x4x64xf32>, vector<2x6x1x64xf32> -> vector<2x6x6x64xf32>
    %32 = vector.extract_strided_slice %31 {offsets = [0, 0, 0, 0], sizes = [2, 4, 4, 64], strides = [1, 1, 1, 1]} : vector<2x6x6x64xf32> to vector<2x4x4x64xf32>
    %33 = vector.extract_strided_slice %31 {offsets = [0, 0, 1, 0], sizes = [2, 4, 4, 64], strides = [1, 1, 1, 1]} : vector<2x6x6x64xf32> to vector<2x4x4x64xf32>
    %34 = vector.extract_strided_slice %31 {offsets = [0, 0, 2, 0], sizes = [2, 4, 4, 64], strides = [1, 1, 1, 1]} : vector<2x6x6x64xf32> to vector<2x4x4x64xf32>
    %35 = vector.extract_strided_slice %31 {offsets = [0, 1, 0, 0], sizes = [2, 4, 4, 64], strides = [1, 1, 1, 1]} : vector<2x6x6x64xf32> to vector<2x4x4x64xf32>
    %36 = vector.extract_strided_slice %31 {offsets = [0, 1, 1, 0], sizes = [2, 4, 4, 64], strides = [1, 1, 1, 1]} : vector<2x6x6x64xf32> to vector<2x4x4x64xf32>
    %37 = vector.extract_strided_slice %31 {offsets = [0, 1, 2, 0], sizes = [2, 4, 4, 64], strides = [1, 1, 1, 1]} : vector<2x6x6x64xf32> to vector<2x4x4x64xf32>
    %38 = vector.extract_strided_slice %31 {offsets = [0, 2, 0, 0], sizes = [2, 4, 4, 64], strides = [1, 1, 1, 1]} : vector<2x6x6x64xf32> to vector<2x4x4x64xf32>
    %39 = vector.extract_strided_slice %31 {offsets = [0, 2, 1, 0], sizes = [2, 4, 4, 64], strides = [1, 1, 1, 1]} : vector<2x6x6x64xf32> to vector<2x4x4x64xf32>
    %40 = vector.extract_strided_slice %31 {offsets = [0, 2, 2, 0], sizes = [2, 4, 4, 64], strides = [1, 1, 1, 1]} : vector<2x6x6x64xf32> to vector<2x4x4x64xf32>
    %41 = tpu.concatenate %32, %33, %34, %35, %36, %37, %38, %39, %40 in 3 : vector<2x4x4x64xf32>, vector<2x4x4x64xf32>, vector<2x4x4x64xf32>, vector<2x4x4x64xf32>, vector<2x4x4x64xf32>, vector<2x4x4x64xf32>, vector<2x4x4x64xf32>, vector<2x4x4x64xf32>, vector<2x4x4x64xf32> -> vector<2x4x4x576xf32>
    %42 = vector.shape_cast %41 : vector<2x4x4x576xf32> to vector<32x576xf32>
    %43 = arith.truncf %42 : vector<32x576xf32> to vector<32x576xbf16>
    %c0_14 = arith.constant 0 : index
    %c0_15 = arith.constant 0 : index
    %44 = vector.load %arg4[%c0_14, %c0_15] : memref<576x64xbf16, #tpu.memory_space<vmem>>, vector<576x64xbf16>
    %cst_16 = arith.constant dense<0.000000e+00> : vector<32x64xf32>
    %45 = tpu.matmul %43, %44, %cst_16 {dimension_numbers = #tpu.dot_dimension_numbers<[1], [0], [0], [1], [0, 0, 1, 1], [], []>} : vector<32x576xbf16>, vector<576x64xbf16>, vector<32x64xf32> -> vector<32x64xf32>
    %c0_17 = arith.constant 0 : index
    %c0_18 = arith.constant 0 : index
    %46 = vector.load %arg5[%c0_17, %c0_18] : memref<1x64xf32, #tpu.memory_space<vmem>>, vector<1x64xf32>
    %47 = vector.broadcast %46 : vector<1x64xf32> to vector<32x64xf32>
    %48 = arith.mulf %45, %47 : vector<32x64xf32>
    %c0_19 = arith.constant 0 : index
    %c0_20 = arith.constant 0 : index
    %49 = vector.load %arg6[%c0_19, %c0_20] : memref<1x64xf32, #tpu.memory_space<vmem>>, vector<1x64xf32>
    %50 = vector.broadcast %49 : vector<1x64xf32> to vector<32x64xf32>
    %51 = arith.addf %48, %50 : vector<32x64xf32>
    %52 = vector.shape_cast %0 : vector<2x4x4x64xf32> to vector<32x64xf32>
    %53 = arith.addf %51, %52 : vector<32x64xf32>
    %cst_21 = arith.constant 0.000000e+00 : f32
    %54 = vector.broadcast %cst_21 : f32 to vector<32x64xf32>
    %55 = arith.maximumf %53, %54 : vector<32x64xf32>
    %56 = vector.shape_cast %55 : vector<32x64xf32> to vector<2x4x4x64xf32>
    %c0_22 = arith.constant 0 : index
    %c0_23 = arith.constant 0 : index
    %c0_24 = arith.constant 0 : index
    %c0_25 = arith.constant 0 : index
    %57 = vector.load %arg7[%c0_22, %c0_23, %c0_24, %c0_25] : memref<2x4x4x64xf32, #tpu.memory_space<vmem>>, vector<2x4x4x64xf32>
    tpu.vector_store %arg7[%c0_22, %c0_23, %c0_24, %c0_25], %56 {strides = array<i32>} : memref<2x4x4x64xf32, #tpu.memory_space<vmem>>, vector<2x4x4x64xf32>,
    return
  }
}

module attributes {stable_mosaic.version = 11 : i64} {
  func.func @down_block_kernel(%arg0: memref<8x576xbf16, #tpu.memory_space<vmem>>, %arg1: memref<8x64xbf16, #tpu.memory_space<vmem>>, %arg2: memref<576x128xbf16, #tpu.memory_space<vmem>>, %arg3: memref<1x128xf32, #tpu.memory_space<vmem>>, %arg4: memref<1x128xf32, #tpu.memory_space<vmem>>, %arg5: memref<1152x128xbf16, #tpu.memory_space<vmem>>, %arg6: memref<1x128xf32, #tpu.memory_space<vmem>>, %arg7: memref<1x128xf32, #tpu.memory_space<vmem>>, %arg8: memref<64x128xbf16, #tpu.memory_space<vmem>>, %arg9: memref<1x128xf32, #tpu.memory_space<vmem>>, %arg10: memref<1x128xf32, #tpu.memory_space<vmem>>, %arg11: memref<2x2x2x128xf32, #tpu.memory_space<vmem>>) attributes {dimension_semantics = [], scalar_prefetch = 0 : i64, scratch_operands = 0 : i64, tpu.core_type = #tpu.core_type<tc>} {
    %c0 = arith.constant 0 : index
    %c0_0 = arith.constant 0 : index
    %0 = vector.load %arg0[%c0, %c0_0] : memref<8x576xbf16, #tpu.memory_space<vmem>>, vector<8x576xbf16>
    %c0_1 = arith.constant 0 : index
    %c0_2 = arith.constant 0 : index
    %1 = vector.load %arg2[%c0_1, %c0_2] : memref<576x128xbf16, #tpu.memory_space<vmem>>, vector<576x128xbf16>
    %cst = arith.constant dense<0.000000e+00> : vector<8x128xf32>
    %2 = tpu.matmul %0, %1, %cst {dimension_numbers = #tpu.dot_dimension_numbers<[1], [0], [0], [1], [0, 0, 1, 1], [], []>} : vector<8x576xbf16>, vector<576x128xbf16>, vector<8x128xf32> -> vector<8x128xf32>
    %c0_3 = arith.constant 0 : index
    %c0_4 = arith.constant 0 : index
    %3 = vector.load %arg3[%c0_3, %c0_4] : memref<1x128xf32, #tpu.memory_space<vmem>>, vector<1x128xf32>
    %4 = vector.broadcast %3 : vector<1x128xf32> to vector<8x128xf32>
    %5 = arith.mulf %2, %4 : vector<8x128xf32>
    %c0_5 = arith.constant 0 : index
    %c0_6 = arith.constant 0 : index
    %6 = vector.load %arg4[%c0_5, %c0_6] : memref<1x128xf32, #tpu.memory_space<vmem>>, vector<1x128xf32>
    %7 = vector.broadcast %6 : vector<1x128xf32> to vector<8x128xf32>
    %8 = arith.addf %5, %7 : vector<8x128xf32>
    %cst_7 = arith.constant 0.000000e+00 : f32
    %9 = vector.broadcast %cst_7 : f32 to vector<8x128xf32>
    %10 = arith.maximumf %8, %9 : vector<8x128xf32>
    %11 = vector.shape_cast %10 : vector<8x128xf32> to vector<2x2x2x128xf32>
    %cst_8 = arith.constant 0.000000e+00 : f32
    %12 = vector.broadcast %cst_8 : f32 to vector<2x1x2x128xf32>
    %13 = tpu.concatenate %12, %11, %12 in 1 : vector<2x1x2x128xf32>, vector<2x2x2x128xf32>, vector<2x1x2x128xf32> -> vector<2x4x2x128xf32>
    %cst_9 = arith.constant 0.000000e+00 : f32
    %14 = vector.broadcast %cst_9 : f32 to vector<2x4x1x128xf32>
    %15 = tpu.concatenate %14, %13, %14 in 2 : vector<2x4x1x128xf32>, vector<2x4x2x128xf32>, vector<2x4x1x128xf32> -> vector<2x4x4x128xf32>
    %16 = vector.extract_strided_slice %15 {offsets = [0, 0, 0, 0], sizes = [2, 2, 2, 128], strides = [1, 1, 1, 1]} : vector<2x4x4x128xf32> to vector<2x2x2x128xf32>
    %17 = vector.extract_strided_slice %15 {offsets = [0, 0, 1, 0], sizes = [2, 2, 2, 128], strides = [1, 1, 1, 1]} : vector<2x4x4x128xf32> to vector<2x2x2x128xf32>
    %18 = vector.extract_strided_slice %15 {offsets = [0, 0, 2, 0], sizes = [2, 2, 2, 128], strides = [1, 1, 1, 1]} : vector<2x4x4x128xf32> to vector<2x2x2x128xf32>
    %19 = vector.extract_strided_slice %15 {offsets = [0, 1, 0, 0], sizes = [2, 2, 2, 128], strides = [1, 1, 1, 1]} : vector<2x4x4x128xf32> to vector<2x2x2x128xf32>
    %20 = vector.extract_strided_slice %15 {offsets = [0, 1, 1, 0], sizes = [2, 2, 2, 128], strides = [1, 1, 1, 1]} : vector<2x4x4x128xf32> to vector<2x2x2x128xf32>
    %21 = vector.extract_strided_slice %15 {offsets = [0, 1, 2, 0], sizes = [2, 2, 2, 128], strides = [1, 1, 1, 1]} : vector<2x4x4x128xf32> to vector<2x2x2x128xf32>
    %22 = vector.extract_strided_slice %15 {offsets = [0, 2, 0, 0], sizes = [2, 2, 2, 128], strides = [1, 1, 1, 1]} : vector<2x4x4x128xf32> to vector<2x2x2x128xf32>
    %23 = vector.extract_strided_slice %15 {offsets = [0, 2, 1, 0], sizes = [2, 2, 2, 128], strides = [1, 1, 1, 1]} : vector<2x4x4x128xf32> to vector<2x2x2x128xf32>
    %24 = vector.extract_strided_slice %15 {offsets = [0, 2, 2, 0], sizes = [2, 2, 2, 128], strides = [1, 1, 1, 1]} : vector<2x4x4x128xf32> to vector<2x2x2x128xf32>
    %25 = tpu.concatenate %16, %17, %18, %19, %20, %21, %22, %23, %24 in 3 : vector<2x2x2x128xf32>, vector<2x2x2x128xf32>, vector<2x2x2x128xf32>, vector<2x2x2x128xf32>, vector<2x2x2x128xf32>, vector<2x2x2x128xf32>, vector<2x2x2x128xf32>, vector<2x2x2x128xf32>, vector<2x2x2x128xf32> -> vector<2x2x2x1152xf32>
    %26 = vector.shape_cast %25 : vector<2x2x2x1152xf32> to vector<8x1152xf32>
    %27 = arith.truncf %26 : vector<8x1152xf32> to vector<8x1152xbf16>
    %c0_10 = arith.constant 0 : index
    %c0_11 = arith.constant 0 : index
    %28 = vector.load %arg5[%c0_10, %c0_11] : memref<1152x128xbf16, #tpu.memory_space<vmem>>, vector<1152x128xbf16>
    %cst_12 = arith.constant dense<0.000000e+00> : vector<8x128xf32>
    %29 = tpu.matmul %27, %28, %cst_12 {dimension_numbers = #tpu.dot_dimension_numbers<[1], [0], [0], [1], [0, 0, 1, 1], [], []>} : vector<8x1152xbf16>, vector<1152x128xbf16>, vector<8x128xf32> -> vector<8x128xf32>
    %c0_13 = arith.constant 0 : index
    %c0_14 = arith.constant 0 : index
    %30 = vector.load %arg6[%c0_13, %c0_14] : memref<1x128xf32, #tpu.memory_space<vmem>>, vector<1x128xf32>
    %31 = vector.broadcast %30 : vector<1x128xf32> to vector<8x128xf32>
    %32 = arith.mulf %29, %31 : vector<8x128xf32>
    %c0_15 = arith.constant 0 : index
    %c0_16 = arith.constant 0 : index
    %33 = vector.load %arg7[%c0_15, %c0_16] : memref<1x128xf32, #tpu.memory_space<vmem>>, vector<1x128xf32>
    %34 = vector.broadcast %33 : vector<1x128xf32> to vector<8x128xf32>
    %35 = arith.addf %32, %34 : vector<8x128xf32>
    %c0_17 = arith.constant 0 : index
    %c0_18 = arith.constant 0 : index
    %36 = vector.load %arg1[%c0_17, %c0_18] : memref<8x64xbf16, #tpu.memory_space<vmem>>, vector<8x64xbf16>
    %c0_19 = arith.constant 0 : index
    %c0_20 = arith.constant 0 : index
    %37 = vector.load %arg8[%c0_19, %c0_20] : memref<64x128xbf16, #tpu.memory_space<vmem>>, vector<64x128xbf16>
    %cst_21 = arith.constant dense<0.000000e+00> : vector<8x128xf32>
    %38 = tpu.matmul %36, %37, %cst_21 {dimension_numbers = #tpu.dot_dimension_numbers<[1], [0], [0], [1], [0, 0, 1, 1], [], []>} : vector<8x64xbf16>, vector<64x128xbf16>, vector<8x128xf32> -> vector<8x128xf32>
    %c0_22 = arith.constant 0 : index
    %c0_23 = arith.constant 0 : index
    %39 = vector.load %arg9[%c0_22, %c0_23] : memref<1x128xf32, #tpu.memory_space<vmem>>, vector<1x128xf32>
    %40 = vector.broadcast %39 : vector<1x128xf32> to vector<8x128xf32>
    %41 = arith.mulf %38, %40 : vector<8x128xf32>
    %c0_24 = arith.constant 0 : index
    %c0_25 = arith.constant 0 : index
    %42 = vector.load %arg10[%c0_24, %c0_25] : memref<1x128xf32, #tpu.memory_space<vmem>>, vector<1x128xf32>
    %43 = vector.broadcast %42 : vector<1x128xf32> to vector<8x128xf32>
    %44 = arith.addf %41, %43 : vector<8x128xf32>
    %45 = arith.addf %35, %44 : vector<8x128xf32>
    %cst_26 = arith.constant 0.000000e+00 : f32
    %46 = vector.broadcast %cst_26 : f32 to vector<8x128xf32>
    %47 = arith.maximumf %45, %46 : vector<8x128xf32>
    %48 = vector.shape_cast %47 : vector<8x128xf32> to vector<2x2x2x128xf32>
    %c0_27 = arith.constant 0 : index
    %c0_28 = arith.constant 0 : index
    %c0_29 = arith.constant 0 : index
    %c0_30 = arith.constant 0 : index
    %49 = vector.load %arg11[%c0_27, %c0_28, %c0_29, %c0_30] : memref<2x2x2x128xf32, #tpu.memory_space<vmem>>, vector<2x2x2x128xf32>
    tpu.vector_store %arg11[%c0_27, %c0_28, %c0_29, %c0_30], %48 {strides = array<i32>} : memref<2x2x2x128xf32, #tpu.memory_space<vmem>>, vector<2x2x2x128xf32>,
    return
  }
}

module attributes {stable_mosaic.version = 11 : i64} {
  func.func @block_kernel(%arg0: memref<2x2x2x128xf32, #tpu.memory_space<vmem>>, %arg1: memref<1152x128xbf16, #tpu.memory_space<vmem>>, %arg2: memref<1x128xf32, #tpu.memory_space<vmem>>, %arg3: memref<1x128xf32, #tpu.memory_space<vmem>>, %arg4: memref<1152x128xbf16, #tpu.memory_space<vmem>>, %arg5: memref<1x128xf32, #tpu.memory_space<vmem>>, %arg6: memref<1x128xf32, #tpu.memory_space<vmem>>, %arg7: memref<2x2x2x128xf32, #tpu.memory_space<vmem>>) attributes {dimension_semantics = [], scalar_prefetch = 0 : i64, scratch_operands = 0 : i64, tpu.core_type = #tpu.core_type<tc>} {
    %c0 = arith.constant 0 : index
    %c0_0 = arith.constant 0 : index
    %c0_1 = arith.constant 0 : index
    %c0_2 = arith.constant 0 : index
    %0 = vector.load %arg0[%c0, %c0_0, %c0_1, %c0_2] : memref<2x2x2x128xf32, #tpu.memory_space<vmem>>, vector<2x2x2x128xf32>
    %cst = arith.constant 0.000000e+00 : f32
    %1 = vector.broadcast %cst : f32 to vector<2x1x2x128xf32>
    %2 = tpu.concatenate %1, %0, %1 in 1 : vector<2x1x2x128xf32>, vector<2x2x2x128xf32>, vector<2x1x2x128xf32> -> vector<2x4x2x128xf32>
    %cst_3 = arith.constant 0.000000e+00 : f32
    %3 = vector.broadcast %cst_3 : f32 to vector<2x4x1x128xf32>
    %4 = tpu.concatenate %3, %2, %3 in 2 : vector<2x4x1x128xf32>, vector<2x4x2x128xf32>, vector<2x4x1x128xf32> -> vector<2x4x4x128xf32>
    %5 = vector.extract_strided_slice %4 {offsets = [0, 0, 0, 0], sizes = [2, 2, 2, 128], strides = [1, 1, 1, 1]} : vector<2x4x4x128xf32> to vector<2x2x2x128xf32>
    %6 = vector.extract_strided_slice %4 {offsets = [0, 0, 1, 0], sizes = [2, 2, 2, 128], strides = [1, 1, 1, 1]} : vector<2x4x4x128xf32> to vector<2x2x2x128xf32>
    %7 = vector.extract_strided_slice %4 {offsets = [0, 0, 2, 0], sizes = [2, 2, 2, 128], strides = [1, 1, 1, 1]} : vector<2x4x4x128xf32> to vector<2x2x2x128xf32>
    %8 = vector.extract_strided_slice %4 {offsets = [0, 1, 0, 0], sizes = [2, 2, 2, 128], strides = [1, 1, 1, 1]} : vector<2x4x4x128xf32> to vector<2x2x2x128xf32>
    %9 = vector.extract_strided_slice %4 {offsets = [0, 1, 1, 0], sizes = [2, 2, 2, 128], strides = [1, 1, 1, 1]} : vector<2x4x4x128xf32> to vector<2x2x2x128xf32>
    %10 = vector.extract_strided_slice %4 {offsets = [0, 1, 2, 0], sizes = [2, 2, 2, 128], strides = [1, 1, 1, 1]} : vector<2x4x4x128xf32> to vector<2x2x2x128xf32>
    %11 = vector.extract_strided_slice %4 {offsets = [0, 2, 0, 0], sizes = [2, 2, 2, 128], strides = [1, 1, 1, 1]} : vector<2x4x4x128xf32> to vector<2x2x2x128xf32>
    %12 = vector.extract_strided_slice %4 {offsets = [0, 2, 1, 0], sizes = [2, 2, 2, 128], strides = [1, 1, 1, 1]} : vector<2x4x4x128xf32> to vector<2x2x2x128xf32>
    %13 = vector.extract_strided_slice %4 {offsets = [0, 2, 2, 0], sizes = [2, 2, 2, 128], strides = [1, 1, 1, 1]} : vector<2x4x4x128xf32> to vector<2x2x2x128xf32>
    %14 = tpu.concatenate %5, %6, %7, %8, %9, %10, %11, %12, %13 in 3 : vector<2x2x2x128xf32>, vector<2x2x2x128xf32>, vector<2x2x2x128xf32>, vector<2x2x2x128xf32>, vector<2x2x2x128xf32>, vector<2x2x2x128xf32>, vector<2x2x2x128xf32>, vector<2x2x2x128xf32>, vector<2x2x2x128xf32> -> vector<2x2x2x1152xf32>
    %15 = vector.shape_cast %14 : vector<2x2x2x1152xf32> to vector<8x1152xf32>
    %16 = arith.truncf %15 : vector<8x1152xf32> to vector<8x1152xbf16>
    %c0_4 = arith.constant 0 : index
    %c0_5 = arith.constant 0 : index
    %17 = vector.load %arg1[%c0_4, %c0_5] : memref<1152x128xbf16, #tpu.memory_space<vmem>>, vector<1152x128xbf16>
    %cst_6 = arith.constant dense<0.000000e+00> : vector<8x128xf32>
    %18 = tpu.matmul %16, %17, %cst_6 {dimension_numbers = #tpu.dot_dimension_numbers<[1], [0], [0], [1], [0, 0, 1, 1], [], []>} : vector<8x1152xbf16>, vector<1152x128xbf16>, vector<8x128xf32> -> vector<8x128xf32>
    %c0_7 = arith.constant 0 : index
    %c0_8 = arith.constant 0 : index
    %19 = vector.load %arg2[%c0_7, %c0_8] : memref<1x128xf32, #tpu.memory_space<vmem>>, vector<1x128xf32>
    %20 = vector.broadcast %19 : vector<1x128xf32> to vector<8x128xf32>
    %21 = arith.mulf %18, %20 : vector<8x128xf32>
    %c0_9 = arith.constant 0 : index
    %c0_10 = arith.constant 0 : index
    %22 = vector.load %arg3[%c0_9, %c0_10] : memref<1x128xf32, #tpu.memory_space<vmem>>, vector<1x128xf32>
    %23 = vector.broadcast %22 : vector<1x128xf32> to vector<8x128xf32>
    %24 = arith.addf %21, %23 : vector<8x128xf32>
    %cst_11 = arith.constant 0.000000e+00 : f32
    %25 = vector.broadcast %cst_11 : f32 to vector<8x128xf32>
    %26 = arith.maximumf %24, %25 : vector<8x128xf32>
    %27 = vector.shape_cast %26 : vector<8x128xf32> to vector<2x2x2x128xf32>
    %cst_12 = arith.constant 0.000000e+00 : f32
    %28 = vector.broadcast %cst_12 : f32 to vector<2x1x2x128xf32>
    %29 = tpu.concatenate %28, %27, %28 in 1 : vector<2x1x2x128xf32>, vector<2x2x2x128xf32>, vector<2x1x2x128xf32> -> vector<2x4x2x128xf32>
    %cst_13 = arith.constant 0.000000e+00 : f32
    %30 = vector.broadcast %cst_13 : f32 to vector<2x4x1x128xf32>
    %31 = tpu.concatenate %30, %29, %30 in 2 : vector<2x4x1x128xf32>, vector<2x4x2x128xf32>, vector<2x4x1x128xf32> -> vector<2x4x4x128xf32>
    %32 = vector.extract_strided_slice %31 {offsets = [0, 0, 0, 0], sizes = [2, 2, 2, 128], strides = [1, 1, 1, 1]} : vector<2x4x4x128xf32> to vector<2x2x2x128xf32>
    %33 = vector.extract_strided_slice %31 {offsets = [0, 0, 1, 0], sizes = [2, 2, 2, 128], strides = [1, 1, 1, 1]} : vector<2x4x4x128xf32> to vector<2x2x2x128xf32>
    %34 = vector.extract_strided_slice %31 {offsets = [0, 0, 2, 0], sizes = [2, 2, 2, 128], strides = [1, 1, 1, 1]} : vector<2x4x4x128xf32> to vector<2x2x2x128xf32>
    %35 = vector.extract_strided_slice %31 {offsets = [0, 1, 0, 0], sizes = [2, 2, 2, 128], strides = [1, 1, 1, 1]} : vector<2x4x4x128xf32> to vector<2x2x2x128xf32>
    %36 = vector.extract_strided_slice %31 {offsets = [0, 1, 1, 0], sizes = [2, 2, 2, 128], strides = [1, 1, 1, 1]} : vector<2x4x4x128xf32> to vector<2x2x2x128xf32>
    %37 = vector.extract_strided_slice %31 {offsets = [0, 1, 2, 0], sizes = [2, 2, 2, 128], strides = [1, 1, 1, 1]} : vector<2x4x4x128xf32> to vector<2x2x2x128xf32>
    %38 = vector.extract_strided_slice %31 {offsets = [0, 2, 0, 0], sizes = [2, 2, 2, 128], strides = [1, 1, 1, 1]} : vector<2x4x4x128xf32> to vector<2x2x2x128xf32>
    %39 = vector.extract_strided_slice %31 {offsets = [0, 2, 1, 0], sizes = [2, 2, 2, 128], strides = [1, 1, 1, 1]} : vector<2x4x4x128xf32> to vector<2x2x2x128xf32>
    %40 = vector.extract_strided_slice %31 {offsets = [0, 2, 2, 0], sizes = [2, 2, 2, 128], strides = [1, 1, 1, 1]} : vector<2x4x4x128xf32> to vector<2x2x2x128xf32>
    %41 = tpu.concatenate %32, %33, %34, %35, %36, %37, %38, %39, %40 in 3 : vector<2x2x2x128xf32>, vector<2x2x2x128xf32>, vector<2x2x2x128xf32>, vector<2x2x2x128xf32>, vector<2x2x2x128xf32>, vector<2x2x2x128xf32>, vector<2x2x2x128xf32>, vector<2x2x2x128xf32>, vector<2x2x2x128xf32> -> vector<2x2x2x1152xf32>
    %42 = vector.shape_cast %41 : vector<2x2x2x1152xf32> to vector<8x1152xf32>
    %43 = arith.truncf %42 : vector<8x1152xf32> to vector<8x1152xbf16>
    %c0_14 = arith.constant 0 : index
    %c0_15 = arith.constant 0 : index
    %44 = vector.load %arg4[%c0_14, %c0_15] : memref<1152x128xbf16, #tpu.memory_space<vmem>>, vector<1152x128xbf16>
    %cst_16 = arith.constant dense<0.000000e+00> : vector<8x128xf32>
    %45 = tpu.matmul %43, %44, %cst_16 {dimension_numbers = #tpu.dot_dimension_numbers<[1], [0], [0], [1], [0, 0, 1, 1], [], []>} : vector<8x1152xbf16>, vector<1152x128xbf16>, vector<8x128xf32> -> vector<8x128xf32>
    %c0_17 = arith.constant 0 : index
    %c0_18 = arith.constant 0 : index
    %46 = vector.load %arg5[%c0_17, %c0_18] : memref<1x128xf32, #tpu.memory_space<vmem>>, vector<1x128xf32>
    %47 = vector.broadcast %46 : vector<1x128xf32> to vector<8x128xf32>
    %48 = arith.mulf %45, %47 : vector<8x128xf32>
    %c0_19 = arith.constant 0 : index
    %c0_20 = arith.constant 0 : index
    %49 = vector.load %arg6[%c0_19, %c0_20] : memref<1x128xf32, #tpu.memory_space<vmem>>, vector<1x128xf32>
    %50 = vector.broadcast %49 : vector<1x128xf32> to vector<8x128xf32>
    %51 = arith.addf %48, %50 : vector<8x128xf32>
    %52 = vector.shape_cast %0 : vector<2x2x2x128xf32> to vector<8x128xf32>
    %53 = arith.addf %51, %52 : vector<8x128xf32>
    %cst_21 = arith.constant 0.000000e+00 : f32
    %54 = vector.broadcast %cst_21 : f32 to vector<8x128xf32>
    %55 = arith.maximumf %53, %54 : vector<8x128xf32>
    %56 = vector.shape_cast %55 : vector<8x128xf32> to vector<2x2x2x128xf32>
    %c0_22 = arith.constant 0 : index
    %c0_23 = arith.constant 0 : index
    %c0_24 = arith.constant 0 : index
    %c0_25 = arith.constant 0 : index
    %57 = vector.load %arg7[%c0_22, %c0_23, %c0_24, %c0_25] : memref<2x2x2x128xf32, #tpu.memory_space<vmem>>, vector<2x2x2x128xf32>
    tpu.vector_store %arg7[%c0_22, %c0_23, %c0_24, %c0_25], %56 {strides = array<i32>} : memref<2x2x2x128xf32, #tpu.memory_space<vmem>>, vector<2x2x2x128xf32>,
    return
  }
}

module attributes {stable_mosaic.version = 11 : i64} {
  func.func @fusion_kernel(%arg0: memref<2x2x2x128xf32, #tpu.memory_space<vmem>>, %arg1: memref<2x2x2x128xf32, #tpu.memory_space<vmem>>, %arg2: memref<128x8xbf16, #tpu.memory_space<vmem>>, %arg3: memref<8x128xbf16, #tpu.memory_space<vmem>>, %arg4: memref<128x8xbf16, #tpu.memory_space<vmem>>, %arg5: memref<8x128xbf16, #tpu.memory_space<vmem>>, %arg6: memref<2x2x2x128xf32, #tpu.memory_space<vmem>>) attributes {dimension_semantics = [], scalar_prefetch = 0 : i64, scratch_operands = 0 : i64, tpu.core_type = #tpu.core_type<tc>} {
    %c0 = arith.constant 0 : index
    %c0_0 = arith.constant 0 : index
    %c0_1 = arith.constant 0 : index
    %c0_2 = arith.constant 0 : index
    %0 = vector.load %arg0[%c0, %c0_0, %c0_1, %c0_2] : memref<2x2x2x128xf32, #tpu.memory_space<vmem>>, vector<2x2x2x128xf32>
    %c0_3 = arith.constant 0 : index
    %c0_4 = arith.constant 0 : index
    %c0_5 = arith.constant 0 : index
    %c0_6 = arith.constant 0 : index
    %1 = vector.load %arg1[%c0_3, %c0_4, %c0_5, %c0_6] : memref<2x2x2x128xf32, #tpu.memory_space<vmem>>, vector<2x2x2x128xf32>
    %c0_7 = arith.constant 0 : index
    %c0_8 = arith.constant 0 : index
    %2 = vector.load %arg2[%c0_7, %c0_8] : memref<128x8xbf16, #tpu.memory_space<vmem>>, vector<128x8xbf16>
    %c0_9 = arith.constant 0 : index
    %c0_10 = arith.constant 0 : index
    %3 = vector.load %arg3[%c0_9, %c0_10] : memref<8x128xbf16, #tpu.memory_space<vmem>>, vector<8x128xbf16>
    %4 = vector.shape_cast %0 : vector<2x2x2x128xf32> to vector<2x4x128xf32>
    %cst = arith.constant dense<0.000000e+00> : vector<2x128xf32>
    %5 = vector.multi_reduction <add>, %4, %cst [1] : vector<2x4x128xf32> to vector<2x128xf32>
    %cst_11 = arith.constant 4.000000e+00 : f32
    %6 = vector.broadcast %cst_11 : f32 to vector<2x128xf32>
    %7 = arith.divf %5, %6 : vector<2x128xf32>
    %8 = arith.truncf %7 : vector<2x128xf32> to vector<2x128xbf16>
    %cst_12 = arith.constant dense<0.000000e+00> : vector<2x8xf32>
    %9 = tpu.matmul %8, %2, %cst_12 {dimension_numbers = #tpu.dot_dimension_numbers<[1], [0], [0], [1], [0, 0, 1, 1], [], []>} : vector<2x128xbf16>, vector<128x8xbf16>, vector<2x8xf32> -> vector<2x8xf32>
    %cst_13 = arith.constant 0.000000e+00 : f32
    %10 = vector.broadcast %cst_13 : f32 to vector<2x8xf32>
    %11 = arith.maximumf %9, %10 : vector<2x8xf32>
    %12 = arith.truncf %11 : vector<2x8xf32> to vector<2x8xbf16>
    %cst_14 = arith.constant dense<0.000000e+00> : vector<2x128xf32>
    %13 = tpu.matmul %12, %3, %cst_14 {dimension_numbers = #tpu.dot_dimension_numbers<[1], [0], [0], [1], [0, 0, 1, 1], [], []>} : vector<2x8xbf16>, vector<8x128xbf16>, vector<2x128xf32> -> vector<2x128xf32>
    %cst_15 = arith.constant 0.000000e+00 : f32
    %14 = vector.broadcast %cst_15 : f32 to vector<2x128xf32>
    %15 = arith.subf %14, %13 : vector<2x128xf32>
    %16 = math.exp %15 : vector<2x128xf32>
    %cst_16 = arith.constant 1.000000e+00 : f32
    %17 = vector.broadcast %cst_16 : f32 to vector<2x128xf32>
    %18 = arith.addf %17, %16 : vector<2x128xf32>
    %cst_17 = arith.constant 1.000000e+00 : f32
    %19 = vector.broadcast %cst_17 : f32 to vector<2x128xf32>
    %20 = arith.divf %19, %18 : vector<2x128xf32>
    %21 = vector.shape_cast %20 : vector<2x128xf32> to vector<2x1x1x128xf32>
    %22 = vector.broadcast %21 : vector<2x1x1x128xf32> to vector<2x2x2x128xf32>
    %23 = arith.mulf %0, %22 : vector<2x2x2x128xf32>
    %c0_18 = arith.constant 0 : index
    %c0_19 = arith.constant 0 : index
    %24 = vector.load %arg4[%c0_18, %c0_19] : memref<128x8xbf16, #tpu.memory_space<vmem>>, vector<128x8xbf16>
    %c0_20 = arith.constant 0 : index
    %c0_21 = arith.constant 0 : index
    %25 = vector.load %arg5[%c0_20, %c0_21] : memref<8x128xbf16, #tpu.memory_space<vmem>>, vector<8x128xbf16>
    %26 = vector.shape_cast %1 : vector<2x2x2x128xf32> to vector<2x4x128xf32>
    %cst_22 = arith.constant dense<0.000000e+00> : vector<2x128xf32>
    %27 = vector.multi_reduction <add>, %26, %cst_22 [1] : vector<2x4x128xf32> to vector<2x128xf32>
    %cst_23 = arith.constant 4.000000e+00 : f32
    %28 = vector.broadcast %cst_23 : f32 to vector<2x128xf32>
    %29 = arith.divf %27, %28 : vector<2x128xf32>
    %30 = arith.truncf %29 : vector<2x128xf32> to vector<2x128xbf16>
    %cst_24 = arith.constant dense<0.000000e+00> : vector<2x8xf32>
    %31 = tpu.matmul %30, %24, %cst_24 {dimension_numbers = #tpu.dot_dimension_numbers<[1], [0], [0], [1], [0, 0, 1, 1], [], []>} : vector<2x128xbf16>, vector<128x8xbf16>, vector<2x8xf32> -> vector<2x8xf32>
    %cst_25 = arith.constant 0.000000e+00 : f32
    %32 = vector.broadcast %cst_25 : f32 to vector<2x8xf32>
    %33 = arith.maximumf %31, %32 : vector<2x8xf32>
    %34 = arith.truncf %33 : vector<2x8xf32> to vector<2x8xbf16>
    %cst_26 = arith.constant dense<0.000000e+00> : vector<2x128xf32>
    %35 = tpu.matmul %34, %25, %cst_26 {dimension_numbers = #tpu.dot_dimension_numbers<[1], [0], [0], [1], [0, 0, 1, 1], [], []>} : vector<2x8xbf16>, vector<8x128xbf16>, vector<2x128xf32> -> vector<2x128xf32>
    %cst_27 = arith.constant 0.000000e+00 : f32
    %36 = vector.broadcast %cst_27 : f32 to vector<2x128xf32>
    %37 = arith.subf %36, %35 : vector<2x128xf32>
    %38 = math.exp %37 : vector<2x128xf32>
    %cst_28 = arith.constant 1.000000e+00 : f32
    %39 = vector.broadcast %cst_28 : f32 to vector<2x128xf32>
    %40 = arith.addf %39, %38 : vector<2x128xf32>
    %cst_29 = arith.constant 1.000000e+00 : f32
    %41 = vector.broadcast %cst_29 : f32 to vector<2x128xf32>
    %42 = arith.divf %41, %40 : vector<2x128xf32>
    %43 = vector.shape_cast %42 : vector<2x128xf32> to vector<2x1x1x128xf32>
    %44 = vector.broadcast %43 : vector<2x1x1x128xf32> to vector<2x2x2x128xf32>
    %45 = arith.mulf %1, %44 : vector<2x2x2x128xf32>
    %46 = math.exp %23 : vector<2x2x2x128xf32>
    %47 = math.exp %45 : vector<2x2x2x128xf32>
    %48 = arith.mulf %0, %46 : vector<2x2x2x128xf32>
    %49 = arith.mulf %1, %47 : vector<2x2x2x128xf32>
    %50 = arith.addf %48, %49 : vector<2x2x2x128xf32>
    %51 = arith.addf %46, %47 : vector<2x2x2x128xf32>
    %52 = arith.divf %50, %51 : vector<2x2x2x128xf32>
    %cst_30 = arith.constant 0.000000e+00 : f32
    %53 = vector.broadcast %cst_30 : f32 to vector<2x2x2x128xf32>
    %54 = arith.maximumf %52, %53 : vector<2x2x2x128xf32>
    %c0_31 = arith.constant 0 : index
    %c0_32 = arith.constant 0 : index
    %c0_33 = arith.constant 0 : index
    %c0_34 = arith.constant 0 : index
    %55 = vector.load %arg6[%c0_31, %c0_32, %c0_33, %c0_34] : memref<2x2x2x128xf32, #tpu.memory_space<vmem>>, vector<2x2x2x128xf32>
    tpu.vector_store %arg6[%c0_31, %c0_32, %c0_33, %c0_34], %54 {strides = array<i32>} : memref<2x2x2x128xf32, #tpu.memory_space<vmem>>, vector<2x2x2x128xf32>,
    return
  }
}

module attributes {stable_mosaic.version = 11 : i64} {
  func.func @block_kernel(%arg0: memref<2x2x2x128xf32, #tpu.memory_space<vmem>>, %arg1: memref<1152x128xbf16, #tpu.memory_space<vmem>>, %arg2: memref<1x128xf32, #tpu.memory_space<vmem>>, %arg3: memref<1x128xf32, #tpu.memory_space<vmem>>, %arg4: memref<1152x128xbf16, #tpu.memory_space<vmem>>, %arg5: memref<1x128xf32, #tpu.memory_space<vmem>>, %arg6: memref<1x128xf32, #tpu.memory_space<vmem>>, %arg7: memref<2x2x2x128xf32, #tpu.memory_space<vmem>>) attributes {dimension_semantics = [], scalar_prefetch = 0 : i64, scratch_operands = 0 : i64, tpu.core_type = #tpu.core_type<tc>} {
    %c0 = arith.constant 0 : index
    %c0_0 = arith.constant 0 : index
    %c0_1 = arith.constant 0 : index
    %c0_2 = arith.constant 0 : index
    %0 = vector.load %arg0[%c0, %c0_0, %c0_1, %c0_2] : memref<2x2x2x128xf32, #tpu.memory_space<vmem>>, vector<2x2x2x128xf32>
    %cst = arith.constant 0.000000e+00 : f32
    %1 = vector.broadcast %cst : f32 to vector<2x1x2x128xf32>
    %2 = tpu.concatenate %1, %0, %1 in 1 : vector<2x1x2x128xf32>, vector<2x2x2x128xf32>, vector<2x1x2x128xf32> -> vector<2x4x2x128xf32>
    %cst_3 = arith.constant 0.000000e+00 : f32
    %3 = vector.broadcast %cst_3 : f32 to vector<2x4x1x128xf32>
    %4 = tpu.concatenate %3, %2, %3 in 2 : vector<2x4x1x128xf32>, vector<2x4x2x128xf32>, vector<2x4x1x128xf32> -> vector<2x4x4x128xf32>
    %5 = vector.extract_strided_slice %4 {offsets = [0, 0, 0, 0], sizes = [2, 2, 2, 128], strides = [1, 1, 1, 1]} : vector<2x4x4x128xf32> to vector<2x2x2x128xf32>
    %6 = vector.extract_strided_slice %4 {offsets = [0, 0, 1, 0], sizes = [2, 2, 2, 128], strides = [1, 1, 1, 1]} : vector<2x4x4x128xf32> to vector<2x2x2x128xf32>
    %7 = vector.extract_strided_slice %4 {offsets = [0, 0, 2, 0], sizes = [2, 2, 2, 128], strides = [1, 1, 1, 1]} : vector<2x4x4x128xf32> to vector<2x2x2x128xf32>
    %8 = vector.extract_strided_slice %4 {offsets = [0, 1, 0, 0], sizes = [2, 2, 2, 128], strides = [1, 1, 1, 1]} : vector<2x4x4x128xf32> to vector<2x2x2x128xf32>
    %9 = vector.extract_strided_slice %4 {offsets = [0, 1, 1, 0], sizes = [2, 2, 2, 128], strides = [1, 1, 1, 1]} : vector<2x4x4x128xf32> to vector<2x2x2x128xf32>
    %10 = vector.extract_strided_slice %4 {offsets = [0, 1, 2, 0], sizes = [2, 2, 2, 128], strides = [1, 1, 1, 1]} : vector<2x4x4x128xf32> to vector<2x2x2x128xf32>
    %11 = vector.extract_strided_slice %4 {offsets = [0, 2, 0, 0], sizes = [2, 2, 2, 128], strides = [1, 1, 1, 1]} : vector<2x4x4x128xf32> to vector<2x2x2x128xf32>
    %12 = vector.extract_strided_slice %4 {offsets = [0, 2, 1, 0], sizes = [2, 2, 2, 128], strides = [1, 1, 1, 1]} : vector<2x4x4x128xf32> to vector<2x2x2x128xf32>
    %13 = vector.extract_strided_slice %4 {offsets = [0, 2, 2, 0], sizes = [2, 2, 2, 128], strides = [1, 1, 1, 1]} : vector<2x4x4x128xf32> to vector<2x2x2x128xf32>
    %14 = tpu.concatenate %5, %6, %7, %8, %9, %10, %11, %12, %13 in 3 : vector<2x2x2x128xf32>, vector<2x2x2x128xf32>, vector<2x2x2x128xf32>, vector<2x2x2x128xf32>, vector<2x2x2x128xf32>, vector<2x2x2x128xf32>, vector<2x2x2x128xf32>, vector<2x2x2x128xf32>, vector<2x2x2x128xf32> -> vector<2x2x2x1152xf32>
    %15 = vector.shape_cast %14 : vector<2x2x2x1152xf32> to vector<8x1152xf32>
    %16 = arith.truncf %15 : vector<8x1152xf32> to vector<8x1152xbf16>
    %c0_4 = arith.constant 0 : index
    %c0_5 = arith.constant 0 : index
    %17 = vector.load %arg1[%c0_4, %c0_5] : memref<1152x128xbf16, #tpu.memory_space<vmem>>, vector<1152x128xbf16>
    %cst_6 = arith.constant dense<0.000000e+00> : vector<8x128xf32>
    %18 = tpu.matmul %16, %17, %cst_6 {dimension_numbers = #tpu.dot_dimension_numbers<[1], [0], [0], [1], [0, 0, 1, 1], [], []>} : vector<8x1152xbf16>, vector<1152x128xbf16>, vector<8x128xf32> -> vector<8x128xf32>
    %c0_7 = arith.constant 0 : index
    %c0_8 = arith.constant 0 : index
    %19 = vector.load %arg2[%c0_7, %c0_8] : memref<1x128xf32, #tpu.memory_space<vmem>>, vector<1x128xf32>
    %20 = vector.broadcast %19 : vector<1x128xf32> to vector<8x128xf32>
    %21 = arith.mulf %18, %20 : vector<8x128xf32>
    %c0_9 = arith.constant 0 : index
    %c0_10 = arith.constant 0 : index
    %22 = vector.load %arg3[%c0_9, %c0_10] : memref<1x128xf32, #tpu.memory_space<vmem>>, vector<1x128xf32>
    %23 = vector.broadcast %22 : vector<1x128xf32> to vector<8x128xf32>
    %24 = arith.addf %21, %23 : vector<8x128xf32>
    %cst_11 = arith.constant 0.000000e+00 : f32
    %25 = vector.broadcast %cst_11 : f32 to vector<8x128xf32>
    %26 = arith.maximumf %24, %25 : vector<8x128xf32>
    %27 = vector.shape_cast %26 : vector<8x128xf32> to vector<2x2x2x128xf32>
    %cst_12 = arith.constant 0.000000e+00 : f32
    %28 = vector.broadcast %cst_12 : f32 to vector<2x1x2x128xf32>
    %29 = tpu.concatenate %28, %27, %28 in 1 : vector<2x1x2x128xf32>, vector<2x2x2x128xf32>, vector<2x1x2x128xf32> -> vector<2x4x2x128xf32>
    %cst_13 = arith.constant 0.000000e+00 : f32
    %30 = vector.broadcast %cst_13 : f32 to vector<2x4x1x128xf32>
    %31 = tpu.concatenate %30, %29, %30 in 2 : vector<2x4x1x128xf32>, vector<2x4x2x128xf32>, vector<2x4x1x128xf32> -> vector<2x4x4x128xf32>
    %32 = vector.extract_strided_slice %31 {offsets = [0, 0, 0, 0], sizes = [2, 2, 2, 128], strides = [1, 1, 1, 1]} : vector<2x4x4x128xf32> to vector<2x2x2x128xf32>
    %33 = vector.extract_strided_slice %31 {offsets = [0, 0, 1, 0], sizes = [2, 2, 2, 128], strides = [1, 1, 1, 1]} : vector<2x4x4x128xf32> to vector<2x2x2x128xf32>
    %34 = vector.extract_strided_slice %31 {offsets = [0, 0, 2, 0], sizes = [2, 2, 2, 128], strides = [1, 1, 1, 1]} : vector<2x4x4x128xf32> to vector<2x2x2x128xf32>
    %35 = vector.extract_strided_slice %31 {offsets = [0, 1, 0, 0], sizes = [2, 2, 2, 128], strides = [1, 1, 1, 1]} : vector<2x4x4x128xf32> to vector<2x2x2x128xf32>
    %36 = vector.extract_strided_slice %31 {offsets = [0, 1, 1, 0], sizes = [2, 2, 2, 128], strides = [1, 1, 1, 1]} : vector<2x4x4x128xf32> to vector<2x2x2x128xf32>
    %37 = vector.extract_strided_slice %31 {offsets = [0, 1, 2, 0], sizes = [2, 2, 2, 128], strides = [1, 1, 1, 1]} : vector<2x4x4x128xf32> to vector<2x2x2x128xf32>
    %38 = vector.extract_strided_slice %31 {offsets = [0, 2, 0, 0], sizes = [2, 2, 2, 128], strides = [1, 1, 1, 1]} : vector<2x4x4x128xf32> to vector<2x2x2x128xf32>
    %39 = vector.extract_strided_slice %31 {offsets = [0, 2, 1, 0], sizes = [2, 2, 2, 128], strides = [1, 1, 1, 1]} : vector<2x4x4x128xf32> to vector<2x2x2x128xf32>
    %40 = vector.extract_strided_slice %31 {offsets = [0, 2, 2, 0], sizes = [2, 2, 2, 128], strides = [1, 1, 1, 1]} : vector<2x4x4x128xf32> to vector<2x2x2x128xf32>
    %41 = tpu.concatenate %32, %33, %34, %35, %36, %37, %38, %39, %40 in 3 : vector<2x2x2x128xf32>, vector<2x2x2x128xf32>, vector<2x2x2x128xf32>, vector<2x2x2x128xf32>, vector<2x2x2x128xf32>, vector<2x2x2x128xf32>, vector<2x2x2x128xf32>, vector<2x2x2x128xf32>, vector<2x2x2x128xf32> -> vector<2x2x2x1152xf32>
    %42 = vector.shape_cast %41 : vector<2x2x2x1152xf32> to vector<8x1152xf32>
    %43 = arith.truncf %42 : vector<8x1152xf32> to vector<8x1152xbf16>
    %c0_14 = arith.constant 0 : index
    %c0_15 = arith.constant 0 : index
    %44 = vector.load %arg4[%c0_14, %c0_15] : memref<1152x128xbf16, #tpu.memory_space<vmem>>, vector<1152x128xbf16>
    %cst_16 = arith.constant dense<0.000000e+00> : vector<8x128xf32>
    %45 = tpu.matmul %43, %44, %cst_16 {dimension_numbers = #tpu.dot_dimension_numbers<[1], [0], [0], [1], [0, 0, 1, 1], [], []>} : vector<8x1152xbf16>, vector<1152x128xbf16>, vector<8x128xf32> -> vector<8x128xf32>
    %c0_17 = arith.constant 0 : index
    %c0_18 = arith.constant 0 : index
    %46 = vector.load %arg5[%c0_17, %c0_18] : memref<1x128xf32, #tpu.memory_space<vmem>>, vector<1x128xf32>
    %47 = vector.broadcast %46 : vector<1x128xf32> to vector<8x128xf32>
    %48 = arith.mulf %45, %47 : vector<8x128xf32>
    %c0_19 = arith.constant 0 : index
    %c0_20 = arith.constant 0 : index
    %49 = vector.load %arg6[%c0_19, %c0_20] : memref<1x128xf32, #tpu.memory_space<vmem>>, vector<1x128xf32>
    %50 = vector.broadcast %49 : vector<1x128xf32> to vector<8x128xf32>
    %51 = arith.addf %48, %50 : vector<8x128xf32>
    %52 = vector.shape_cast %0 : vector<2x2x2x128xf32> to vector<8x128xf32>
    %53 = arith.addf %51, %52 : vector<8x128xf32>
    %cst_21 = arith.constant 0.000000e+00 : f32
    %54 = vector.broadcast %cst_21 : f32 to vector<8x128xf32>
    %55 = arith.maximumf %53, %54 : vector<8x128xf32>
    %56 = arith.addf %55, %52 : vector<8x128xf32>
    %57 = vector.shape_cast %56 : vector<8x128xf32> to vector<2x2x2x128xf32>
    %c0_22 = arith.constant 0 : index
    %c0_23 = arith.constant 0 : index
    %c0_24 = arith.constant 0 : index
    %c0_25 = arith.constant 0 : index
    %58 = vector.load %arg7[%c0_22, %c0_23, %c0_24, %c0_25] : memref<2x2x2x128xf32, #tpu.memory_space<vmem>>, vector<2x2x2x128xf32>
    tpu.vector_store %arg7[%c0_22, %c0_23, %c0_24, %c0_25], %57 {strides = array<i32>} : memref<2x2x2x128xf32, #tpu.memory_space<vmem>>, vector<2x2x2x128xf32>,
    return
  }
}

</mosaic_0001>

<bundles_post_ra>
// kernel: mynet_forward.17
= control target key start
LH: loop header
LB: loop body
LE: loop exit
PB: predicated region body
PF: predicated region fallthrough
CT: control target
= control target key end

     0   :  { %vm207_vm0 = vcmask 1040384   ;;  %vm208_vm1 = vcmask 1041408   ;;  %v822_v2 = vmov 65535   ;;  %vm182_vm2 = vcmask 154624   ;;  %s1163_s1 = inlined_call_operand.vmem [shape: bf16[147,64], index: 1, kind: input, shape index: {}]   ;;  %s1164_s0 = inlined_call_operand.vmem [shape: bf16[128,147], index: 0, kind: input, shape index: {}]   ;;  %s1165_s2 = inlined_call_operand.vmem [shape: f32[1,64], index: 2, kind: input, shape index: {}]   ;;  %s1166_s3 = inlined_call_operand.vmem [shape: f32[1,64], index: 3, kind: input, shape index: {}]   ;;  %s1167_s4 = inlined_call_operand.vmem [shape: f32[2,4,4,64], index: 4, kind: output, shape index: {}]  }
   0x1   :  { %v806_v0 = vld [vmem:[%s1163_s1 + $0x38] sm:$0xff]  ;;  %v52_v1 = vld [vmem:[%s1163_s1 + $0x48] sm:$0x3]  ;;  %v209_v3 = vsel %vm207_vm0, 4294967295, %v822_v2  ;;  %v805_v5 = vld [vmem:[%s1163_s1 + $0x30] sm:$0xff]  ;;  %vm503_vm3 = vcmask 1042432  }
   0x2   :  { %v162_v4 = vunpack.c.l.b16 %v52_v1  ;;  %214 = vmatpush.bf16.msra.mxu0 %v806_v0  ;;  %808 = vmatpush.bf16.msra.mxu2 %v806_v0  ;;  %v210_v6 = vsel %vm208_vm1, %v209_v3, 0  ;;  %v804_v9 = vld [vmem:[%s1163_s1 + $0x28] sm:$0xff]  ;;  %v807_v10 = vld [vmem:[%s1163_s1 + $0x40] sm:$0xff]  ;;  %v793_v13 = vld [vmem:[%s1164_s0 + $0x54] sm:$0xf]  ;;  %vm662_vm4 = vcmask 519168  }
   0x3   :  { %v783_v11 = vld [vmem:[%s1164_s0 + $0x4] sm:$0xf]  ;;  %v679_v12 = vld [vmem:[%s1164_s0 + $0x8] sm:$0xf0]  ;;  %v719_v14 = vld [vmem:[%s1164_s0 + $0x58] sm:$0xf0] }
   0x4   :  { %v172_v7 = vpack.c.b16 %v162_v4, %v162_v4  ;;  %v682_v15 = vor.u32 %v783_v11, %v679_v12  ;;  %v803_v16 = vld [vmem:[%s1163_s1 + $0x20] sm:$0xff]  ;;  %v722_v17 = vor.u32 %v793_v13, %v719_v14  ;;  %v802_v18 = vld [vmem:[%s1163_s1 + $0x18] sm:$0xff]  ;;  %v801_v19 = vld [vmem:[%s1163_s1 + $0x10] sm:$0xff]  ;;  %v823_v14 = vmov 0.0  }
   0x5   :  { %v800_v20 = vld [vmem:[%s1163_s1 + $0x8] sm:$0xff]  ;;  %v785_v21 = vld [vmem:[%s1164_s0 + $0x14] sm:$0xf]  ;;  %v687_v22 = vld [vmem:[%s1164_s0 + $0x18] sm:$0xf0] }
   0x6   :  { %v212_v8 = vand.u32 %v210_v6, %v172_v7  ;;  %215 = vmatpush.bf16.msra.mxu0 %v805_v5  ;;  %809 = vmatpush.bf16.msra.mxu2 %v805_v5  ;;  %v795_v23 = vld [vmem:[%s1164_s0 + $0x64] sm:$0xf]  ;;  %v727_v24 = vld [vmem:[%s1164_s0 + $0x68] sm:$0xf0]  ;;  %v690_v25 = vor.u32 %v785_v21, %v687_v22  ;;  %v677_v27 = vld [vmem:[%s1164_s0] sm:$0xf] }
   0x7   :  { %v799_v26 = vld [vmem:[%s1163_s1] sm:$0xff]  ;;  %v784_v28 = vld [vmem:[%s1164_s0 + $0x4] sm:$0xf0]  ;;  %v730_v31 = vor.u32 %v795_v23, %v727_v24  ;;  %v695_v35 = vld [vmem:[%s1164_s0 + $0x28] sm:$0xf0] }
   0x8   :  { %269 = vmatpush.bf16.msra.mxu1 %v212_v8  ;;  %816 = vmatpush.bf16.msra.mxu3 %v212_v8  ;;  %v709_v29 = vld [vmem:[%s1164_s0 + $0x40] sm:$0xf]  ;;  %v792_v30 = vld [vmem:[%s1164_s0 + $0x44] sm:$0xf0]  ;;  %v678_v32 = vor.u32 %v784_v28, %v677_v27  ;;  %v787_v34 = vld [vmem:[%s1164_s0 + $0x24] sm:$0xf] }
   0x9   :  { %v710_v33 = vor.u32 %v792_v30, %v709_v29  ;;  %v797_v36 = vld [vmem:[%s1164_s0 + $0x74] sm:$0xf]  ;;  %v735_v37 = vld [vmem:[%s1164_s0 + $0x78] sm:$0xf0]  ;;  %v698_v38 = vor.u32 %v787_v34, %v695_v35  ;;  %v685_v39 = vld [vmem:[%s1164_s0 + $0x10] sm:$0xf] }
   0xa   :  { %216 = vmatpush.bf16.msra.mxu0 %v804_v9  ;;  %810 = vmatpush.bf16.msra.mxu2 %v804_v9  ;;  %v786_v40 = vld [vmem:[%s1164_s0 + $0x14] sm:$0xf0]  ;;  %v717_v41 = vld [vmem:[%s1164_s0 + $0x50] sm:$0xf]  ;;  %v738_v43 = vor.u32 %v797_v36, %v735_v37  ;;  %v789_v46 = vld [vmem:[%s1164_s0 + $0x34] sm:$0xf] }
   0xb   :  { %v794_v42 = vld [vmem:[%s1164_s0 + $0x54] sm:$0xf0]  ;;  %v686_v44 = vor.u32 %v786_v40, %v685_v39  ;;  %v703_v47 = vld [vmem:[%s1164_s0 + $0x38] sm:$0xf0]  ;;  %v693_v49 = vld [vmem:[%s1164_s0 + $0x20] sm:$0xf] }
   0xc   :  { %270 = vmatpush.bf16.msra.mxu1 %v807_v10  ;;  %817 = vmatpush.bf16.msra.mxu3 %v807_v10  ;;  %v718_v45 = vor.u32 %v794_v42, %v717_v41  ;;  %v706_v48 = vor.u32 %v789_v46, %v703_v47  ;;  %v788_v50 = vld [vmem:[%s1164_s0 + $0x24] sm:$0xf0]  ;;  %v725_v51 = vld [vmem:[%s1164_s0 + $0x60] sm:$0xf]  ;;  %v791_v55 = vld [vmem:[%s1164_s0 + $0x44] sm:$0xf] }
   0xd   :  { %v796_v52 = vld [vmem:[%s1164_s0 + $0x64] sm:$0xf0]  ;;  %v694_v53 = vor.u32 %v788_v50, %v693_v49  ;;  %v711_v56 = vld [vmem:[%s1164_s0 + $0x48] sm:$0xf0]  ;;  %v701_v58 = vld [vmem:[%s1164_s0 + $0x30] sm:$0xf] }
   0xe   :  { %217 = vmatpush.bf16.msra.mxu0 %v803_v16  ;;  %811 = vmatpush.bf16.msra.mxu2 %v803_v16  ;;  %v726_v54 = vor.u32 %v796_v52, %v725_v51  ;;  %v714_v57 = vor.u32 %v791_v55, %v711_v56  ;;  %v790_v59 = vld [vmem:[%s1164_s0 + $0x34] sm:$0xf0]  ;;  %v733_v60 = vld [vmem:[%s1164_s0 + $0x70] sm:$0xf]  ;;  %v988_v3 = vld [vmem:[%s1165_s2] ss:$0 sm:$0xff] }
   0xf   :  { %775 = vmatmul.msk.bf16.vlgmr.msra.gmra.mxu1 %vm182_vm2, %v682_v15  ;;  %780 = vmatmul.msk.bf16.vlgmr.msra.gmra.mxu3 %vm182_vm2, %v722_v17  ;;  %v798_v61 = vld [vmem:[%s1164_s0 + $0x74] sm:$0xf0]  ;;  %v702_v62 = vor.u32 %v790_v59, %v701_v58  ;;  %v993_v6 = vld [vmem:[%s1166_s3] ss:$0 sm:$0xff]  ;;  %v385_v15 = vrot.slane %v823_v14, 7 }
  0x10   :  { %v734_v63 = vor.u32 %v798_v61, %v733_v60 }
  0x11   :  { %v1006_v23 = vsel %vm207_vm0, %v385_v15, 0.0 }
  0x12   :  { %218 = vmatpush.bf16.msra.mxu0 %v802_v18  ;;  %812 = vmatpush.bf16.msra.mxu2 %v802_v18 }
  0x16   :  { %219 = vmatpush.bf16.msra.mxu0 %v801_v19  ;;  %813 = vmatpush.bf16.msra.mxu2 %v801_v19 }
  0x1a   :  { %220 = vmatpush.bf16.msra.mxu0 %v800_v20  ;;  %814 = vmatpush.bf16.msra.mxu2 %v800_v20  ;;  %v1002_v20 = vsel %vm207_vm0, 0.0, %v385_v15 }
  0x1e   :  { %221 = vmatpush.bf16.msra.mxu0 %v799_v26  ;;  %815 = vmatpush.bf16.msra.mxu2 %v799_v26 }
  0x1f   :  { %776 = vmatmul.msk.bf16.gmra.mxu1 %vm182_vm2, %v690_v25  ;;  %781 = vmatmul.msk.bf16.gmra.mxu3 %vm182_vm2, %v730_v31 }
  0x21   :  { %222 = vmatmul.bf16.vlgmr.msra.gmra.mxu0 %v678_v32  ;;  %242 = vmatmul.bf16.vlgmr.msra.gmra.mxu2 %v710_v33 }
  0x2f   :  { %777 = vmatmul.msk.bf16.gmra.mxu1 %vm182_vm2, %v698_v38  ;;  %782 = vmatmul.msk.bf16.gmra.mxu3 %vm182_vm2, %v738_v43 }
  0x31   :  { %227 = vmatmul.bf16.gmra.mxu0 %v686_v44  ;;  %247 = vmatmul.bf16.gmra.mxu2 %v718_v45 }
  0x3f   :  { %778 = vmatmul.msk.bf16.gmra.mxu1 %vm182_vm2, %v706_v48 }
  0x41   :  { %232 = vmatmul.bf16.gmra.mxu0 %v694_v53  ;;  %252 = vmatmul.bf16.gmra.mxu2 %v726_v54 }
  0x4f   :  { %779 = vmatmul.msk.bf16.gmra.mxu1 %vm182_vm2, %v714_v57 }
  0x51   :  { %237 = vmatmul.bf16.gmra.mxu0 %v702_v62  ;;  %257 = vmatmul.bf16.gmra.mxu2 %v734_v63 }
  0x8c   :  { %v272_v0 = vpop.f32.mrf.mxu1 }
  0x92   :  { %v297_v21 = vpop.f32.mrf.mxu3 }
  0x94   :  { %v274_v1 = vpop.f32.mrf.mxu1 }
  0x9a   :  { %v299_v45 = vpop.f32.mrf.mxu3 }
  0x9c   :  { %v277_v2 = vpop.f32.mrf.mxu1 }
  0x9e   :  { %v223_v4 = vpop.f32.mrf.mxu0 }
  0x9f   :  { %v273_v5 = vadd.f32 %v272_v0, %v223_v4 }
  0xa1   :  { %v316_v7 = vmul.f32 %v988_v3, %v273_v5 }
  0xa3   :  { %v336_v8 = vadd.f32 %v993_v6, %v316_v7 }
  0xa4   :  { %v279_v9 = vpop.f32.mrf.mxu1  ;;  %v997_v11 = vpop.f32.mrf.mxu2 }
  0xa5   :  { %v352_v10 = vmax.f32 %v336_v8, 0.0 }
  0xa6   :  { %v225_v12 = vpop.f32.mrf.mxu0 }
  0xa7   :  { %v275_v13 = vadd.f32 %v274_v1, %v225_v12  ;;  %v386_v16 = vrot.slane %v352_v10, 7 }
  0xa9   :  { %v317_v17 = vmul.f32 %v988_v3, %v275_v13  ;;  %v420_v22 = vsel %vm207_vm0, 0.0, %v386_v16  ;;  %v437_v24 = vsel %vm207_vm0, %v386_v16, 0.0 }
  0xaa   :  { %v453_v30 = vmax.f32 %v1002_v20, %v420_v22  ;;  %v454_v31 = vmax.f32 %v1006_v23, %v437_v24 }
  0xab   :  { %v337_v18 = vadd.f32 %v993_v6, %v317_v17 }
  0xac   :  { %v282_v19 = vpop.f32.mrf.mxu1  ;;  %v1009_v26 = vpop.f32.mrf.mxu2 }
  0xad   :  { %v353_v25 = vmax.f32 %v337_v18, 0.0 }
  0xae   :  { %v228_v27 = vpop.f32.mrf.mxu0 }
  0xaf   :  { %v387_v28 = vrot.slane %v353_v25, 7  ;;  %v278_v29 = vadd.f32 %v277_v2, %v228_v27 }
  0xb1   :  { %v421_v32 = vsel %vm207_vm0, 0.0, %v387_v28  ;;  %v438_v33 = vsel %vm207_vm0, %v387_v28, 0.0  ;;  %v318_v34 = vmul.f32 %v988_v3, %v278_v29 }
  0xb2   :  { %v457_v35 = vmax.f32 %v453_v30, %v421_v32  ;;  %v458_v36 = vmax.f32 %v454_v31, %v438_v33 }
  0xb3   :  { %v338_v37 = vadd.f32 %v993_v6, %v318_v34 }
  0xb4   :  { %v284_v38 = vpop.f32.mrf.mxu1  ;;  %v463_v39 = vrot.slane %v457_v35, 1  ;;  %v248_v41 = vpop.f32.mrf.mxu2  ;;  %v469_v43 = vrot.slane %v457_v35, 2  ;;  %v477_v44 = vrot.slane %v458_v36, 2 }
  0xb5   :  { %v354_v40 = vmax.f32 %v338_v37, 0.0  ;;  %v298_v58 = vadd.f32 %v297_v21, %v248_v41 }
  0xb6   :  { %v467_v42 = vmax.f32 %v457_v35, %v463_v39  ;;  %v230_v46 = vpop.f32.mrf.mxu0 }
  0xb7   :  { %v280_v47 = vadd.f32 %v279_v9, %v230_v46  ;;  %v388_v50 = vrot.slane %v354_v40, 7  ;;  %v302_v9 = vpop.f32.mrf.mxu3  ;;  %v326_v10 = vmul.f32 %v988_v3, %v298_v58 }
  0xb8   :  { %v473_v48 = vmax.f32 %v467_v42, %v469_v43  ;;  %v481_v49 = vmax.f32 %v467_v42, %v477_v44 }
  0xb9   :  { %v319_v51 = vmul.f32 %v988_v3, %v280_v47  ;;  %v422_v60 = vsel %vm207_vm0, 0.0, %v388_v50  ;;  %v439_v61 = vsel %vm207_vm0, %v388_v50, 0.0 }
  0xba   :  { %v485_v52 = vrot.slane %v473_v48, 1  ;;  %v489_v53 = vrot.slane %v473_v48, 2  ;;  %v495_v56 = vrot.slane %v481_v49, 3  ;;  %v506_v7 = vmax.f32 %v421_v32, %v422_v60 }
  0xbb   :  { %v339_v54 = vadd.f32 %v993_v6, %v319_v51  ;;  %v507_v8 = vmax.f32 %v438_v33, %v439_v61 }
  0xbc   :  { %v1019_v55 = vpop.f32.mrf.mxu1  ;;  %v499_v57 = vsel %vm207_vm0, %v473_v48, %v485_v52  ;;  %v250_v63 = vpop.f32.mrf.mxu2 }
  0xbd   :  { %v501_v59 = vsel %vm208_vm1, %v499_v57, %v489_v53  ;;  %v355_v62 = vmax.f32 %v339_v54, 0.0  ;;  %v300_v4 = vadd.f32 %v299_v45, %v250_v63 }
  0xbe   :  { %v504_v0 = vsel %vm503_vm3, %v501_v59, %v495_v56  ;;  %v233_v1 = vpop.f32.mrf.mxu0 }
  0xbf   :  { %663 = vst.msk [vmem:[%s1167_s4] sm:$0xf] %vm662_vm4, %v504_v0  ;;  %v389_v2 = vrot.slane %v355_v62, 7  ;;  %v283_v5 = vadd.f32 %v282_v19, %v233_v1  ;;  %v327_v17 = vmul.f32 %v988_v3, %v300_v4  ;;  %v346_v19 = vadd.f32 %v993_v6, %v326_v10  ;;  %v304_v43 = vpop.f32.mrf.mxu3 }
  0xc1   :  { %v423_v12 = vsel %vm207_vm0, 0.0, %v389_v2  ;;  %v440_v13 = vsel %vm207_vm0, %v389_v2, 0.0  ;;  %v320_v16 = vmul.f32 %v988_v3, %v283_v5  ;;  %v347_v31 = vadd.f32 %v993_v6, %v327_v17 }
  0xc2   :  { %v510_v14 = vmax.f32 %v506_v7, %v423_v12  ;;  %v511_v15 = vmax.f32 %v507_v8, %v440_v13  ;;  %v362_v40 = vmax.f32 %v346_v19, 0.0 }
  0xc3   :  { %v340_v22 = vadd.f32 %v993_v6, %v320_v16  ;;  %v363_v44 = vmax.f32 %v347_v31, 0.0 }
  0xc4   :  { %v1035_v18 = vpop.f32.mrf.mxu1  ;;  %v516_v21 = vrot.slane %v510_v14, 1  ;;  %v253_v24 = vpop.f32.mrf.mxu2  ;;  %v522_v27 = vrot.slane %v510_v14, 2  ;;  %v530_v28 = vrot.slane %v511_v15, 2  ;;  %v396_v57 = vrot.slane %v362_v40, 7 }
  0xc5   :  { %v303_v29 = vadd.f32 %v302_v9, %v253_v24  ;;  %v356_v32 = vmax.f32 %v340_v22, 0.0 }
  0xc6   :  { %v520_v25 = vmax.f32 %v510_v14, %v516_v21  ;;  %v235_v30 = vpop.f32.mrf.mxu0  ;;  %v1065_v9 = vsel %vm207_vm0, 0.0, %v396_v57 }
  0xc7   :  { %v285_v33 = vadd.f32 %v284_v38, %v235_v30  ;;  %v390_v36 = vrot.slane %v356_v32, 7  ;;  %v328_v37 = vmul.f32 %v988_v3, %v303_v29  ;;  %v307_v22 = vpop.f32.mrf.mxu3 }
  0xc8   :  { %v526_v34 = vmax.f32 %v520_v25, %v522_v27  ;;  %v534_v35 = vmax.f32 %v520_v25, %v530_v28 }
  0xc9   :  { %v321_v39 = vmul.f32 %v988_v3, %v285_v33  ;;  %v348_v45 = vadd.f32 %v993_v6, %v328_v37  ;;  %v424_v49 = vsel %vm207_vm0, 0.0, %v390_v36  ;;  %v441_v52 = vsel %vm207_vm0, %v390_v36, 0.0 }
  0xca   :  { %v538_v41 = vrot.slane %v526_v34, 1  ;;  %v542_v42 = vrot.slane %v526_v34, 2  ;;  %v548_v48 = vrot.slane %v534_v35, 3  ;;  %v558_v62 = vmax.f32 %v423_v12, %v424_v49 }
  0xcb   :  { %v341_v46 = vadd.f32 %v993_v6, %v321_v39  ;;  %v364_v53 = vmax.f32 %v348_v45, 0.0  ;;  %v559_v1 = vmax.f32 %v440_v13, %v441_v52 }
  0xcc   :  { %v292_v47 = vpop.f32.mrf.mxu1  ;;  %v552_v38 = vsel %vm207_vm0, %v526_v34, %v538_v41  ;;  %v255_v56 = vpop.f32.mrf.mxu2 }
  0xcd   :  { %v293_v50 = vadd.f32 %v292_v47, %v997_v11  ;;  %v554_v51 = vsel %vm208_vm1, %v552_v38, %v542_v42  ;;  %v357_v54 = vmax.f32 %v341_v46, 0.0  ;;  %v305_v60 = vadd.f32 %v304_v43, %v255_v56 }
  0xce   :  { %v556_v58 = vsel %vm503_vm3, %v554_v51, %v548_v48  ;;  %v238_v61 = vpop.f32.mrf.mxu0  ;;  %v397_v11 = vrot.slane %v363_v44, 7  ;;  %v398_v2 = vrot.slane %v364_v53, 7 }
  0xcf   :  { %v324_v59 = vmul.f32 %v988_v3, %v293_v50  ;;  %664 = vst.msk [vmem:[%s1167_s4 + $0x4] sm:$0xf] %vm662_vm4, %v556_v58  ;;  %v391_v63 = vrot.slane %v357_v54, 7  ;;  %v288_v0 = vadd.f32 %v1019_v55, %v238_v61  ;;  %v329_v5 = vmul.f32 %v988_v3, %v305_v60 }
  0xd0   :  { %v1070_v55 = vsel %vm207_vm0, %v396_v57, 0.0  ;;  %v1075_v17 = vsel %vm207_vm0, 0.0, %v397_v11  ;;  %v432_v21 = vsel %vm207_vm0, 0.0, %v398_v2  ;;  %v449_v25 = vsel %vm207_vm0, %v398_v2, 0.0  ;;  %v309_v2 = vpop.f32.mrf.mxu3 }
  0xd1   :  { %v344_v4 = vadd.f32 %v993_v6, %v324_v59  ;;  %v1059_v7 = vsel %vm207_vm0, 0.0, %v391_v63  ;;  %v1062_v8 = vsel %vm207_vm0, %v391_v63, 0.0  ;;  %v349_v14 = vadd.f32 %v993_v6, %v329_v5 }
  0xd2   :  { %v562_v10 = vmax.f32 %v558_v62, %v1059_v7  ;;  %v563_v12 = vmax.f32 %v559_v1, %v1062_v8  ;;  %v322_v15 = vmul.f32 %v988_v3, %v288_v0  ;;  %v448_v35 = vsel %vm207_vm0, %v397_v11, 0.0 }
  0xd3   :  { %v360_v13 = vmax.f32 %v344_v4, 0.0  ;;  %v365_v28 = vmax.f32 %v349_v14, 0.0  ;;  %v560_v36 = vmax.f32 %v1075_v17, %v432_v21  ;;  %v561_v40 = vmax.f32 %v448_v35, %v449_v25 }
  0xd4   :  { %v294_v16 = vpop.f32.mrf.mxu1  ;;  %v568_v19 = vrot.slane %v562_v10, 1  ;;  %v342_v29 = vadd.f32 %v993_v6, %v322_v15  ;;  %v258_v30 = vpop.f32.mrf.mxu2  ;;  %v574_v32 = vrot.slane %v562_v10, 2  ;;  %v582_v33 = vrot.slane %v563_v12, 2 }
  0xd5   :  { %v295_v24 = vadd.f32 %v294_v16, %v1009_v26  ;;  %v394_v27 = vrot.slane %v360_v13, 7  ;;  %v399_v37 = vrot.slane %v365_v28, 7  ;;  %v308_v49 = vadd.f32 %v307_v22, %v258_v30 }
  0xd6   :  { %v572_v31 = vmax.f32 %v562_v10, %v568_v19  ;;  %v358_v39 = vmax.f32 %v342_v29, 0.0  ;;  %v240_v54 = vpop.f32.mrf.mxu0 }
  0xd7   :  { %v325_v34 = vmul.f32 %v988_v3, %v295_v24  ;;  %v428_v42 = vsel %vm207_vm0, 0.0, %v394_v27  ;;  %v445_v43 = vsel %vm207_vm0, %v394_v27, 0.0  ;;  %v1087_v44 = vsel %vm207_vm0, 0.0, %v399_v37 }
  0xd8   :  { %v578_v26 = vmax.f32 %v572_v31, %v574_v32  ;;  %v586_v41 = vmax.f32 %v572_v31, %v582_v33  ;;  %v1090_v45 = vsel %vm207_vm0, %v399_v37, 0.0  ;;  %v564_v38 = vmax.f32 %v560_v36, %v1087_v44 }
  0xd9   :  { %v345_v46 = vadd.f32 %v993_v6, %v325_v34  ;;  %v455_v50 = vmax.f32 %v1002_v20, %v428_v42  ;;  %v565_v51 = vmax.f32 %v561_v40, %v1090_v45  ;;  %v392_v52 = vrot.slane %v358_v39, 7 }
  0xda   :  { %v590_v47 = vrot.slane %v578_v26, 1  ;;  %v594_v48 = vrot.slane %v578_v26, 2  ;;  %v600_v56 = vrot.slane %v586_v41, 3  ;;  %v456_v58 = vmax.f32 %v1006_v23, %v445_v43 }
  0xdb   :  { %v361_v53 = vmax.f32 %v345_v46, 0.0  ;;  %v569_v59 = vrot.slane %v564_v38, 1  ;;  %v575_v61 = vrot.slane %v564_v38, 2  ;;  %v583_v11 = vrot.slane %v565_v51, 2 }
  0xdc   :  { %v604_v57 = vsel %vm207_vm0, %v578_v26, %v590_v47  ;;  %v260_v63 = vpop.f32.mrf.mxu2  ;;  %v330_v1 = vmul.f32 %v988_v3, %v308_v49  ;;  %v290_v4 = vadd.f32 %v1035_v18, %v240_v54  ;;  %v426_v23 = vsel %vm207_vm0, 0.0, %v392_v52 }
  0xdd   :  { %v606_v60 = vsel %vm208_vm1, %v604_v57, %v594_v48  ;;  %v395_v62 = vrot.slane %v361_v53, 7  ;;  %v573_v20 = vmax.f32 %v564_v38, %v569_v59  ;;  %v310_v12 = vadd.f32 %v309_v2, %v260_v63 }
  0xde   :  { %v608_v0 = vsel %vm503_vm3, %v606_v60, %v600_v56  ;;  %v350_v19 = vadd.f32 %v993_v6, %v330_v1  ;;  %v323_v22 = vmul.f32 %v988_v3, %v290_v4  ;;  %v443_v37 = vsel %vm207_vm0, %v392_v52, 0.0 }
  0xdf   :  { %665 = vst.msk [vmem:[%s1167_s4 + $0x8] sm:$0xf] %vm662_vm4, %v608_v0  ;;  %v429_v5 = vsel %vm207_vm0, 0.0, %v395_v62  ;;  %v446_v10 = vsel %vm207_vm0, %v395_v62, 0.0  ;;  %v579_v13 = vmax.f32 %v573_v20, %v575_v61  ;;  %v587_v14 = vmax.f32 %v573_v20, %v583_v11 }
  0xe0   :  { %v459_v15 = vmax.f32 %v455_v50, %v429_v5  ;;  %v460_v16 = vmax.f32 %v456_v58, %v446_v10  ;;  %v508_v21 = vmax.f32 %v429_v5, %v1065_v9  ;;  %v509_v18 = vmax.f32 %v446_v10, %v1070_v55 }
  0xe1   :  { %v591_v24 = vrot.slane %v579_v13, 1  ;;  %v595_v25 = vrot.slane %v579_v13, 2  ;;  %v601_v27 = vrot.slane %v587_v14, 3  ;;  %v366_v36 = vmax.f32 %v350_v19, 0.0 }
  0xe2   :  { %v464_v28 = vrot.slane %v459_v15, 1  ;;  %v470_v29 = vrot.slane %v459_v15, 2  ;;  %v478_v30 = vrot.slane %v460_v16, 2  ;;  %v512_v31 = vmax.f32 %v508_v21, %v1075_v17 }
  0xe3   :  { %v513_v32 = vmax.f32 %v509_v18, %v448_v35  ;;  %v605_v33 = vsel %vm207_vm0, %v579_v13, %v591_v24  ;;  %v343_v9 = vadd.f32 %v993_v6, %v323_v22  ;;  %v400_v43 = vrot.slane %v366_v36, 7 }
  0xe4   :  { %v468_v34 = vmax.f32 %v459_v15, %v464_v28  ;;  %v607_v55 = vsel %vm208_vm1, %v605_v33, %v595_v25  ;;  %v517_v39 = vrot.slane %v512_v31, 1  ;;  %v523_v40 = vrot.slane %v512_v31, 2 }
  0xe5   :  { %v609_v26 = vsel %vm503_vm3, %v607_v55, %v601_v27  ;;  %v531_v35 = vrot.slane %v513_v32, 2  ;;  %v359_v46 = vmax.f32 %v343_v9, 0.0  ;;  %v331_v47 = vmul.f32 %v988_v3, %v310_v12 }
  0xe6   :  { %v474_v41 = vmax.f32 %v468_v34, %v470_v29  ;;  %v482_v42 = vmax.f32 %v468_v34, %v478_v30  ;;  %669 = vst.msk [vmem:[%s1167_s4 + $0x18] sm:$0xf] %vm662_vm4, %v609_v26  ;;  %v521_v17 = vmax.f32 %v512_v31, %v517_v39  ;;  %v610_v48 = vmax.f32 %v1059_v7, %v426_v23 }
  0xe7   :  { %v611_v50 = vmax.f32 %v1062_v8, %v443_v37  ;;  %v434_v56 = vsel %vm207_vm0, 0.0, %v400_v43  ;;  %v393_v57 = vrot.slane %v359_v46, 7  ;;  %v351_v58 = vadd.f32 %v993_v6, %v331_v47 }
  0xe8   :  { %v486_v38 = vrot.slane %v474_v41, 1  ;;  %v490_v49 = vrot.slane %v474_v41, 2  ;;  %v496_v51 = vrot.slane %v482_v42, 3  ;;  %v527_v52 = vmax.f32 %v521_v17, %v523_v40 }
  0xe9   :  { %v535_v53 = vmax.f32 %v521_v17, %v531_v35  ;;  %v451_v7 = vsel %vm207_vm0, %v400_v43, 0.0  ;;  %v427_v8 = vsel %vm207_vm0, 0.0, %v393_v57  ;;  %v444_v11 = vsel %vm207_vm0, %v393_v57, 0.0 }
  0xea   :  { %v500_v54 = vsel %vm207_vm0, %v474_v41, %v486_v38  ;;  %v539_v60 = vrot.slane %v527_v52, 1  ;;  %v543_v3 = vrot.slane %v527_v52, 2  ;;  %v367_v62 = vmax.f32 %v351_v58, 0.0 }
  0xeb   :  { %v502_v59 = vsel %vm208_vm1, %v500_v54, %v490_v49  ;;  %v549_v63 = vrot.slane %v535_v53, 3  ;;  %v614_v6 = vmax.f32 %v610_v48, %v427_v8  ;;  %v615_v20 = vmax.f32 %v611_v50, %v444_v11 }
  0xec   :  { %v505_v61 = vsel %vm503_vm3, %v502_v59, %v496_v51  ;;  %v553_v0 = vsel %vm207_vm0, %v527_v52, %v539_v60  ;;  %v401_v2 = vrot.slane %v367_v62, 7  ;;  %v612_v23 = vmax.f32 %v1087_v44, %v434_v56 }
  0xed   :  { %667 = vst.msk [vmem:[%s1167_s4 + $0x10] sm:$0xf] %vm662_vm4, %v505_v61  ;;  %v555_v1 = vsel %vm208_vm1, %v553_v0, %v543_v3  ;;  %v613_v5 = vmax.f32 %v1090_v45, %v451_v7  ;;  %v620_v10 = vrot.slane %v614_v6, 1  ;;  %v626_v12 = vrot.slane %v614_v6, 2 }
  0xee   :  { %v557_v4 = vsel %vm503_vm3, %v555_v1, %v549_v63  ;;  %v435_v13 = vsel %vm207_vm0, 0.0, %v401_v2  ;;  %v452_v14 = vsel %vm207_vm0, %v401_v2, 0.0  ;;  %v634_v16 = vrot.slane %v615_v20, 2 }
  0xef   :  { %668 = vst.msk [vmem:[%s1167_s4 + $0x14] sm:$0xf] %vm662_vm4, %v557_v4  ;;  %v624_v15 = vmax.f32 %v614_v6, %v620_v10  ;;  %v616_v21 = vmax.f32 %v612_v23, %v435_v13  ;;  %v617_v18 = vmax.f32 %v613_v5, %v452_v14 }
  0xf1   :  { %v630_v19 = vmax.f32 %v624_v15, %v626_v12  ;;  %v638_v22 = vmax.f32 %v624_v15, %v634_v16  ;;  %v621_v44 = vrot.slane %v616_v21, 1  ;;  %v627_v24 = vrot.slane %v616_v21, 2 }
  0xf2   :  { %v635_v28 = vrot.slane %v617_v18, 2 }
  0xf3   :  { %v642_v45 = vrot.slane %v630_v19, 1  ;;  %v646_v25 = vrot.slane %v630_v19, 2  ;;  %v625_v27 = vmax.f32 %v616_v21, %v621_v44  ;;  %v652_v29 = vrot.slane %v638_v22, 3 }
  0xf5   :  { %v656_v30 = vsel %vm207_vm0, %v630_v19, %v642_v45  ;;  %v631_v31 = vmax.f32 %v625_v27, %v627_v24  ;;  %v639_v32 = vmax.f32 %v625_v27, %v635_v28 }
  0xf6   :  { %v658_v33 = vsel %vm208_vm1, %v656_v30, %v646_v25 }
  0xf7   :  { %v660_v34 = vsel %vm503_vm3, %v658_v33, %v652_v29  ;;  %v643_v36 = vrot.slane %v631_v31, 1  ;;  %v647_v9 = vrot.slane %v631_v31, 2  ;;  %v653_v55 = vrot.slane %v639_v32, 3 }
  0xf8   :  { %666 = vst.msk [vmem:[%s1167_s4 + $0xc] sm:$0xf] %vm662_vm4, %v660_v34 }
  0xf9   :  { %v657_v37 = vsel %vm207_vm0, %v631_v31, %v643_v36 }
  0xfa   :  { %v659_v39 = vsel %vm208_vm1, %v657_v37, %v647_v9 }
  0xfb   :  { %v661_v40 = vsel %vm503_vm3, %v659_v39, %v653_v55 }
  0xfc   :  { %670 = vst.msk [vmem:[%s1167_s4 + $0x1c] sm:$0xf] %vm662_vm4, %v661_v40 }

// kernel: mynet_forward.20
= control target key start
LH: loop header
LB: loop body
LE: loop exit
PB: predicated region body
PF: predicated region fallthrough
CT: control target
= control target key end

     0   :  { %vm347_vm0 = vcmask 523264   ;;  %vm442_vm1 = vcmask 1040384   ;;  %vm448_vm2 = vcmask 1042432   ;;  %vm485_vm3 = vcmask 1041408   ;;  %s2400_s2 = inlined_call_operand.vmem [shape: bf16[576,128], index: 2, kind: input, shape index: {}]   ;;  %s2401_s0 = inlined_call_operand.vmem [shape: bf16[8,576], index: 0, kind: input, shape index: {}]   ;;  %s2402_s5 = inlined_call_operand.vmem [shape: bf16[1152,128], index: 5, kind: input, shape index: {}]   ;;  %s2403_s3 = inlined_call_operand.vmem [shape: f32[1,128], index: 3, kind: input, shape index: {}, may-alias: {3,6,9}]   ;;  %s2404_s4 = inlined_call_operand.vmem [shape: f32[1,128], index: 4, kind: input, shape index: {}, may-alias: {4,7,10}]   ;;  %s2405_s8 = inlined_call_operand.vmem [shape: bf16[64,128], index: 8, kind: input, shape index: {}]   ;;  %s2406_s1 = inlined_call_operand.vmem [shape: bf16[8,64], index: 1, kind: input, shape index: {}]   ;;  %s2407_s6 = inlined_call_operand.vmem [shape: f32[1,128], index: 6, kind: input, shape index: {}, may-alias: {3,6,9}]   ;;  %s2408_s7 = inlined_call_operand.vmem [shape: f32[1,128], index: 7, kind: input, shape index: {}, may-alias: {4,7,10}]   ;;  %s2409_s9 = inlined_call_operand.vmem [shape: f32[1,128], index: 9, kind: input, shape index: {}, may-alias: {3,6,9}]   ;;  %s2410_s10 = inlined_call_operand.vmem [shape: f32[1,128], index: 10, kind: input, shape index: {}, may-alias: {4,7,10}]   ;;  %s2411_s11 = inlined_call_operand.vmem [shape: f32[2,2,2,128], index: 11, kind: output, shape index: {}]  }
   0x1   :  { %v1795_v0 = vld [vmem:[%s2400_s2 + $0x38] sm:$0xff]  ;;  %v1794_v4 = vld [vmem:[%s2400_s2 + $0x30] sm:$0xff]  ;;  %v1793_v8 = vld [vmem:[%s2400_s2 + $0x28] sm:$0xff]  ;;  %vm487_vm4 = vcmask 1045508   ;;  %vm489_vm5 = vcmask 1043456  }
   0x2   :  { %v1803_v1 = vld [vmem:[%s2400_s2 + $0x78] sm:$0xff]  ;;  %351 = vmatpush.bf16.msra.mxu0 %v1795_v0  ;;  %v1802_v5 = vld [vmem:[%s2400_s2 + $0x70] sm:$0xff]  ;;  %v1801_v9 = vld [vmem:[%s2400_s2 + $0x68] sm:$0xff] }
   0x3   :  { %v1811_v2 = vld [vmem:[%s2400_s2 + $0xb8] sm:$0xff]  ;;  %364 = vmatpush.bf16.msra.mxu1 %v1803_v1  ;;  %v1810_v6 = vld [vmem:[%s2400_s2 + $0xb0] sm:$0xff]  ;;  %v1809_v10 = vld [vmem:[%s2400_s2 + $0xa8] sm:$0xff] }
   0x4   :  { %v1819_v3 = vld [vmem:[%s2400_s2 + $0xf8] sm:$0xff]  ;;  %377 = vmatpush.bf16.msra.mxu2 %v1811_v2  ;;  %v1818_v7 = vld [vmem:[%s2400_s2 + $0xf0] sm:$0xff]  ;;  %v1817_v11 = vld [vmem:[%s2400_s2 + $0xe8] sm:$0xff] }
   0x5   :  { %390 = vmatpush.bf16.msra.mxu3 %v1819_v3  ;;  %v1792_v12 = vld [vmem:[%s2400_s2 + $0x20] sm:$0xff]  ;;  %v1791_v16 = vld [vmem:[%s2400_s2 + $0x18] sm:$0xff]  ;;  %v1790_v20 = vld [vmem:[%s2400_s2 + $0x10] sm:$0xff] }
   0x6   :  { %352 = vmatpush.bf16.msra.mxu0 %v1794_v4  ;;  %v1800_v13 = vld [vmem:[%s2400_s2 + $0x60] sm:$0xff]  ;;  %v1799_v17 = vld [vmem:[%s2400_s2 + $0x58] sm:$0xff]  ;;  %v1798_v21 = vld [vmem:[%s2400_s2 + $0x50] sm:$0xff] }
   0x7   :  { %365 = vmatpush.bf16.msra.mxu1 %v1802_v5  ;;  %v1808_v14 = vld [vmem:[%s2400_s2 + $0xa0] sm:$0xff]  ;;  %v1807_v18 = vld [vmem:[%s2400_s2 + $0x98] sm:$0xff]  ;;  %v1806_v22 = vld [vmem:[%s2400_s2 + $0x90] sm:$0xff] }
   0x8   :  { %378 = vmatpush.bf16.msra.mxu2 %v1810_v6  ;;  %v1816_v15 = vld [vmem:[%s2400_s2 + $0xe0] sm:$0xff]  ;;  %v1815_v19 = vld [vmem:[%s2400_s2 + $0xd8] sm:$0xff]  ;;  %v1814_v23 = vld [vmem:[%s2400_s2 + $0xd0] sm:$0xff] }
   0x9   :  { %391 = vmatpush.bf16.msra.mxu3 %v1818_v7  ;;  %v1789_v24 = vld [vmem:[%s2400_s2 + $0x8] sm:$0xff]  ;;  %v39_v26 = vld [vmem:[%s2401_s0] sm:$0xff]  ;;  %v1823_v38 = vld [vmem:[%s2400_s2 + $0x118] sm:$0xff] }
   0xa   :  { %353 = vmatpush.bf16.msra.mxu0 %v1793_v8  ;;  %v1797_v25 = vld [vmem:[%s2400_s2 + $0x48] sm:$0xff]  ;;  %v117_v30 = vunpack.c.l.b16 %v39_v26  ;;  %v118_v31 = vunpack.c.h.b16 %v39_v26  ;;  %v1788_v32 = vld [vmem:[%s2400_s2] sm:$0xff]  ;;  %v1831_v39 = vld [vmem:[%s2402_s5 + $0x38] sm:$0xff] }
   0xb   :  { %366 = vmatpush.bf16.msra.mxu1 %v1801_v9  ;;  %v1805_v27 = vld [vmem:[%s2400_s2 + $0x88] sm:$0xff]  ;;  %v1796_v33 = vld [vmem:[%s2400_s2 + $0x40] sm:$0xff]  ;;  %v1822_v44 = vld [vmem:[%s2400_s2 + $0x110] sm:$0xff] }
   0xc   :  { %379 = vmatpush.bf16.msra.mxu2 %v1809_v10  ;;  %v1813_v28 = vld [vmem:[%s2400_s2 + $0xc8] sm:$0xff]  ;;  %v1804_v36 = vld [vmem:[%s2400_s2 + $0x80] sm:$0xff]  ;;  %v122_v40 = vpack.c.b16 %v117_v30, %v117_v30  ;;  %v123_v41 = vpack.c.b16 %v118_v31, %v118_v31  ;;  %v1830_v45 = vld [vmem:[%s2402_s5 + $0x30] sm:$0xff]  ;;  %v1907_v31 = vmov 0.0  }
   0xd   :  { %392 = vmatpush.bf16.msra.mxu3 %v1817_v11  ;;  %v40_v29 = vld [vmem:[%s2401_s0 + $0x8] sm:$0xff]  ;;  %v1812_v37 = vld [vmem:[%s2400_s2 + $0xc0] sm:$0xff]  ;;  %v41_v48 = vld [vmem:[%s2401_s0 + $0x10] sm:$0xf] }
   0xe   :  { %354 = vmatpush.bf16.msra.mxu0 %v1792_v12  ;;  %v119_v34 = vunpack.c.l.b16 %v40_v29  ;;  %v120_v35 = vunpack.c.h.b16 %v40_v29  ;;  %v1821_v46 = vld [vmem:[%s2400_s2 + $0x108] sm:$0xff]  ;;  %v1820_v49 = vld [vmem:[%s2400_s2 + $0x100] sm:$0xff]  ;;  %v121_v50 = vunpack.c.l.b16 %v41_v48  ;;  %v1839_v53 = vld [vmem:[%s2402_s5 + $0x78] sm:$0xff] }
   0xf   :  { %367 = vmatpush.bf16.msra.mxu1 %v1800_v13  ;;  %v1829_v47 = vld [vmem:[%s2402_s5 + $0x28] sm:$0xff]  ;;  %v1828_v52 = vld [vmem:[%s2402_s5 + $0x20] sm:$0xff]  ;;  %v1847_v54 = vld [vmem:[%s2402_s5 + $0xb8] sm:$0xff] }
  0x10   :  { %380 = vmatpush.bf16.msra.mxu2 %v1808_v14  ;;  %v124_v42 = vpack.c.b16 %v119_v34, %v119_v34  ;;  %v125_v43 = vpack.c.b16 %v120_v35, %v120_v35  ;;  %v126_v51 = vpack.c.b16 %v121_v50, %v121_v50  ;;  %v1855_v55 = vld [vmem:[%s2402_s5 + $0xf8] sm:$0xff]  ;;  %v1838_v57 = vld [vmem:[%s2402_s5 + $0x70] sm:$0xff]  ;;  %v1837_v61 = vld [vmem:[%s2402_s5 + $0x68] sm:$0xff] }
  0x11   :  { %393 = vmatpush.bf16.msra.mxu3 %v1816_v15  ;;  %v1827_v56 = vld [vmem:[%s2402_s5 + $0x18] sm:$0xff]  ;;  %v1846_v58 = vld [vmem:[%s2402_s5 + $0xb0] sm:$0xff]  ;;  %v1845_v62 = vld [vmem:[%s2402_s5 + $0xa8] sm:$0xff] }
  0x12   :  { %355 = vmatpush.bf16.msra.mxu0 %v1791_v16  ;;  %v1854_v59 = vld [vmem:[%s2402_s5 + $0xf0] sm:$0xff]  ;;  %v1853_v63 = vld [vmem:[%s2402_s5 + $0xe8] sm:$0xff]  ;;  %v1836_v1 = vld [vmem:[%s2402_s5 + $0x60] sm:$0xff] }
  0x13   :  { %368 = vmatpush.bf16.msra.mxu1 %v1799_v17  ;;  %v1826_v60 = vld [vmem:[%s2402_s5 + $0x10] sm:$0xff]  ;;  %v1825_v0 = vld [vmem:[%s2402_s5 + $0x8] sm:$0xff]  ;;  %v1844_v2 = vld [vmem:[%s2402_s5 + $0xa0] sm:$0xff] }
  0x14   :  { %381 = vmatpush.bf16.msra.mxu2 %v1807_v18  ;;  %v1852_v3 = vld [vmem:[%s2402_s5 + $0xe0] sm:$0xff]  ;;  %v1835_v5 = vld [vmem:[%s2402_s5 + $0x58] sm:$0xff]  ;;  %v1834_v9 = vld [vmem:[%s2402_s5 + $0x50] sm:$0xff] }
  0x15   :  { %394 = vmatpush.bf16.msra.mxu3 %v1815_v19  ;;  %v1824_v4 = vld [vmem:[%s2402_s5] sm:$0xff]  ;;  %v1843_v6 = vld [vmem:[%s2402_s5 + $0x98] sm:$0xff]  ;;  %v1842_v10 = vld [vmem:[%s2402_s5 + $0x90] sm:$0xff] }
  0x16   :  { %356 = vmatpush.bf16.msra.mxu0 %v1790_v20  ;;  %v1851_v7 = vld [vmem:[%s2402_s5 + $0xd8] sm:$0xff]  ;;  %v1850_v11 = vld [vmem:[%s2402_s5 + $0xd0] sm:$0xff]  ;;  %v1833_v13 = vld [vmem:[%s2402_s5 + $0x48] sm:$0xff] }
  0x17   :  { %369 = vmatpush.bf16.msra.mxu1 %v1798_v21  ;;  %v1863_v8 = vld [vmem:[%s2402_s5 + $0x138] sm:$0xff]  ;;  %v1862_v12 = vld [vmem:[%s2402_s5 + $0x130] sm:$0xff]  ;;  %v1841_v14 = vld [vmem:[%s2402_s5 + $0x88] sm:$0xff] }
  0x18   :  { %382 = vmatpush.bf16.msra.mxu2 %v1806_v22  ;;  %v1849_v15 = vld [vmem:[%s2402_s5 + $0xc8] sm:$0xff]  ;;  %v1832_v19 = vld [vmem:[%s2402_s5 + $0x40] sm:$0xff]  ;;  %v1878_v34 = vld [vmem:[%s2402_s5 + $0x1b0] sm:$0xff] }
  0x19   :  { %395 = vmatpush.bf16.msra.mxu3 %v1814_v23  ;;  %v1861_v18 = vld [vmem:[%s2402_s5 + $0x128] sm:$0xff]  ;;  %v1840_v20 = vld [vmem:[%s2402_s5 + $0x80] sm:$0xff]  ;;  %v1871_v23 = vld [vmem:[%s2402_s5 + $0x178] sm:$0xff] }
  0x1a   :  { %357 = vmatpush.bf16.msra.mxu0 %v1789_v24  ;;  %v1848_v21 = vld [vmem:[%s2402_s5 + $0xc0] sm:$0xff]  ;;  %v1879_v24 = vld [vmem:[%s2402_s5 + $0x1b8] sm:$0xff]  ;;  %v1886_v35 = vld [vmem:[%s2402_s5 + $0x1f0] sm:$0xff] }
  0x1b   :  { %370 = vmatpush.bf16.msra.mxu1 %v1797_v25  ;;  %v1860_v22 = vld [vmem:[%s2402_s5 + $0x120] sm:$0xff]  ;;  %v1887_v25 = vld [vmem:[%s2402_s5 + $0x1f8] sm:$0xff] }
  0x1c   :  { %383 = vmatpush.bf16.msra.mxu2 %v1805_v27  ;;  %v1876_v50 = vld [vmem:[%s2402_s5 + $0x1a0] sm:$0xff] }
  0x1d   :  { %396 = vmatpush.bf16.msra.mxu3 %v1813_v28  ;;  %v1859_v28 = vld [vmem:[%s2402_s5 + $0x118] sm:$0xff] }
  0x1e   :  { %358 = vmatpush.bf16.msra.mxu0 %v1788_v32  ;;  %v432_v32 = vrot.slane %v1907_v31, 7 }
  0x1f   :  { %371 = vmatpush.bf16.msra.mxu1 %v1796_v33  ;;  %v1870_v33 = vld [vmem:[%s2402_s5 + $0x170] sm:$0xff] }
  0x20   :  { %384 = vmatpush.bf16.msra.mxu2 %v1804_v36 }
  0x21   :  { %397 = vmatpush.bf16.msra.mxu3 %v1812_v37  ;;  %359 = vmatmul.bf16.vlgmr.msra.gmra.mxu0 %v122_v40  ;;  %v1877_v40 = vld [vmem:[%s2402_s5 + $0x1a8] sm:$0xff] }
  0x22   :  { %407 = vmatpush.bf16.msrb.mxu0 %v1823_v38  ;;  %372 = vmatmul.bf16.vlgmr.msra.gmra.mxu1 %v123_v41  ;;  %v1858_v38 = vld [vmem:[%s2402_s5 + $0x110] sm:$0xff]  ;;  %v443_v41 = vsel %vm442_vm1, 0.0, %v432_v32 }
  0x23   :  { %1132 = vmatpush.bf16.msrb.mxu1 %v1831_v39  ;;  %385 = vmatmul.bf16.vlgmr.msra.gmra.mxu2 %v124_v42  ;;  %v1869_v39 = vld [vmem:[%s2402_s5 + $0x168] sm:$0xff]  ;;  %v2235_v48 = vsel %vm448_vm2, %v443_v41, 0.0 }
  0x24   :  { %398 = vmatmul.bf16.vlgmr.msra.gmra.mxu3 %v125_v43  ;;  %1145 = vmatpush.bf16.msrb.mxu2 %v1839_v53  ;;  %v1885_v42 = vld [vmem:[%s2402_s5 + $0x1e8] sm:$0xff] }
  0x25   :  { %1158 = vmatpush.bf16.msrb.mxu3 %v1847_v54  ;;  %v1857_v43 = vld [vmem:[%s2402_s5 + $0x108] sm:$0xff]  ;;  %v1902_v54 = vld [vmem:[%s2404_s4] ss:$0 sm:$0xff] }
  0x26   :  { %408 = vmatpush.bf16.msrb.mxu0 %v1822_v44 }
  0x27   :  { %1133 = vmatpush.bf16.msrb.mxu1 %v1830_v45 }
  0x28   :  { %1146 = vmatpush.bf16.msrb.mxu2 %v1838_v57  ;;  %v1856_v57 = vld [vmem:[%s2402_s5 + $0x100] sm:$0xff] }
  0x29   :  { %1159 = vmatpush.bf16.msrb.mxu3 %v1846_v58  ;;  %v1867_v58 = vld [vmem:[%s2402_s5 + $0x158] sm:$0xff] }
  0x2a   :  { %409 = vmatpush.bf16.msrb.mxu0 %v1821_v46 }
  0x2b   :  { %1134 = vmatpush.bf16.msrb.mxu1 %v1829_v47  ;;  %v1901_v47 = vld [vmem:[%s2403_s3] ss:$0 sm:$0xff] }
  0x2c   :  { %1147 = vmatpush.bf16.msrb.mxu2 %v1837_v61  ;;  %v1883_v61 = vld [vmem:[%s2402_s5 + $0x1d8] sm:$0xff] }
  0x2d   :  { %1160 = vmatpush.bf16.msrb.mxu3 %v1845_v62 }
  0x2e   :  { %410 = vmatpush.bf16.msrb.mxu0 %v1820_v49  ;;  %v1868_v49 = vld [vmem:[%s2402_s5 + $0x160] sm:$0xff] }
  0x2f   :  { %1135 = vmatpush.bf16.msrb.mxu1 %v1828_v52  ;;  %v1884_v52 = vld [vmem:[%s2402_s5 + $0x1e0] sm:$0xff] }
  0x30   :  { %1148 = vmatpush.bf16.msrb.mxu2 %v1836_v1  ;;  %v1866_v1 = vld [vmem:[%s2402_s5 + $0x150] sm:$0xff] }
  0x31   :  { %1479 = vmatmul.msk.bf16.vlgmr.msrb.gmra.mxu0 %vm347_vm0, %v126_v51  ;;  %1161 = vmatpush.bf16.msrb.mxu3 %v1844_v2  ;;  %v1874_v2 = vld [vmem:[%s2402_s5 + $0x190] sm:$0xff] }
  0x32   :  { %1171 = vmatpush.bf16.msra.mxu0 %v1855_v55  ;;  %v457_v55 = vrot.slane %v2235_v48, 1 }
  0x33   :  { %1136 = vmatpush.bf16.msrb.mxu1 %v1827_v56 }
  0x34   :  { %1149 = vmatpush.bf16.msrb.mxu2 %v1835_v5 }
  0x35   :  { %1162 = vmatpush.bf16.msrb.mxu3 %v1843_v6  ;;  %v1882_v6 = vld [vmem:[%s2402_s5 + $0x1d0] sm:$0xff] }
  0x36   :  { %1172 = vmatpush.bf16.msra.mxu0 %v1854_v59  ;;  %v1875_v59 = vld [vmem:[%s2402_s5 + $0x198] sm:$0xff] }
  0x37   :  { %1137 = vmatpush.bf16.msrb.mxu1 %v1826_v60  ;;  %v2260_v60 = vrot.slane %v2235_v48, 2 }
  0x38   :  { %1150 = vmatpush.bf16.msrb.mxu2 %v1834_v9 }
  0x39   :  { %1163 = vmatpush.bf16.msrb.mxu3 %v1842_v10 }
  0x3a   :  { %1173 = vmatpush.bf16.msra.mxu0 %v1853_v63  ;;  %v469_v63 = vrot.slane %v457_v55, 6 }
  0x3b   :  { %1138 = vmatpush.bf16.msrb.mxu1 %v1825_v0 }
  0x3c   :  { %1151 = vmatpush.bf16.msrb.mxu2 %v1833_v13 }
  0x3d   :  { %1164 = vmatpush.bf16.msrb.mxu3 %v1841_v14 }
  0x3e   :  { %1174 = vmatpush.bf16.msra.mxu0 %v1852_v3  ;;  %v470_v3 = vrot.slane %v2260_v60, 4 }
  0x3f   :  { %1139 = vmatpush.bf16.msrb.mxu1 %v1824_v4  ;;  %v477_v4 = vrot.slane %v2235_v48, 4 }
  0x40   :  { %1152 = vmatpush.bf16.msrb.mxu2 %v1832_v19 }
  0x41   :  { %1165 = vmatpush.bf16.msrb.mxu3 %v1840_v20 }
  0x42   :  { %1175 = vmatpush.bf16.msra.mxu0 %v1851_v7 }
  0x43   :  { %1184 = vmatpush.bf16.msra.mxu1 %v1863_v8 }
  0x44   :  { %1197 = vmatpush.bf16.msra.mxu2 %v1871_v23  ;;  %v1881_v23 = vld [vmem:[%s2402_s5 + $0x1c8] sm:$0xff] }
  0x45   :  { %1210 = vmatpush.bf16.msra.mxu3 %v1879_v24 }
  0x46   :  { %1176 = vmatpush.bf16.msra.mxu0 %v1850_v11  ;;  %v478_v11 = vrot.slane %v457_v55, 2 }
  0x47   :  { %1185 = vmatpush.bf16.msra.mxu1 %v1862_v12  ;;  %v486_v12 = vsel %vm485_vm3, %v2235_v48, %v469_v63 }
  0x48   :  { %1198 = vmatpush.bf16.msra.mxu2 %v1870_v33 }
  0x49   :  { %1211 = vmatpush.bf16.msra.mxu3 %v1878_v34 }
  0x4a   :  { %1177 = vmatpush.bf16.msra.mxu0 %v1849_v15 }
  0x4b   :  { %1186 = vmatpush.bf16.msra.mxu1 %v1861_v18  ;;  %v1873_v18 = vld [vmem:[%s2402_s5 + $0x188] sm:$0xff] }
  0x4c   :  { %1199 = vmatpush.bf16.msra.mxu2 %v1869_v39 }
  0x4d   :  { %1212 = vmatpush.bf16.msra.mxu3 %v1877_v40 }
  0x4e   :  { %1178 = vmatpush.bf16.msra.mxu0 %v1848_v21 }
  0x4f   :  { %1187 = vmatpush.bf16.msra.mxu1 %v1860_v22 }
  0x50   :  { %1200 = vmatpush.bf16.msra.mxu2 %v1868_v49  ;;  %v1872_v49 = vld [vmem:[%s2402_s5 + $0x180] sm:$0xff] }
  0x51   :  { %1213 = vmatpush.bf16.msra.mxu3 %v1876_v50  ;;  %v1880_v50 = vld [vmem:[%s2402_s5 + $0x1c0] sm:$0xff] }
  0x52   :  { %1223 = vmatpush.bf16.msrb.mxu0 %v1887_v25 }
  0x53   :  { %1188 = vmatpush.bf16.msra.mxu1 %v1859_v28 }
  0x54   :  { %1201 = vmatpush.bf16.msra.mxu2 %v1867_v58 }
  0x55   :  { %1214 = vmatpush.bf16.msra.mxu3 %v1875_v59 }
  0x56   :  { %1224 = vmatpush.bf16.msrb.mxu0 %v1886_v35  ;;  %v498_v35 = vsel %vm487_vm4, %v477_v4, %v478_v11 }
  0x57   :  { %1189 = vmatpush.bf16.msra.mxu1 %v1858_v38 }
  0x58   :  { %1202 = vmatpush.bf16.msra.mxu2 %v1866_v1 }
  0x59   :  { %1215 = vmatpush.bf16.msra.mxu3 %v1874_v2 }
  0x5a   :  { %1225 = vmatpush.bf16.msrb.mxu0 %v1885_v42 }
  0x5b   :  { %1190 = vmatpush.bf16.msra.mxu1 %v1857_v43 }
  0x5d   :  { %1216 = vmatpush.bf16.msra.mxu3 %v1873_v18  ;;  %v1892_v18 = vld [vmem:[%s2402_s5 + $0x220] sm:$0xff] }
  0x5e   :  { %1226 = vmatpush.bf16.msrb.mxu0 %v1884_v52 }
  0x5f   :  { %1191 = vmatpush.bf16.msra.mxu1 %v1856_v57 }
  0x61   :  { %1217 = vmatpush.bf16.msra.mxu3 %v1872_v49 }
  0x62   :  { %1227 = vmatpush.bf16.msrb.mxu0 %v1883_v61 }
  0x66   :  { %1228 = vmatpush.bf16.msrb.mxu0 %v1882_v6  ;;  %v1899_v6 = vld [vmem:[%s2405_s8 + $0x18] sm:$0xff] }
  0x6a   :  { %1229 = vmatpush.bf16.msrb.mxu0 %v1881_v23 }
  0x6e   :  { %1230 = vmatpush.bf16.msrb.mxu0 %v1880_v50 }
  0x9e   :  { %v360_v16 = vpop.f32.mrf.mxu0 }
  0x9f   :  { %v373_v17 = vpop.f32.mrf.mxu1 }
  0xa0   :  { %v374_v36 = vadd.f32 %v373_v17, %v360_v16  ;;  %v1865_v17 = vld [vmem:[%s2402_s5 + $0x148] sm:$0xff] }
  0xa1   :  { %1203 = vmatpush.bf16.msra.mxu2 %v1865_v17  ;;  %v1893_v17 = vld [vmem:[%s2402_s5 + $0x228] sm:$0xff] }
  0xa6   :  { %v386_v26 = vpop.f32.mrf.mxu2  ;;  %v362_v29 = vpop.f32.mrf.mxu0 }
  0xa7   :  { %v399_v27 = vpop.f32.mrf.mxu3  ;;  %v375_v30 = vpop.f32.mrf.mxu1  ;;  %v387_v37 = vadd.f32 %v386_v26, %v374_v36  ;;  %v1864_v36 = vld [vmem:[%s2402_s5 + $0x140] sm:$0xff] }
  0xa8   :  { %1204 = vmatpush.bf16.msra.mxu2 %v1864_v36 }
  0xa9   :  { %v400_v44 = vadd.f32 %v399_v27, %v387_v37 }
  0xae   :  { %v388_v45 = vpop.f32.mrf.mxu2  ;;  %v412_v51 = vpop.f32.mrf.mxu0 }
  0xaf   :  { %v401_v46 = vpop.f32.mrf.mxu3  ;;  %v413_v53 = vadd.f32 %v412_v51, %v400_v44 }
  0xb1   :  { %v420_v56 = vmul.f32 %v1901_v47, %v413_v53 }
  0xb3   :  { %v425_v62 = vadd.f32 %v1902_v54, %v420_v56 }
  0xb5   :  { %v426_v0 = vmax.f32 %v425_v62, 0.0 }
  0xb6   :  { %v414_v5 = vpop.f32.mrf.mxu0 }
  0xb7   :  { %v433_v7 = vrot.slane %v426_v0, 7  ;;  %v1480_v8 = vrot.slane %v426_v0, 9  ;;  %v1481_v9 = vrot.slane %v426_v0, 11  ;;  %v1482_v10 = vrot.slane %v426_v0, 13  ;;  %v1895_v5 = vld [vmem:[%s2402_s5 + $0x238] sm:$0xff] }
  0xb9   :  { %v444_v13 = vsel %vm442_vm1, 0.0, %v433_v7  ;;  %v445_v14 = vsel %vm442_vm1, 0.0, %v1480_v8  ;;  %v446_v15 = vsel %vm442_vm1, 0.0, %v1481_v9  ;;  %v447_v16 = vsel %vm442_vm1, 0.0, %v1482_v10 }
  0xba   :  { %v450_v19 = vsel %vm448_vm2, %v444_v13, 0.0  ;;  %v451_v20 = vsel %vm448_vm2, %v445_v14, 0.0  ;;  %v452_v21 = vsel %vm448_vm2, %v446_v15, 0.0  ;;  %v453_v22 = vsel %vm448_vm2, %v447_v16, 0.0  ;;  %v1894_v15 = vld [vmem:[%s2402_s5 + $0x230] sm:$0xff] }
  0xbb   :  { %v458_v24 = vrot.slane %v450_v19, 1  ;;  %v459_v25 = vrot.slane %v452_v21, 1  ;;  %v461_v26 = vrot.slane %v450_v19, 2  ;;  %v462_v27 = vrot.slane %v452_v21, 2  ;;  %v1898_v16 = vld [vmem:[%s2405_s8 + $0x10] sm:$0xff] }
  0xbc   :  { %v465_v28 = vrot.slane %v451_v20, 1  ;;  %v466_v29 = vrot.slane %v453_v22, 1  ;;  %v467_v30 = vrot.slane %v451_v20, 2  ;;  %v2295_v31 = vrot.slane %v453_v22, 2 }
  0xbd   :  { %v471_v32 = vrot.slane %v461_v26, 6  ;;  %v474_v33 = vrot.slane %v458_v24, 6  ;;  %v475_v34 = vrot.slane %v461_v26, 4  ;;  %v472_v37 = vrot.slane %v451_v20, 4 }
  0xbe   :  { %v473_v38 = vrot.slane %v465_v28, 2  ;;  %v476_v39 = vrot.slane %v467_v30, 6  ;;  %v479_v40 = vrot.slane %v462_v27, 6  ;;  %v481_v41 = vrot.slane %v466_v29, 2 }
  0xbf   :  { %v482_v42 = vrot.slane %v459_v25, 6  ;;  %v483_v43 = vrot.slane %v462_v27, 4  ;;  %v484_v44 = vrot.slane %v2295_v31, 6  ;;  %v488_v45 = vsel %vm487_vm4, %v470_v3, %v461_v26  ;;  %v1891_v26 = vld [vmem:[%s2402_s5 + $0x218] sm:$0xff] }
  0xc0   :  { %v491_v46 = vsel %vm485_vm3, %v458_v24, %v471_v32  ;;  %v492_v47 = vsel %vm487_vm4, %v472_v37, %v473_v38  ;;  %v494_v48 = vsel %vm485_vm3, %v450_v19, %v474_v33  ;;  %v480_v51 = vrot.slane %v453_v22, 4  ;;  %v1896_v19 = vld [vmem:[%s2405_s8] sm:$0xff] }
  0xc1   :  { %v490_v52 = vsel %vm489_vm5, %v486_v12, %v488_v45  ;;  %v495_v53 = vsel %vm487_vm4, %v475_v34, %v467_v30  ;;  %v497_v54 = vsel %vm485_vm3, %v465_v28, %v476_v39  ;;  %v493_v55 = vsel %vm489_vm5, %v491_v46, %v492_v47  ;;  %v1259_v33 = vld [vmem:[%s2406_s1] sm:$0xf] }
  0xc2   :  { %v496_v56 = vsel %vm489_vm5, %v494_v48, %v495_v53  ;;  %v500_v57 = vsel %vm487_vm4, %v470_v3, %v462_v27  ;;  %v502_v58 = vsel %vm485_vm3, %v459_v25, %v479_v40  ;;  %510 = vst [vmem:[#allocation1] ss:$4 sm:$0xff] %v490_v52  ;;  %v503_v61 = vsel %vm487_vm4, %v480_v51, %v481_v41 }
  0xc3   :  { %v501_v59 = vsel %vm489_vm5, %v486_v12, %v500_v57  ;;  %v505_v62 = vsel %vm485_vm3, %v452_v21, %v482_v42  ;;  %v506_v63 = vsel %vm487_vm4, %v483_v43, %v2295_v31  ;;  %512 = vst [vmem:[#allocation1 + $0x1] ss:$4 sm:$0xff] %v496_v56  ;;  %v499_v0 = vsel %vm489_vm5, %v497_v54, %v498_v35 }
  0xc4   :  { %v507_v1 = vsel %vm489_vm5, %v505_v62, %v506_v63  ;;  %v508_v2 = vsel %vm485_vm3, %v466_v29, %v484_v44  ;;  %514 = vst [vmem:[#allocation1 + $0x2] ss:$4 sm:$0xff] %v501_v59  ;;  %v504_v3 = vsel %vm489_vm5, %v502_v58, %v503_v61  ;;  %v1890_v29 = vld [vmem:[%s2402_s5 + $0x210] sm:$0xff]  ;;  %v1903_v59 = vld [vmem:[%s2407_s6] ss:$0 sm:$0xff] }
  0xc5   :  { %516 = vst [vmem:[#allocation1 + $0x3] ss:$4 sm:$0xff] %v507_v1  ;;  %v509_v4 = vsel %vm489_vm5, %v508_v2, %v498_v35  ;;  %v1905_v62 = vld [vmem:[%s2409_s9] ss:$0 sm:$0xff] }
  0xc6   :  { %518 = vst [vmem:[#allocation1 + $0x20] ss:$4 sm:$0xff] %v493_v55  ;;  %v1906_v1 = vld [vmem:[%s2410_s10] ss:$0 sm:$0xff] }
  0xc7   :  { %520 = vst [vmem:[#allocation1 + $0x21] ss:$4 sm:$0xff] %v499_v0  ;;  %v1904_v0 = vld [vmem:[%s2408_s7] ss:$0 sm:$0xff] }
  0xc8   :  { %522 = vst [vmem:[#allocation1 + $0x22] ss:$4 sm:$0xff] %v504_v3 }
  0xc9   :  { %524 = vst [vmem:[#allocation1 + $0x23] ss:$4 sm:$0xff] %v509_v4 }
  0xcc   :  { %v525_v7 = vld.sshfl [vmem:[#allocation1] sm:$0xff pattern:$0x73625140]  ;;  %v526_v8 = vld.sshfl [vmem:[#allocation1 + $0x8] sm:$0xff pattern:$0x73625140] }
  0xcd   :  { %v547_v9 = vpack.c.bf16 %v525_v7, %v525_v7  ;;  %v548_v10 = vpack.c.bf16 %v526_v8, %v526_v8  ;;  %v527_v11 = vld.sshfl [vmem:[#allocation1 + $0x10] sm:$0xff pattern:$0x73625140]  ;;  %v528_v12 = vld.sshfl [vmem:[#allocation1 + $0x18] sm:$0xff pattern:$0x73625140] }
  0xce   :  { %v549_v13 = vpack.c.bf16 %v527_v11, %v527_v11  ;;  %533 = vst [vmem:[#allocation1] ss:$4 sm:$0xff] %v467_v30  ;;  %v550_v14 = vpack.c.bf16 %v528_v12, %v528_v12  ;;  %v1889_v30 = vld [vmem:[%s2402_s5 + $0x208] sm:$0xff] }
  0xcf   :  { %1140 = vmatmul.bf16.vlgmr.msrb.gmra.mxu1 %v547_v9  ;;  %1153 = vmatmul.bf16.vlgmr.msrb.gmra.mxu2 %v548_v10  ;;  %534 = vst [vmem:[#allocation1 + $0x1] ss:$4 sm:$0xff] %v2260_v60 }
  0xd0   :  { %1166 = vmatmul.bf16.vlgmr.msrb.gmra.mxu3 %v549_v13  ;;  %535 = vst [vmem:[#allocation1 + $0x2] ss:$4 sm:$0xff] %v2295_v31  ;;  %1179 = vmatmul.bf16.vlgmr.msra.gmra.mxu0 %v550_v14  ;;  %v529_v20 = vld.sshfl [vmem:[#allocation1 + $0x20] sm:$0xff pattern:$0x73625140] }
  0xd1   :  { %536 = vst [vmem:[#allocation1 + $0x3] ss:$4 sm:$0xff] %v2260_v60  ;;  %1236 = vmatpush.bf16.msrb.mxu1 %v1895_v5  ;;  %1299 = vmatpush.bf16.msrb.mxu2 %v1899_v6  ;;  %v1897_v60 = vld [vmem:[%s2405_s8 + $0x8] sm:$0xff]  ;;  %v531_v22 = vld.sshfl [vmem:[#allocation1 + $0x30] sm:$0xff pattern:$0x73625140]  ;;  %v551_v24 = vpack.c.bf16 %v529_v20, %v529_v20 }
  0xd2   :  { %v530_v21 = vld.sshfl [vmem:[#allocation1 + $0x28] sm:$0xff pattern:$0x73625140]  ;;  %v532_v23 = vld.sshfl [vmem:[#allocation1 + $0x38] sm:$0xff pattern:$0x73625140]  ;;  %v553_v27 = vpack.c.bf16 %v531_v22, %v531_v22 }
  0xd3   :  { %v552_v25 = vpack.c.bf16 %v530_v21, %v530_v21  ;;  %v554_v28 = vpack.c.bf16 %v532_v23, %v532_v23  ;;  %v1888_v31 = vld [vmem:[%s2402_s5 + $0x200] sm:$0xff] }
  0xd5   :  { %1237 = vmatpush.bf16.msrb.mxu1 %v1894_v15  ;;  %1300 = vmatpush.bf16.msrb.mxu2 %v1898_v16 }
  0xd8   :  { %v537_v32 = vld.sshfl [vmem:[#allocation1] sm:$0xff pattern:$0x73625140] }
  0xd9   :  { %1238 = vmatpush.bf16.msrb.mxu1 %v1893_v17  ;;  %1301 = vmatpush.bf16.msrb.mxu2 %v1897_v60  ;;  %v555_v34 = vpack.c.bf16 %v537_v32, %v537_v32 }
  0xdd   :  { %1239 = vmatpush.bf16.msrb.mxu1 %v1892_v18  ;;  %1302 = vmatpush.bf16.msrb.mxu2 %v1896_v19 }
  0xdf   :  { %1192 = vmatmul.bf16.vlgmr.msra.gmra.mxu1 %v551_v24  ;;  %1205 = vmatmul.bf16.vlgmr.msra.gmra.mxu2 %v552_v25 }
  0xe0   :  { %1218 = vmatmul.bf16.vlgmr.msra.gmra.mxu3 %v553_v27  ;;  %1231 = vmatmul.bf16.vlgmr.msrb.gmra.mxu0 %v554_v28 }
  0xe1   :  { %1240 = vmatpush.bf16.msrb.mxu1 %v1891_v26 }
  0xe5   :  { %1241 = vmatpush.bf16.msrb.mxu1 %v1890_v29 }
  0xe9   :  { %1242 = vmatpush.bf16.msrb.mxu1 %v1889_v30 }
  0xed   :  { %1243 = vmatpush.bf16.msrb.mxu1 %v1888_v31 }
  0xef   :  { %1787 = vmatmul.msk.bf16.vlgmr.msrb.gmra.mxu2 %vm347_vm0, %v1259_v33 }
  0xf0   :  { %1244 = vmatmul.bf16.vlgmr.msrb.gmra.mxu1 %v555_v34 }
 0x14c   :  { %v1141_v35 = vpop.f32.mrf.mxu1 }
 0x14d   :  { %v1180_v36 = vpop.f32.mrf.mxu0 }
 0x152   :  { %v1154_v37 = vpop.f32.mrf.mxu2 }
 0x153   :  { %v1167_v38 = vpop.f32.mrf.mxu3  ;;  %v1155_v41 = vadd.f32 %v1154_v37, %v1141_v35 }
 0x154   :  { %v1143_v39 = vpop.f32.mrf.mxu1 }
 0x155   :  { %v1182_v40 = vpop.f32.mrf.mxu0  ;;  %v1168_v44 = vadd.f32 %v1167_v38, %v1155_v41 }
 0x157   :  { %v1181_v47 = vadd.f32 %v1180_v36, %v1168_v44 }
 0x15a   :  { %v1156_v42 = vpop.f32.mrf.mxu2 }
 0x15b   :  { %v1169_v43 = vpop.f32.mrf.mxu3 }
 0x15c   :  { %v1193_v45 = vpop.f32.mrf.mxu1 }
 0x15d   :  { %v1232_v46 = vpop.f32.mrf.mxu0  ;;  %v1194_v48 = vadd.f32 %v1193_v45, %v1181_v47 }
 0x162   :  { %v1206_v49 = vpop.f32.mrf.mxu2 }
 0x163   :  { %v1219_v50 = vpop.f32.mrf.mxu3  ;;  %v1207_v51 = vadd.f32 %v1206_v49, %v1194_v48 }
 0x164   :  { %v1195_v52 = vpop.f32.mrf.mxu1 }
 0x165   :  { %v1234_v53 = vpop.f32.mrf.mxu0  ;;  %v1220_v54 = vadd.f32 %v1219_v50, %v1207_v51 }
 0x167   :  { %v1233_v57 = vadd.f32 %v1232_v46, %v1220_v54 }
 0x16a   :  { %v1208_v55 = vpop.f32.mrf.mxu2 }
 0x16b   :  { %v1221_v56 = vpop.f32.mrf.mxu3 }
 0x16d   :  { %v1245_v58 = vpop.f32.mrf.mxu1 }
 0x16e   :  { %v1246_v61 = vadd.f32 %v1245_v58, %v1233_v57 }
 0x170   :  { %v1253_v63 = vmul.f32 %v1903_v59, %v1246_v61 }
 0x172   :  { %v1304_v2 = vpop.f32.mrf.mxu2  ;;  %v1258_v4 = vadd.f32 %v1904_v0, %v1253_v63 }
 0x173   :  { %v1312_v3 = vmul.f32 %v1905_v62, %v1304_v2 }
 0x175   :  { %v1317_v5 = vadd.f32 %v1906_v1, %v1312_v3  ;;  %v1247_v6 = vpop.f32.mrf.mxu1 }
 0x177   :  { %v1318_v7 = vadd.f32 %v1317_v5, %v1258_v4 }
 0x179   :  { %v1319_v8 = vmax.f32 %v1318_v7, 0.0 }
 0x17a   :  { %v1306_v9 = vpop.f32.mrf.mxu2 }
 0x17b   :  { %v1321_v10 = vrot.slane %v1319_v8, 2  ;;  %v1322_v11 = vrot.slane %v1319_v8, 4  ;;  %v1323_v12 = vrot.slane %v1319_v8, 6  ;;  %1327 = vst [vmem:[%s2411_s11] sm:$0x3] %v1319_v8 }
 0x17d   :  { %1328 = vst [vmem:[%s2411_s11 + $0x2] sm:$0x3] %v1321_v10 }
 0x17e   :  { %1329 = vst [vmem:[%s2411_s11 + $0x4] sm:$0x3] %v1322_v11 }
 0x17f   :  { %1330 = vst [vmem:[%s2411_s11 + $0x6] sm:$0x3] %v1323_v12 }

// kernel: mynet_forward.22
= control target key start
LH: loop header
LB: loop body
LE: loop exit
PB: predicated region body
PF: predicated region fallthrough
CT: control target
= control target key end

     0   :  { %v599_v4 = vmov 4.0   ;;  %vm64_vm0 = vcmask 1043456   ;;  %vm94_vm2 = vcmask 1041409   ;;  %vm161_vm3 = vcmask 64512   ;;  %s806_s2 = inlined_call_operand.vmem [shape: bf16[128,8], index: 2, kind: input, shape index: {}]   ;;  %s807_s4 = inlined_call_operand.vmem [shape: bf16[128,8], index: 4, kind: input, shape index: {}]   ;;  %s808_s0 = inlined_call_operand.vmem [shape: f32[2,2,2,128], index: 0, kind: input, shape index: {}]   ;;  %s809_s1 = inlined_call_operand.vmem [shape: f32[2,2,2,128], index: 1, kind: input, shape index: {}]   ;;  %s810_s3 = inlined_call_operand.vmem [shape: bf16[8,128], index: 3, kind: input, shape index: {}]   ;;  %s811_s5 = inlined_call_operand.vmem [shape: bf16[8,128], index: 5, kind: input, shape index: {}]   ;;  %s812_s6 = inlined_call_operand.vmem [shape: f32[2,2,2,128], index: 6, kind: output, shape index: {}]  }
   0x1   :  { %v555_v0 = vld [vmem:[%s806_s2 + $0x38] sm:$0xff]  ;;  %v554_v2 = vld [vmem:[%s806_s2 + $0x30] sm:$0xff]  ;;  %565 = vrcp.f32 %v599_v4  ;;  %v650_v5 = vld [vmem:[%s808_s0] sm:$0x3] }
   0x2   :  { %v563_v1 = vld [vmem:[%s807_s4 + $0x38] sm:$0xff]  ;;  %146 = vmatpush.bf16.msra.mxu0 %v555_v0  ;;  %v562_v3 = vld [vmem:[%s807_s4 + $0x30] sm:$0xff]  ;;  %v553_v6 = vld [vmem:[%s806_s2 + $0x28] sm:$0xff]  ;;  %53 = vst [vmem:[#allocation1] ss:$4 sm:$0xff] %v650_v5 }
   0x3   :  { %315 = vmatpush.bf16.msra.mxu2 %v563_v1  ;;  %v561_v7 = vld [vmem:[%s807_s4 + $0x28] sm:$0xff]  ;;  %v661_v8 = vld [vmem:[%s808_s0 + $0x2] sm:$0x3]  ;;  %v666_v9 = vld [vmem:[%s808_s0 + $0x4] sm:$0x3] }
   0x4   :  { %v671_v11 = vld [vmem:[%s808_s0 + $0x6] sm:$0x3]  ;;  %55 = vst [vmem:[#allocation1 + $0x1] ss:$4 sm:$0xff] %v661_v8  ;;  %v551_v15 = vld [vmem:[%s806_s2 + $0x18] sm:$0xff]  ;;  %v550_v20 = vld [vmem:[%s806_s2 + $0x10] sm:$0xff] }
   0x5   :  { %v552_v12 = vld [vmem:[%s806_s2 + $0x20] sm:$0xff]  ;;  %58 = vst [vmem:[#allocation1 + $0x20] ss:$4 sm:$0xff] %v666_v9  ;;  %v559_v16 = vld [vmem:[%s807_s4 + $0x18] sm:$0xff]  ;;  %v558_v23 = vld [vmem:[%s807_s4 + $0x10] sm:$0xff] }
   0x6   :  { %147 = vmatpush.bf16.msra.mxu0 %v554_v2  ;;  %v560_v13 = vld [vmem:[%s807_s4 + $0x20] sm:$0xff]  ;;  %60 = vst [vmem:[#allocation1 + $0x21] ss:$4 sm:$0xff] %v671_v11  ;;  %v549_v32 = vld [vmem:[%s806_s2 + $0x8] sm:$0xff] }
   0x7   :  { %316 = vmatpush.bf16.msra.mxu2 %v562_v3  ;;  %v566_v10 = vpop.eup %565  ;;  %v692_v17 = vld [vmem:[%s809_s1] sm:$0x3]  ;;  %v697_v18 = vld [vmem:[%s809_s1 + $0x2] sm:$0x3]  ;;  %v705_v21 = vld [vmem:[%s809_s1 + $0x4] sm:$0x3] }
   0x8   :  { %v80_v14 = vmul.f32 4.0, %v566_v10  ;;  %v713_v24 = vld [vmem:[%s809_s1 + $0x6] sm:$0x3]  ;;  %v557_v33 = vld [vmem:[%s807_s4 + $0x8] sm:$0xff]  ;;  %vm84_vm1 = vweird.f32 %v566_v10 }
   0x9   :  { %v548_v40 = vld [vmem:[%s806_s2] sm:$0xff] }
   0xa   :  { %148 = vmatpush.bf16.msra.mxu0 %v553_v6  ;;  %v81_v19 = vsub.f32 1.0, %v80_v14  ;;  %v556_v41 = vld [vmem:[%s807_s4] sm:$0xff] }
   0xb   :  { %317 = vmatpush.bf16.msra.mxu2 %v561_v7  ;;  %v56_v22 = vld.sshfl [vmem:[#allocation1] sm:$0xff pattern:$0x73625140] }
   0xc   :  { %v65_v25 = vsel %vm64_vm0, %v56_v22, 0.0  ;;  %231 = vst [vmem:[#allocation1] ss:$4 sm:$0xff] %v692_v17  ;;  %v82_v29 = vmul.f32 %v566_v10, %v81_v19  ;;  %v48_v22 = vld [vmem:[%s810_s3] sm:$0xf] }
   0xd   :  { %v61_v26 = vld.sshfl [vmem:[#allocation1 + $0x20] sm:$0xff pattern:$0x73625140]  ;;  %v66_v27 = vrot.slane %v65_v25, 4  ;;  %233 = vst [vmem:[#allocation1 + $0x1] ss:$4 sm:$0xff] %v697_v18 }
   0xe   :  { %149 = vmatpush.bf16.msra.mxu0 %v552_v12  ;;  %v72_v28 = vsel %vm64_vm0, %v61_v26, 0.0  ;;  %236 = vst [vmem:[#allocation1 + $0x20] ss:$4 sm:$0xff] %v705_v21  ;;  %v83_v36 = vadd.f32 %v566_v10, %v82_v29 }
   0xf   :  { %318 = vmatpush.bf16.msra.mxu2 %v560_v13  ;;  %v67_v30 = vadd.f32 %v66_v27, %v65_v25  ;;  %v73_v31 = vrot.slane %v72_v28, 4  ;;  %238 = vst [vmem:[#allocation1 + $0x21] ss:$4 sm:$0xff] %v713_v24  ;;  %v226_v25 = vld [vmem:[%s811_s5] sm:$0xf] }
  0x10   :  { %v85_v45 = vsel %vm84_vm1, %v566_v10, %v83_v36  ;;  %v334_v26 = vsel %vm64_vm0, %v226_v25, 0 }
  0x11   :  { %v68_v34 = vrot.slane %v67_v30, 2  ;;  %v74_v35 = vadd.f32 %v73_v31, %v72_v28  ;;  %343 = vmatpush.bf16.msra.mxu3 %v334_v26 }
  0x12   :  { %150 = vmatpush.bf16.msra.mxu0 %v551_v15 }
  0x13   :  { %319 = vmatpush.bf16.msra.mxu2 %v559_v16  ;;  %v69_v37 = vadd.f32 %v68_v34, %v67_v30  ;;  %v75_v38 = vrot.slane %v74_v35, 2 }
  0x14   :  { %v234_v39 = vld.sshfl [vmem:[#allocation1] sm:$0xff pattern:$0x73625140] }
  0x15   :  { %v70_v42 = vrot.slane %v69_v37, 1  ;;  %v76_v43 = vadd.f32 %v75_v38, %v74_v35  ;;  %v242_v44 = vsel %vm64_vm0, %v234_v39, 0.0 }
  0x16   :  { %151 = vmatpush.bf16.msra.mxu0 %v550_v20  ;;  %v239_v46 = vld.sshfl [vmem:[#allocation1 + $0x20] sm:$0xff pattern:$0x73625140]  ;;  %v243_v47 = vrot.slane %v242_v44, 4 }
  0x17   :  { %320 = vmatpush.bf16.msra.mxu2 %v558_v23  ;;  %v71_v48 = vadd.f32 %v70_v42, %v69_v37  ;;  %v77_v49 = vrot.slane %v76_v43, 1  ;;  %v249_v50 = vsel %vm64_vm0, %v239_v46, 0.0  ;;  %v166_v23 = vsel %vm64_vm0, %v48_v22, 0 }
  0x18   :  { %v244_v51 = vadd.f32 %v243_v47, %v242_v44  ;;  %v250_v52 = vrot.slane %v249_v50, 4  ;;  %175 = vmatpush.bf16.msra.mxu1 %v166_v23 }
  0x19   :  { %v78_v53 = vadd.f32 %v77_v49, %v76_v43  ;;  %v86_v54 = vmul.f32 %v85_v45, %v71_v48 }
  0x1a   :  { %152 = vmatpush.bf16.msra.mxu0 %v549_v32  ;;  %v245_v55 = vrot.slane %v244_v51, 2  ;;  %v251_v56 = vadd.f32 %v250_v52, %v249_v50 }
  0x1b   :  { %321 = vmatpush.bf16.msra.mxu2 %v557_v33  ;;  %v87_v57 = vmul.f32 %v85_v45, %v78_v53  ;;  %v88_v58 = vpack.c.bf16 %v86_v54, %v86_v54 }
  0x1c   :  { %v246_v59 = vadd.f32 %v245_v55, %v244_v51  ;;  %v252_v60 = vrot.slane %v251_v56, 2 }
  0x1d   :  { %v89_v61 = vpack.c.bf16 %v87_v57, %v87_v57  ;;  %v92_v62 = vunpack.c.l.b16 %v88_v58 }
  0x1e   :  { %153 = vmatpush.bf16.msra.mxu0 %v548_v40  ;;  %v247_v63 = vrot.slane %v246_v59, 1  ;;  %v253_v0 = vadd.f32 %v252_v60, %v251_v56 }
  0x1f   :  { %322 = vmatpush.bf16.msra.mxu2 %v556_v41  ;;  %v93_v1 = vunpack.c.l.b16 %v89_v61 }
  0x20   :  { %v248_v2 = vadd.f32 %v247_v63, %v246_v59  ;;  %v254_v3 = vrot.slane %v253_v0, 1 }
  0x21   :  { %v95_v4 = vsel %vm94_vm2, %v93_v1, %v92_v62 }
  0x22   :  { %v96_v6 = vpack.c.b16 %v95_v4, %v95_v4  ;;  %v255_v7 = vadd.f32 %v254_v3, %v253_v0  ;;  %v256_v10 = vmul.f32 %v248_v2, %v85_v45 }
  0x24   :  { %154 = vmatmul.bf16.vlgmr.msra.gmra.mxu0 %v96_v6  ;;  %v257_v12 = vmul.f32 %v255_v7, %v85_v45  ;;  %v258_v13 = vpack.c.bf16 %v256_v10, %v256_v10 }
  0x26   :  { %v259_v14 = vpack.c.bf16 %v257_v12, %v257_v12  ;;  %v262_v15 = vunpack.c.l.b16 %v258_v13 }
  0x28   :  { %v263_v16 = vunpack.c.l.b16 %v259_v14 }
  0x2a   :  { %v264_v19 = vsel %vm94_vm2, %v263_v16, %v262_v15 }
  0x2b   :  { %v265_v20 = vpack.c.b16 %v264_v19, %v264_v19 }
  0x2d   :  { %323 = vmatmul.bf16.vlgmr.msra.gmra.mxu2 %v265_v20 }
  0xa1   :  { %v155_v27 = vpop.f32.mrf.mxu0 }
  0xa2   :  { %v159_v28 = vmax.f32 %v155_v27, 0.0 }
  0xa4   :  { %v160_v29 = vpack.c.bf16 %v159_v28, %v159_v28 }
  0xa6   :  { %514 = vmatmul.msk.bf16.vlgmr.msra.gmra.mxu1 %vm161_vm3, %v160_v29 }
  0xa9   :  { %v157_v30 = vpop.f32.mrf.mxu0 }
  0xb0   :  { %v324_v31 = vpop.f32.mrf.mxu2 }
  0xb1   :  { %v328_v32 = vmax.f32 %v324_v31, 0.0 }
  0xb3   :  { %v329_v33 = vpack.c.bf16 %v328_v32, %v328_v32 }
  0xb5   :  { %547 = vmatmul.msk.bf16.vlgmr.msra.gmra.mxu3 %vm161_vm3, %v329_v33 }
  0xb8   :  { %v326_v34 = vpop.f32.mrf.mxu2 }
 0x123   :  { %v177_v35 = vpop.f32.mrf.mxu1 }
 0x124   :  { %v181_v36 = vsub.f32 0.0, %v177_v35 }
 0x126   :  { %v182_v37 = vmul.f32 1.442695, %v181_v36 }
 0x128   :  { %567 = vpow2.f32 %v182_v37 }
 0x12b   :  { %v179_v38 = vpop.f32.mrf.mxu1 }
 0x12e   :  { %v568_v39 = vpop.eup %567 }
 0x12f   :  { %v184_v40 = vadd.f32 1.0, %v568_v39 }
 0x131   :  { %569 = vrcp.f32 %v184_v40  ;;  %vm190_vm4 = vweird.f32 %v184_v40  ;;  %v196_v49 = vand.u32 2147483648, %v184_v40  ;;  %v194_v52 = vand.u32 2147483647, %v184_v40 }
 0x133   :  { %v197_v54 = vor.u32 1.1754944e-38, %v196_v49  ;;  %vm195_vm7 = vcmp.eq.f32.partialorder %v194_v52, 8.507059e+37 }
 0x137   :  { %v570_v41 = vpop.eup %569 }
 0x138   :  { %v186_v42 = vmul.f32 %v570_v41, %v184_v40  ;;  %v345_v43 = vpop.f32.mrf.mxu3  ;;  %vm191_vm5 = vweird.f32 %v570_v41 }
 0x139   :  { %v349_v44 = vsub.f32 0.0, %v345_v43  ;;  %vm192_vm6 = vmor %vm190_vm4, %vm191_vm5 }
 0x13a   :  { %v187_v45 = vsub.f32 1.0, %v186_v42 }
 0x13b   :  { %v350_v46 = vmul.f32 1.442695, %v349_v44 }
 0x13c   :  { %v188_v47 = vmul.f32 %v570_v41, %v187_v45 }
 0x13d   :  { %571 = vpow2.f32 %v350_v46 }
 0x13e   :  { %v189_v51 = vadd.f32 %v570_v41, %v188_v47 }
 0x140   :  { %v347_v48 = vpop.f32.mrf.mxu3  ;;  %v193_v55 = vsel %vm192_vm6, %v570_v41, %v189_v51 }
 0x141   :  { %v198_v56 = vsel %vm195_vm7, %v197_v54, %v193_v55 }
 0x142   :  { %v201_v58 = vrot.slane %v198_v56, 1  ;;  %v202_v59 = vperm.slane %v198_v56, 0 }
 0x143   :  { %v572_v50 = vpop.eup %571 }
 0x144   :  { %v352_v53 = vadd.f32 1.0, %v572_v50  ;;  %v203_v62 = vperm.slane %v201_v58, 0  ;;  %v206_v0 = vmul.f32 %v202_v59, %v650_v5  ;;  %v207_v3 = vmul.f32 %v202_v59, %v661_v8 }
 0x146   :  { %573 = vrcp.f32 %v352_v53  ;;  %v364_v63 = vand.u32 2147483648, %v352_v53  ;;  %v362_v2 = vand.u32 2147483647, %v352_v53  ;;  %vm358_vm9 = vweird.f32 %v352_v53 }
 0x147   :  { %v208_v6 = vmul.f32 %v203_v62, %v666_v9  ;;  %v378_v10 = vmul.f32 1.442695, %v206_v0  ;;  %v380_v13 = vmul.f32 1.442695, %v207_v3  ;;  %v209_v19 = vmul.f32 %v203_v62, %v671_v11 }
 0x148   :  { %v365_v7 = vor.u32 1.1754944e-38, %v364_v63  ;;  %vm363_vm11 = vcmp.eq.f32.partialorder %v362_v2, 8.507059e+37 }
 0x149   :  { %v382_v20 = vmul.f32 1.442695, %v208_v6  ;;  %575 = vpow2.f32 %v378_v10  ;;  %v384_v30 = vmul.f32 1.442695, %v209_v19 }
 0x14a   :  { %577 = vpow2.f32 %v380_v13 }
 0x14b   :  { %579 = vpow2.f32 %v382_v20 }
 0x14c   :  { %v574_v57 = vpop.eup %573 }
 0x14d   :  { %v354_v60 = vmul.f32 %v574_v57, %v352_v53  ;;  %vm359_vm8 = vweird.f32 %v574_v57 }
 0x14e   :  { %vm360_vm10 = vmor %vm358_vm9, %vm359_vm8 }
 0x14f   :  { %v355_v61 = vsub.f32 1.0, %v354_v60  ;;  %v576_v33 = vpop.eup %575 }
 0x150   :  { %v578_v34 = vpop.eup %577  ;;  %v394_v48 = vmul.f32 %v576_v33, %v650_v5 }
 0x151   :  { %v356_v1 = vmul.f32 %v574_v57, %v355_v61  ;;  %v580_v35 = vpop.eup %579  ;;  %v395_v51 = vmul.f32 %v578_v34, %v661_v8 }
 0x152   :  { %v396_v52 = vmul.f32 %v580_v35, %v666_v9 }
 0x153   :  { %v357_v4 = vadd.f32 %v574_v57, %v356_v1 }
 0x155   :  { %v361_v12 = vsel %vm360_vm10, %v574_v57, %v357_v4 }
 0x156   :  { %v366_v14 = vsel %vm363_vm11, %v365_v7, %v361_v12 }
 0x157   :  { %v369_v15 = vrot.slane %v366_v14, 1  ;;  %v370_v16 = vperm.slane %v366_v14, 0 }
 0x159   :  { %v371_v22 = vperm.slane %v369_v15, 0  ;;  %v374_v23 = vmul.f32 %v370_v16, %v692_v17  ;;  %v375_v25 = vmul.f32 %v370_v16, %v697_v18 }
 0x15b   :  { %v376_v26 = vmul.f32 %v371_v22, %v705_v21  ;;  %v377_v27 = vmul.f32 %v371_v22, %v713_v24  ;;  %v386_v28 = vmul.f32 1.442695, %v374_v23  ;;  %v388_v29 = vmul.f32 1.442695, %v375_v25 }
 0x15d   :  { %581 = vpow2.f32 %v386_v28  ;;  %v390_v31 = vmul.f32 1.442695, %v376_v26  ;;  %v392_v32 = vmul.f32 1.442695, %v377_v27 }
 0x15e   :  { %583 = vpow2.f32 %v388_v29 }
 0x15f   :  { %585 = vpow2.f32 %v390_v31 }
 0x160   :  { %587 = vpow2.f32 %v392_v32 }
 0x161   :  { %589 = vpow2.f32 %v384_v30 }
 0x163   :  { %v582_v36 = vpop.eup %581 }
 0x164   :  { %v584_v37 = vpop.eup %583  ;;  %v406_v38 = vadd.f32 %v582_v36, %v576_v33  ;;  %v398_v45 = vmul.f32 %v582_v36, %v692_v17 }
 0x165   :  { %v586_v39 = vpop.eup %585  ;;  %v407_v40 = vadd.f32 %v584_v37, %v578_v34  ;;  %v399_v46 = vmul.f32 %v584_v37, %v697_v18 }
 0x166   :  { %v588_v41 = vpop.eup %587  ;;  %v753_v42 = vadd.f32 %v586_v39, %v580_v35  ;;  %591 = vrcp.f32 %v406_v38  ;;  %v400_v49 = vmul.f32 %v586_v39, %v705_v21  ;;  %v419_v50 = vand.u32 2147483647, %v406_v38 }
 0x167   :  { %v590_v43 = vpop.eup %589  ;;  %593 = vrcp.f32 %v407_v40  ;;  %v401_v55 = vmul.f32 %v588_v41, %v713_v24  ;;  %v402_v56 = vadd.f32 %v398_v45, %v394_v48  ;;  %v421_v18 = vand.u32 2147483648, %v406_v38 }
 0x168   :  { %v755_v44 = vadd.f32 %v590_v43, %v588_v41  ;;  %595 = vrcp.f32 %v753_v42  ;;  %v397_v53 = vmul.f32 %v590_v43, %v671_v11  ;;  %v434_v57 = vand.u32 2147483647, %v407_v40 }
 0x169   :  { %v403_v58 = vadd.f32 %v399_v46, %v395_v51  ;;  %vm415_vm12 = vweird.f32 %v406_v38  ;;  %v404_v60 = vadd.f32 %v400_v49, %v396_v52  ;;  %vm767_vm13 = vcmp.eq.f32.partialorder %v419_v50, 8.507059e+37 }
 0x16a   :  { %597 = vrcp.f32 %v755_v44  ;;  %vm430_vm14 = vweird.f32 %v407_v40  ;;  %v436_v8 = vand.u32 2147483648, %v407_v40  ;;  %v422_v63 = vor.u32 1.1754944e-38, %v421_v18 }
 0x16b   :  { %vm772_vm1 = vcmp.eq.f32.partialorder %v434_v57, 8.507059e+37  ;;  %vm445_vm2 = vweird.f32 %v753_v42  ;;  %v449_v7 = vand.u32 2147483647, %v753_v42  ;;  %v451_v10 = vand.u32 2147483648, %v753_v42 }
 0x16c   :  { %v592_v47 = vpop.eup %591  ;;  %v437_v6 = vor.u32 1.1754944e-38, %v436_v8  ;;  %v464_v19 = vand.u32 2147483647, %v755_v44  ;;  %v466_v20 = vand.u32 2147483648, %v755_v44  ;;  %vm460_vm9 = vweird.f32 %v755_v44 }
 0x16d   :  { %v411_v54 = vmul.f32 %v592_v47, %v406_v38  ;;  %v594_v17 = vpop.eup %593  ;;  %vm416_vm15 = vweird.f32 %v592_v47  ;;  %vm450_vm8 = vcmp.eq.f32.partialorder %v449_v7, 8.507059e+37  ;;  %v452_v28 = vor.u32 1.1754944e-38, %v451_v10 }
 0x16e   :  { %v426_v21 = vmul.f32 %v594_v17, %v407_v40  ;;  %v596_v59 = vpop.eup %595  ;;  %vm431_vm0 = vweird.f32 %v594_v17  ;;  %vm417_vm3 = vmor %vm415_vm12, %vm416_vm15  ;;  %v405_v33 = vadd.f32 %v401_v55, %v397_v53  ;;  %v467_v35 = vor.u32 1.1754944e-38, %v466_v20 }
 0x16f   :  { %v412_v5 = vsub.f32 1.0, %v411_v54  ;;  %v441_v24 = vmul.f32 %v596_v59, %v753_v42  ;;  %vm446_vm4 = vweird.f32 %v596_v59  ;;  %vm432_vm5 = vmor %vm430_vm14, %vm431_vm0  ;;  %vm465_vm11 = vcmp.eq.f32.partialorder %v464_v19, 8.507059e+37 }
 0x170   :  { %v427_v11 = vsub.f32 1.0, %v426_v21  ;;  %v598_v62 = vpop.eup %597  ;;  %vm447_vm7 = vmor %vm445_vm2, %vm446_vm4 }
 0x171   :  { %v413_v9 = vmul.f32 %v592_v47, %v412_v5  ;;  %v442_v3 = vsub.f32 1.0, %v441_v24  ;;  %v456_v4 = vmul.f32 %v598_v62, %v755_v44  ;;  %vm461_vm6 = vweird.f32 %v598_v62 }
 0x172   :  { %v428_v2 = vmul.f32 %v594_v17, %v427_v11  ;;  %vm462_vm10 = vmor %vm460_vm9, %vm461_vm6 }
 0x173   :  { %v414_v1 = vadd.f32 %v592_v47, %v413_v9  ;;  %v443_v14 = vmul.f32 %v596_v59, %v442_v3  ;;  %v457_v15 = vsub.f32 1.0, %v456_v4 }
 0x174   :  { %v429_v13 = vadd.f32 %v594_v17, %v428_v2 }
 0x175   :  { %v418_v12 = vsel %vm417_vm3, %v592_v47, %v414_v1  ;;  %v444_v25 = vadd.f32 %v596_v59, %v443_v14  ;;  %v458_v26 = vmul.f32 %v598_v62, %v457_v15 }
 0x176   :  { %v423_v16 = vsel %vm767_vm13, %v422_v63, %v418_v12  ;;  %v433_v23 = vsel %vm432_vm5, %v594_v17, %v429_v13 }
 0x177   :  { %v424_v22 = vmul.f32 %v423_v16, %v402_v56  ;;  %v438_v27 = vsel %vm772_vm1, %v437_v6, %v433_v23  ;;  %v448_v30 = vsel %vm447_vm7, %v596_v59, %v444_v25  ;;  %v459_v31 = vadd.f32 %v598_v62, %v458_v26 }
 0x178   :  { %v439_v29 = vmul.f32 %v438_v27, %v403_v58  ;;  %v453_v34 = vsel %vm450_vm8, %v452_v28, %v448_v30 }
 0x179   :  { %v470_v32 = vmax.f32 %v424_v22, 0.0  ;;  %v454_v36 = vmul.f32 %v453_v34, %v404_v60  ;;  %v463_v37 = vsel %vm462_vm10, %v598_v62, %v459_v31 }
 0x17a   :  { %v471_v38 = vmax.f32 %v439_v29, 0.0  ;;  %v468_v39 = vsel %vm465_vm11, %v467_v35, %v463_v37 }
 0x17b   :  { %474 = vst [vmem:[%s812_s6] sm:$0x3] %v470_v32  ;;  %v469_v40 = vmul.f32 %v468_v39, %v405_v33  ;;  %v472_v41 = vmax.f32 %v454_v36, 0.0 }
 0x17c   :  { %475 = vst [vmem:[%s812_s6 + $0x2] sm:$0x3] %v471_v38 }
 0x17d   :  { %v473_v42 = vmax.f32 %v469_v40, 0.0  ;;  %476 = vst [vmem:[%s812_s6 + $0x4] sm:$0x3] %v472_v41 }
 0x17f   :  { %477 = vst [vmem:[%s812_s6 + $0x6] sm:$0x3] %v473_v42 }

// kernel: mynet_forward.18
= control target key start
LH: loop header
LB: loop body
LE: loop exit
PB: predicated region body
PF: predicated region fallthrough
CT: control target
= control target key end

     0   :  { %vm62_vm0 = vcmask 1040384   ;;  %vm72_vm1 = vcmask 1044480   ;;  %s1928_s9 = smov 64   ;;  %v1929_v17 = vmov 0.0   ;;  %vm199_vm2 = vcmask 523264   ;;  %s2737_s0 = inlined_call_operand.vmem [shape: f32[2,4,4,64], index: 0, kind: input, shape index: {}]   ;;  %s2738_s1 = inlined_call_operand.vmem [shape: bf16[576,64], index: 1, kind: input, shape index: {}]   ;;  %s2739_s2 = inlined_call_operand.vmem [shape: f32[1,64], index: 2, kind: input, shape index: {}, may-alias: {2,5}]   ;;  %s2740_s3 = inlined_call_operand.vmem [shape: f32[1,64], index: 3, kind: input, shape index: {}, may-alias: {3,6}]   ;;  %s2741_s4 = inlined_call_operand.vmem [shape: bf16[576,64], index: 4, kind: input, shape index: {}]   ;;  %s2742_s5 = inlined_call_operand.vmem [shape: f32[1,64], index: 5, kind: input, shape index: {}, may-alias: {2,5}]   ;;  %s2743_s6 = inlined_call_operand.vmem [shape: f32[1,64], index: 6, kind: input, shape index: {}, may-alias: {3,6}]   ;;  %s2744_s7 = inlined_call_operand.vmem [shape: f32[2,4,4,64], index: 7, kind: output, shape index: {}]  }
   0x1   :  { %v1973_v0 = vld [vmem:[%s2737_s0] sm:$0xf]  ;;  %v1978_v1 = vld [vmem:[%s2737_s0 + $0x4] sm:$0xf]  ;;  %v1983_v2 = vld [vmem:[%s2737_s0 + $0x8] sm:$0xf] }
   0x2   :  { %v45_v3 = vrot.slane %v1973_v0, 7  ;;  %v46_v4 = vrot.slane %v1978_v1, 7  ;;  %v47_v5 = vrot.slane %v1983_v2, 7  ;;  %v1991_v6 = vld [vmem:[%s2737_s0 + $0xc] sm:$0xf]  ;;  %v44_v18 = vrot.slane %v1929_v17, 7 }
   0x3   :  { %v48_v10 = vrot.slane %v1991_v6, 7  ;;  %v2037_v23 = vld [vmem:[%s2737_s0 + $0x10] sm:$0xf]  ;;  %v2044_v26 = vld [vmem:[%s2737_s0 + $0x14] sm:$0xf]  ;;  %v1845_v53 = vld [vmem:[%s2738_s1 + $0x38] sm:$0xff] }
   0x4   :  { %v64_v7 = vsel %vm62_vm0, 0.0, %v45_v3  ;;  %v65_v8 = vsel %vm62_vm0, 0.0, %v46_v4  ;;  %v66_v9 = vsel %vm62_vm0, 0.0, %v47_v5  ;;  %v63_v21 = vsel %vm62_vm0, 0.0, %v44_v18  ;;  %v2064_v32 = vld [vmem:[%s2737_s0 + $0x1c] sm:$0xf]  ;;  %657 = vmatpush.bf16.msra.mxu0 %v1845_v53 }
   0x5   :  { %v1998_v11 = vsel %vm72_vm1, %v64_v7, 0.0  ;;  %v2001_v12 = vsel %vm72_vm1, %v65_v8, 0.0  ;;  %v2004_v13 = vsel %vm72_vm1, %v66_v9, 0.0  ;;  %v67_v16 = vsel %vm62_vm0, 0.0, %v48_v10  ;;  %v2073_v35 = vld [vmem:[%s2737_s0 + $0x18] sm:$0xf] }
   0x6   :  { %133 = vrot.lane.b32.xlu1 %v1998_v11, %s1928_s9  ;;  %v91_v14 = vrot.slane %v2001_v12, 1  ;;  %137 = vrot.lane.b32.xlu2 %v2004_v13, %s1928_s9  ;;  %v2012_v15 = vrot.slane %v2001_v12, 2  ;;  %v2020_v19 = vsel %vm72_vm1, %v67_v16, 0.0  ;;  %v92_v20 = vrot.slane %v2004_v13, 1  ;;  %v1853_v54 = vld [vmem:[%s2738_s1 + $0x78] sm:$0xff]  ;;  %v1844_v55 = vld [vmem:[%s2738_s1 + $0x30] sm:$0xff] }
   0x7   :  { %v2032_v22 = vsel %vm72_vm1, %v63_v21, 0.0  ;;  %v90_v24 = vrot.slane %v1998_v11, 1  ;;  %v118_v25 = vrot.slane %v1998_v11, 2  ;;  %v49_v28 = vrot.slane %v2037_v23, 7  ;;  %676 = vmatpush.bf16.msra.mxu1 %v1853_v54  ;;  %v1852_v56 = vld [vmem:[%s2738_s1 + $0x70] sm:$0xff]  ;;  %v1843_v57 = vld [vmem:[%s2738_s1 + $0x28] sm:$0xff] }
   0x8   :  { %100 = vrot.lane.b32.xlu0 %v91_v14, %s1928_s9  ;;  %290 = vst [vmem:[#allocation1 + $0x20] ss:$2 sm:$0xff] %v2012_v15  ;;  %v89_v27 = vrot.slane %v2032_v22, 1  ;;  %v50_v29 = vrot.slane %v2044_v26, 7  ;;  %v2056_v30 = vrot.slane %v2004_v13, 2  ;;  %v52_v36 = vrot.slane %v2064_v32, 7  ;;  %658 = vmatpush.bf16.msra.mxu0 %v1844_v55 }
   0x9   :  { %v68_v31 = vsel %vm62_vm0, 0.0, %v49_v28  ;;  %v51_v38 = vrot.slane %v2073_v35, 7  ;;  %v157_v45 = vrot.slane %v2020_v19, 1  ;;  %v167_v47 = vrot.slane %v2020_v19, 2  ;;  %v1851_v58 = vld [vmem:[%s2738_s1 + $0x68] sm:$0xff]  ;;  %v1842_v60 = vld [vmem:[%s2738_s1 + $0x20] sm:$0xff] }
   0xa   :  { %292 = vst [vmem:[#allocation1 + $0x21] ss:$2 sm:$0xff] %v2056_v30  ;;  %v69_v33 = vsel %vm62_vm0, 0.0, %v50_v29  ;;  %v2068_v34 = vsel %vm72_vm1, %v68_v31, 0.0  ;;  %v71_v39 = vsel %vm62_vm0, 0.0, %v52_v36  ;;  %v1850_v61 = vld [vmem:[%s2738_s1 + $0x60] sm:$0xff] }
   0xb   :  { %v2077_v37 = vsel %vm72_vm1, %v69_v33, 0.0  ;;  %v70_v40 = vsel %vm62_vm0, 0.0, %v51_v38  ;;  %v93_v41 = vrot.slane %v2068_v34, 1  ;;  %v2090_v42 = vsel %vm72_vm1, %v71_v39, 0.0  ;;  %677 = vmatpush.bf16.msra.mxu1 %v1852_v56  ;;  %v1841_v62 = vld [vmem:[%s2738_s1 + $0x18] sm:$0xff]  ;;  %v1840_v4 = vld [vmem:[%s2738_s1 + $0x10] sm:$0xff] }
   0xc   :  { %v2093_v43 = vsel %vm72_vm1, %v70_v40, 0.0  ;;  %v94_v46 = vrot.slane %v2077_v37, 1  ;;  %v158_v48 = vrot.slane %v2090_v42, 1  ;;  %v2125_v49 = vrot.slane %v2077_v37, 2  ;;  %659 = vmatpush.bf16.msra.mxu0 %v1843_v57  ;;  %v1849_v63 = vld [vmem:[%s2738_s1 + $0x58] sm:$0xff]  ;;  %v1848_v5 = vld [vmem:[%s2738_s1 + $0x50] sm:$0xff] }
   0xd   :  { %v95_v44 = vrot.slane %v2093_v43, 1  ;;  %v2128_v50 = vrot.slane %v2093_v43, 2  ;;  %v121_v51 = vrot.slane %v2068_v34, 2  ;;  %v168_v52 = vrot.slane %v2090_v42, 2  ;;  %v1839_v7 = vld [vmem:[%s2738_s1 + $0x8] sm:$0xff]  ;;  %v1838_v10 = vld [vmem:[%s2738_s1] sm:$0xff] }
   0xe   :  { %135 = vrot.lane.b32.xlu1 %v2001_v12, %s1928_s9  ;;  %139 = vrot.lane.b32.xlu2 %v2020_v19, %s1928_s9  ;;  %v1847_v8 = vld [vmem:[%s2738_s1 + $0x48] sm:$0xff]  ;;  %v1846_v16 = vld [vmem:[%s2738_s1 + $0x40] sm:$0xff]  ;;  %vm265_vm3 = vcmask 1043456   ;;  %vm1529_vm4 = vcmask 519168  }
   0xf   :  { %678 = vmatpush.bf16.msra.mxu1 %v1851_v58  ;;  %v1861_v18 = vld [vmem:[%s2738_s1 + $0xb8] sm:$0xff]  ;;  %v1860_v38 = vld [vmem:[%s2738_s1 + $0xb0] sm:$0xff]  ;;  %v1859_v55 = vld [vmem:[%s2738_s1 + $0xa8] sm:$0xff] }
  0x10   :  { %102 = vrot.lane.b32.xlu0 %v92_v20, %s1928_s9  ;;  %660 = vmatpush.bf16.msra.mxu0 %v1842_v60  ;;  %v1869_v21 = vld [vmem:[%s2738_s1 + $0xf8] sm:$0xff]  ;;  %v1868_v39 = vld [vmem:[%s2738_s1 + $0xf0] sm:$0xff]  ;;  %v1867_v56 = vld [vmem:[%s2738_s1 + $0xe8] sm:$0xff] }
  0x11   :  { %695 = vmatpush.bf16.msra.mxu2 %v1861_v18  ;;  %714 = vmatpush.bf16.msra.mxu3 %v1869_v21 }
  0x13   :  { %679 = vmatpush.bf16.msra.mxu1 %v1850_v61 }
  0x14   :  { %661 = vmatpush.bf16.msra.mxu0 %v1841_v62 }
  0x15   :  { %696 = vmatpush.bf16.msra.mxu2 %v1860_v38  ;;  %715 = vmatpush.bf16.msra.mxu3 %v1868_v39  ;;  %v1855_v39 = vld [vmem:[%s2738_s1 + $0x88] sm:$0xff] }
  0x16   :  { %98 = vrot.lane.b32.xlu1 %v90_v24, %s1928_s9  ;;  %169 = vrot.lane.b32.xlu2 %v118_v25, %s1928_s9 }
  0x17   :  { %680 = vmatpush.bf16.msra.mxu1 %v1849_v63  ;;  %v2224_v63 = vrot.slane %v2032_v22, 2 }
  0x18   :  { %96 = vrot.lane.b32.xlu0 %v89_v27, %s1928_s9  ;;  %662 = vmatpush.bf16.msra.mxu0 %v1840_v4 }
  0x19   :  { %697 = vmatpush.bf16.msra.mxu2 %v1859_v55  ;;  %716 = vmatpush.bf16.msra.mxu3 %v1867_v56 }
  0x1b   :  { %681 = vmatpush.bf16.msra.mxu1 %v1848_v5  ;;  %v1858_v5 = vld [vmem:[%s2738_s1 + $0xa0] sm:$0xff] }
  0x1c   :  { %663 = vmatpush.bf16.msra.mxu0 %v1839_v7  ;;  %v1866_v7 = vld [vmem:[%s2738_s1 + $0xe0] sm:$0xff] }
  0x1d   :  { %698 = vmatpush.bf16.msra.mxu2 %v1858_v5  ;;  %717 = vmatpush.bf16.msra.mxu3 %v1866_v7  ;;  %v1854_v5 = vld [vmem:[%s2738_s1 + $0x80] sm:$0xff] }
  0x1e   :  { %141 = vrot.lane.b32.xlu1 %v2068_v34, %s1928_s9  ;;  %143 = vrot.lane.b32.xlu2 %v2077_v37, %s1928_s9 }
  0x1f   :  { %682 = vmatpush.bf16.msra.mxu1 %v1847_v8 }
  0x20   :  { %171 = vrot.lane.b32.xlu0 %v2012_v15, %s1928_s9  ;;  %664 = vmatpush.bf16.msra.mxu0 %v1838_v10 }
  0x23   :  { %683 = vmatpush.bf16.msra.mxu1 %v1846_v16  ;;  %v1857_v16 = vld [vmem:[%s2738_s1 + $0x98] sm:$0xff] }
  0x24   :  { %699 = vmatpush.bf16.msra.mxu2 %v1857_v16 }
  0x26   :  { %147 = vrot.lane.b32.xlu1 %v2090_v42, %s1928_s9  ;;  %104 = vrot.lane.b32.xlu2 %v93_v41, %s1928_s9 }
  0x28   :  { %145 = vrot.lane.b32.xlu0 %v2093_v43, %s1928_s9 }
  0x2e   :  { %108 = vrot.lane.b32.xlu1 %v95_v44, %s1928_s9  ;;  %193 = vrot.lane.b32.xlu2 %v157_v45, %s1928_s9 }
  0x30   :  { %106 = vrot.lane.b32.xlu0 %v94_v46, %s1928_s9 }
  0x36   :  { %175 = vrot.lane.b32.xlu1 %v167_v47, %s1928_s9  ;;  %195 = vrot.lane.b32.xlu2 %v158_v48, %s1928_s9 }
  0x38   :  { %173 = vrot.lane.b32.xlu0 %v2056_v30, %s1928_s9 }
  0x3e   :  { %179 = vrot.lane.b32.xlu1 %v2125_v49, %s1928_s9  ;;  %181 = vrot.lane.b32.xlu2 %v2128_v50, %s1928_s9 }
  0x40   :  { %177 = vrot.lane.b32.xlu0 %v121_v51, %s1928_s9 }
  0x48   :  { %183 = vrot.lane.b32.xlu0 %v168_v52, %s1928_s9 }
  0x60   :  { %v138_v59 = vpop.permute.xlu2 %137 }
  0x61   :  { %v209_v17 = vsel %vm199_vm2, %v2012_v15, %v138_v59  ;;  %v2218_v59 = vld.sshfl [vmem:[#allocation1 + $0x20] sm:$0xff pattern:$0x75316420] }
  0x62   :  { %v254_v27 = vrot.slane %v209_v17, 4  ;;  %v1865_v17 = vld [vmem:[%s2738_s1 + $0xd8] sm:$0xff] }
  0x63   :  { %718 = vmatpush.bf16.msra.mxu3 %v1865_v17 }
  0x68   :  { %v140_v3 = vpop.permute.xlu2 %139 }
  0x69   :  { %v210_v54 = vsel %vm199_vm2, %v2056_v30, %v140_v3 }
  0x6a   :  { %v256_v57 = vrot.slane %v210_v54, 4 }
  0x70   :  { %v170_v9 = vpop.permute.xlu2 %169 }
  0x71   :  { %v215_v33 = vsel %vm199_vm2, %v90_v24, %v170_v9  ;;  %v1873_v9 = vld [vmem:[%s2738_s1 + $0x118] sm:$0xff] }
  0x72   :  { %737 = vmatpush.bf16.msrb.mxu0 %v1873_v9 }
  0x78   :  { %v134_v28 = vpop.permute.xlu1 %133  ;;  %v144_v29 = vpop.permute.xlu2 %143 }
  0x79   :  { %v212_v36 = vsel %vm199_vm2, %v121_v51, %v144_v29  ;;  %v207_v10 = vsel %vm199_vm2, %v2224_v63, %v134_v28 }
  0x7a   :  { %v101_v31 = vpop.permute.xlu0 %100  ;;  %v260_v51 = vrot.slane %v212_v36, 4 }
  0x7b   :  { %v202_v15 = vsel %vm199_vm2, %v2001_v12, %v101_v31  ;;  %v1862_v12 = vld [vmem:[%s2738_s1 + $0xc0] sm:$0xff] }
  0x7c   :  { %v251_v40 = vrot.slane %v202_v15, 4  ;;  %v270_v53 = vsel %vm265_vm3, %v202_v15, %v254_v27  ;;  %v250_v27 = vrot.slane %v207_v10, 4  ;;  %v1872_v15 = vld [vmem:[%s2738_s1 + $0x110] sm:$0xff] }
  0x7d   :  { %294 = vst [vmem:[#allocation1 + $0x30] ss:$2 sm:$0xff] %v270_v53  ;;  %738 = vmatpush.bf16.msrb.mxu0 %v1872_v15 }
  0x7e   :  { %v267_v24 = vsel %vm265_vm3, %v215_v33, %v251_v40  ;;  %v1863_v40 = vld [vmem:[%s2738_s1 + $0xc8] sm:$0xff] }
  0x7f   :  { %286 = vst [vmem:[#allocation1 + $0x10] ss:$2 sm:$0xff] %v267_v24 }
  0x80   :  { %v136_v58 = vpop.permute.xlu1 %135  ;;  %v105_v30 = vpop.permute.xlu2 %104 }
  0x81   :  { %v204_v60 = vsel %vm199_vm2, %v2068_v34, %v105_v30  ;;  %v208_v8 = vsel %vm199_vm2, %v118_v25, %v136_v58 }
  0x82   :  { %v103_v61 = vpop.permute.xlu0 %102  ;;  %v276_v62 = vsel %vm265_vm3, %v204_v60, %v260_v51  ;;  %v252_v18 = vrot.slane %v208_v8, 4 }
  0x83   :  { %v203_v3 = vsel %vm199_vm2, %v2004_v13, %v103_v61  ;;  %309 = vst [vmem:[#allocation1 + $0x21] ss:$2 sm:$0xff] %v276_v62 }
  0x84   :  { %v272_v4 = vsel %vm265_vm3, %v203_v3, %v256_v57  ;;  %v253_v54 = vrot.slane %v203_v3, 4 }
  0x85   :  { %296 = vst [vmem:[#allocation1 + $0x31] ss:$2 sm:$0xff] %v272_v4 }
  0x88   :  { %v99_v25 = vpop.permute.xlu1 %98  ;;  %v2261_v36 = vpop.permute.xlu2 %193 }
  0x89   :  { %v201_v21 = vsel %vm199_vm2, %v1998_v11, %v99_v25  ;;  %v1856_v11 = vld [vmem:[%s2738_s1 + $0x90] sm:$0xff] }
  0x8a   :  { %v268_v29 = vsel %vm265_vm3, %v201_v21, %v252_v18  ;;  %v97_v31 = vpop.permute.xlu0 %96  ;;  %700 = vmatpush.bf16.msra.mxu2 %v1856_v11 }
  0x8b   :  { %284 = vst [vmem:[#allocation1 + $0x1] ss:$2 sm:$0xff] %v268_v29  ;;  %v2254_v28 = vsel %vm199_vm2, %v2032_v22, %v97_v31  ;;  %v1864_v22 = vld [vmem:[%s2738_s1 + $0xd0] sm:$0xff] }
  0x8c   :  { %v266_v33 = vsel %vm265_vm3, %v2254_v28, %v250_v27  ;;  %719 = vmatpush.bf16.msra.mxu3 %v1864_v22  ;;  %v302_v55 = vld.sshfl [vmem:[#allocation1 + $0x30] sm:$0xff pattern:$0x75316420]  ;;  %v303_v56 = vld.sshfl [vmem:[#allocation1 + $0x38] sm:$0xff pattern:$0x75316420] }
  0x8d   :  { %282 = vst [vmem:[#allocation1] ss:$2 sm:$0xff] %v266_v33  ;;  %v1870_v27 = vld [vmem:[%s2738_s1 + $0x100] sm:$0xff] }
  0x8e   :  { %701 = vmatpush.bf16.msra.mxu2 %v1855_v39 }
  0x90   :  { %v142_v38 = vpop.permute.xlu1 %141  ;;  %720 = vmatpush.bf16.msra.mxu3 %v1863_v40  ;;  %v196_v62 = vpop.permute.xlu2 %195 }
  0x91   :  { %v211_v53 = vsel %vm199_vm2, %v2224_v63, %v142_v38  ;;  %v224_v9 = vsel %vm199_vm2, %v2090_v42, %v196_v62 }
  0x92   :  { %v258_v24 = vrot.slane %v211_v53, 4  ;;  %v172_v51 = vpop.permute.xlu0 %171  ;;  %702 = vmatpush.bf16.msra.mxu2 %v1854_v5  ;;  %v263_v25 = vrot.slane %v224_v9, 4 }
  0x93   :  { %v216_v57 = vsel %vm199_vm2, %v91_v14, %v172_v51  ;;  %v1871_v14 = vld [vmem:[%s2738_s1 + $0x108] sm:$0xff]  ;;  %v2318_v51 = vrot.slane %v2254_v28, 4 }
  0x94   :  { %v297_v58 = vld.sshfl [vmem:[#allocation1] sm:$0xff pattern:$0x75316420]  ;;  %v298_v30 = vld.sshfl [vmem:[#allocation1 + $0x8] sm:$0xff pattern:$0x75316420]  ;;  %v274_v60 = vsel %vm265_vm3, %v2254_v28, %v258_v24  ;;  %v269_v61 = vsel %vm265_vm3, %v216_v57, %v253_v54  ;;  %739 = vmatpush.bf16.msrb.mxu0 %v1871_v14  ;;  %721 = vmatpush.bf16.msra.mxu3 %v1862_v12  ;;  %v223_v24 = vsel %vm199_vm2, %v2020_v19, %v2261_v36 }
  0x95   :  { %288 = vst [vmem:[#allocation1 + $0x11] ss:$2 sm:$0xff] %v269_v61  ;;  %v353_v3 = vpack.c.bf16 %v302_v55, %v297_v58  ;;  %v354_v4 = vpack.c.bf16 %v303_v56, %v298_v30 }
  0x96   :  { %308 = vst [vmem:[#allocation1 + $0x20] ss:$2 sm:$0xff] %v274_v60 }
  0x97   :  { %665 = vmatmul.bf16.vlgmr.msra.gmra.mxu0 %v353_v3  ;;  %684 = vmatmul.bf16.vlgmr.msra.gmra.mxu1 %v354_v4 }
  0x98   :  { %v148_v7 = vpop.permute.xlu1 %147  ;;  %v182_v17 = vpop.permute.xlu2 %181  ;;  %740 = vmatpush.bf16.msrb.mxu0 %v1870_v27 }
  0x99   :  { %v221_v18 = vsel %vm199_vm2, %v95_v44, %v182_v17  ;;  %v214_v29 = vsel %vm199_vm2, %v2128_v50, %v148_v7 }
  0x9a   :  { %v146_v8 = vpop.permute.xlu0 %145  ;;  %v279_v33 = vsel %vm265_vm3, %v221_v18, %v263_v25  ;;  %v264_v38 = vrot.slane %v214_v29, 4 }
  0x9b   :  { %v213_v21 = vsel %vm199_vm2, %v2125_v49, %v146_v8 }
  0x9c   :  { %v299_v10 = vld.sshfl [vmem:[#allocation1 + $0x10] sm:$0xff pattern:$0x75316420]  ;;  %v300_v16 = vld.sshfl [vmem:[#allocation1 + $0x18] sm:$0xff pattern:$0x75316420] }
  0x9d   :  { %306 = vst [vmem:[#allocation1 + $0x10] ss:$2 sm:$0xff] %v167_v47  ;;  %v315_v15 = vld.sshfl [vmem:[#allocation1 + $0x20] sm:$0xff pattern:$0x75316420]  ;;  %v262_v44 = vrot.slane %v213_v21, 4 }
  0x9e   :  { %307 = vst [vmem:[#allocation1 + $0x11] ss:$2 sm:$0xff] %v2224_v63  ;;  %v316_v47 = vld.sshfl [vmem:[#allocation1 + $0x28] sm:$0xff pattern:$0x75316420] }
  0x9f   :  { %323 = vst [vmem:[#allocation1 + $0x20] ss:$2 sm:$0xff] %v279_v33 }
  0xa0   :  { %v109_v31 = vpop.permute.xlu1 %108 }
  0xa1   :  { %v206_v11 = vsel %vm199_vm2, %v2093_v43, %v109_v31  ;;  %v255_v43 = vrot.slane %v223_v24, 4 }
  0xa2   :  { %v107_v22 = vpop.permute.xlu0 %106  ;;  %v280_v54 = vsel %vm265_vm3, %v206_v11, %v264_v38  ;;  %v261_v4 = vrot.slane %v206_v11, 4  ;;  %v2353_v38 = vld [vmem:[%s2739_s2] ss:$0 sm:$0xff] }
  0xa3   :  { %v205_v39 = vsel %vm199_vm2, %v2077_v37, %v107_v22 }
  0xa4   :  { %v278_v40 = vsel %vm265_vm3, %v205_v39, %v262_v44  ;;  %v259_v5 = vrot.slane %v205_v39, 4 }
  0xa5   :  { %v314_v53 = vld.sshfl [vmem:[#allocation1 + $0x10] sm:$0xff pattern:$0x75316420] }
  0xa6   :  { %322 = vst [vmem:[#allocation1 + $0x11] ss:$2 sm:$0xff] %v280_v54 }
  0xa7   :  { %321 = vst [vmem:[#allocation1 + $0x10] ss:$2 sm:$0xff] %v278_v40 }
  0xa8   :  { %v176_v55 = vpop.permute.xlu1 %175 }
  0xa9   :  { %v218_v56 = vsel %vm199_vm2, %v157_v45, %v176_v55 }
  0xaa   :  { %v273_v57 = vsel %vm265_vm3, %v218_v56, %v2318_v51  ;;  %v174_v58 = vpop.permute.xlu0 %173 }
  0xab   :  { %305 = vst [vmem:[#allocation1 + $0x1] ss:$2 sm:$0xff] %v273_v57  ;;  %v217_v36 = vsel %vm199_vm2, %v92_v20, %v174_v58 }
  0xac   :  { %v271_v30 = vsel %vm265_vm3, %v217_v36, %v255_v43 }
  0xad   :  { %304 = vst [vmem:[#allocation1] ss:$2 sm:$0xff] %v271_v30 }
  0xae   :  { %v328_v60 = vld.sshfl [vmem:[#allocation1 + $0x10] sm:$0xff pattern:$0x75316420]  ;;  %v329_v61 = vld.sshfl [vmem:[#allocation1 + $0x18] sm:$0xff pattern:$0x75316420] }
  0xaf   :  { %v358_v62 = vpack.c.bf16 %v328_v60, %v315_v15  ;;  %v359_v3 = vpack.c.bf16 %v329_v61, %v316_v47 }
  0xb0   :  { %v180_v19 = vpop.permute.xlu1 %179 }
  0xb1   :  { %670 = vmatmul.bf16.gmra.mxu0 %v358_v62  ;;  %689 = vmatmul.bf16.gmra.mxu1 %v359_v3  ;;  %v220_v45 = vsel %vm199_vm2, %v94_v46, %v180_v19  ;;  %v357_v46 = vpack.c.bf16 %v314_v53, %v2218_v59  ;;  %v2358_v53 = vld [vmem:[%s2740_s3] ss:$0 sm:$0xff] }
  0xb2   :  { %v277_v13 = vsel %vm265_vm3, %v220_v45, %v261_v4  ;;  %v178_v12 = vpop.permute.xlu0 %177 }
  0xb3   :  { %311 = vst [vmem:[#allocation1 + $0x31] ss:$2 sm:$0xff] %v277_v13  ;;  %v219_v20 = vsel %vm199_vm2, %v93_v41, %v178_v12 }
  0xb4   :  { %v312_v14 = vld.sshfl [vmem:[#allocation1] sm:$0xff pattern:$0x75316420]  ;;  %v313_v7 = vld.sshfl [vmem:[#allocation1 + $0x8] sm:$0xff pattern:$0x75316420]  ;;  %v275_v8 = vsel %vm265_vm3, %v219_v20, %v259_v5 }
  0xb5   :  { %319 = vst [vmem:[#allocation1] ss:$2 sm:$0xff] %v2125_v49  ;;  %v355_v9 = vpack.c.bf16 %v312_v14, %v299_v10  ;;  %v356_v17 = vpack.c.bf16 %v313_v7, %v300_v16 }
  0xb6   :  { %320 = vst [vmem:[#allocation1 + $0x1] ss:$2 sm:$0xff] %v2128_v50 }
  0xb7   :  { %310 = vst [vmem:[#allocation1 + $0x30] ss:$2 sm:$0xff] %v275_v8  ;;  %703 = vmatmul.bf16.vlgmr.msra.gmra.mxu2 %v355_v9  ;;  %722 = vmatmul.bf16.vlgmr.msra.gmra.mxu3 %v356_v17 }
  0xba   :  { %v184_v37 = vpop.permute.xlu0 %183 }
  0xbb   :  { %v222_v34 = vsel %vm199_vm2, %v158_v48, %v184_v37 }
  0xbc   :  { %v281_v41 = vsel %vm265_vm3, %v222_v34, %v2318_v51 }
  0xbd   :  { %324 = vst [vmem:[#allocation1 + $0x21] ss:$2 sm:$0xff] %v281_v41  ;;  %v327_v48 = vld.sshfl [vmem:[#allocation1] sm:$0xff pattern:$0x75316420] }
  0xbe   :  { %v317_v18 = vld.sshfl [vmem:[#allocation1 + $0x30] sm:$0xff pattern:$0x75316420]  ;;  %v318_v49 = vld.sshfl [vmem:[#allocation1 + $0x38] sm:$0xff pattern:$0x75316420] }
  0xbf   :  { %325 = vst [vmem:[#allocation1 + $0x30] ss:$2 sm:$0xff] %v168_v52 }
  0xc0   :  { %326 = vst [vmem:[#allocation1 + $0x31] ss:$2 sm:$0xff] %v2224_v63 }
  0xc1   :  { %1686 = vmatmul.msk.bf16.vlgmr.msrb.gmra.mxu0 %vm199_vm2, %v357_v46 }
  0xc4   :  { %v330_v50 = vld.sshfl [vmem:[#allocation1 + $0x20] sm:$0xff pattern:$0x75316420]  ;;  %v331_v10 = vld.sshfl [vmem:[#allocation1 + $0x28] sm:$0xff pattern:$0x75316420] }
  0xc5   :  { %v360_v16 = vpack.c.bf16 %v330_v50, %v317_v18  ;;  %v361_v25 = vpack.c.bf16 %v331_v10, %v318_v49 }
  0xc7   :  { %708 = vmatmul.bf16.gmra.mxu2 %v360_v16  ;;  %727 = vmatmul.bf16.gmra.mxu3 %v361_v25  ;;  %v332_v21 = vld.sshfl [vmem:[#allocation1 + $0x30] sm:$0xff pattern:$0x75316420] }
  0xc8   :  { %v362_v27 = vpack.c.bf16 %v332_v21, %v327_v48 }
  0xd1   :  { %1687 = vmatmul.msk.bf16.gmra.mxu0 %vm199_vm2, %v362_v27 }
 0x114   :  { %v666_v59 = vpop.f32.mrf.mxu0  ;;  %v685_v42 = vpop.f32.mrf.mxu1 }
 0x115   :  { %v686_v15 = vadd.f32 %v685_v42, %v666_v59 }
 0x11c   :  { %v668_v29 = vpop.f32.mrf.mxu0  ;;  %v687_v44 = vpop.f32.mrf.mxu1 }
 0x11d   :  { %v688_v54 = vadd.f32 %v687_v44, %v668_v29 }
 0x12e   :  { %v671_v31 = vpop.f32.mrf.mxu0  ;;  %v690_v56 = vpop.f32.mrf.mxu1 }
 0x12f   :  { %v691_v4 = vadd.f32 %v690_v56, %v671_v31 }
 0x136   :  { %v673_v52 = vpop.f32.mrf.mxu0  ;;  %v692_v37 = vpop.f32.mrf.mxu1 }
 0x137   :  { %v693_v49 = vadd.f32 %v692_v37, %v673_v52 }
 0x13a   :  { %v704_v47 = vpop.f32.mrf.mxu2  ;;  %v723_v33 = vpop.f32.mrf.mxu3 }
 0x13b   :  { %v705_v11 = vadd.f32 %v704_v47, %v686_v15 }
 0x13d   :  { %v724_v22 = vadd.f32 %v723_v33, %v705_v11 }
 0x13e   :  { %v742_v39 = vpop.f32.mrf.mxu0 }
 0x13f   :  { %v743_v40 = vadd.f32 %v742_v39, %v724_v22 }
 0x141   :  { %v756_v24 = vmul.f32 %v2353_v38, %v743_v40 }
 0x142   :  { %v706_v43 = vpop.f32.mrf.mxu2  ;;  %v725_v55 = vpop.f32.mrf.mxu3 }
 0x143   :  { %v764_v57 = vadd.f32 %v2358_v53, %v756_v24  ;;  %v707_v58 = vadd.f32 %v706_v43, %v688_v54 }
 0x145   :  { %v768_v36 = vmax.f32 %v764_v57, 0.0  ;;  %v726_v30 = vadd.f32 %v725_v55, %v707_v58 }
 0x146   :  { %v744_v60 = vpop.f32.mrf.mxu0 }
 0x147   :  { %v745_v61 = vadd.f32 %v744_v60, %v726_v30  ;;  %v1688_v62 = vrot.slane %v768_v36, 11  ;;  %v780_v3 = vrot.slane %v768_v36, 7 }
 0x149   :  { %v757_v19 = vmul.f32 %v2353_v38, %v745_v61  ;;  %v797_v45 = vsel %vm62_vm0, 0.0, %v1688_v62  ;;  %v796_v5 = vsel %vm62_vm0, 0.0, %v780_v3 }
 0x14a   :  { %v709_v13 = vpop.f32.mrf.mxu2  ;;  %v2366_v12 = vsel %vm72_vm1, %v797_v45, 0.0  ;;  %v2369_v20 = vsel %vm72_vm1, %v796_v5, 0.0  ;;  %v728_v9 = vpop.f32.mrf.mxu3 }
 0x14b   :  { %v765_v14 = vadd.f32 %v2358_v53, %v757_v19  ;;  %v710_v7 = vadd.f32 %v709_v13, %v691_v4  ;;  %858 = vrot.lane.b32.xlu2 %v2366_v12, %s1928_s9  ;;  %856 = vrot.lane.b32.xlu1 %v2369_v20, %s1928_s9  ;;  %v818_v8 = vrot.slane %v2369_v20, 1  ;;  %v2378_v17 = vrot.slane %v2366_v12, 2 }
 0x14c   :  { %v819_v10 = vrot.slane %v2366_v12, 1  ;;  %v842_v16 = vrot.slane %v2369_v20, 2 }
 0x14d   :  { %v769_v34 = vmax.f32 %v765_v14, 0.0  ;;  %v729_v41 = vadd.f32 %v728_v9, %v710_v7  ;;  %824 = vrot.lane.b32.xlu0 %v818_v8, %s1928_s9  ;;  %1008 = vst [vmem:[#allocation1 + $0x20] ss:$2 sm:$0xff] %v2378_v17 }
 0x14e   :  { %v747_v46 = vpop.f32.mrf.mxu0 }
 0x14f   :  { %v782_v18 = vrot.slane %v769_v34, 7  ;;  %v748_v50 = vadd.f32 %v747_v46, %v729_v41  ;;  %v1689_v59 = vrot.slane %v769_v34, 11  ;;  %v1881_v34 = vld [vmem:[%s2741_s4 + $0x38] sm:$0xff]  ;;  %v1880_v46 = vld [vmem:[%s2741_s4 + $0x30] sm:$0xff] }
 0x150   :  { %v1889_v41 = vld [vmem:[%s2741_s4 + $0x78] sm:$0xff]  ;;  %1375 = vmatpush.bf16.msrb.mxu1 %v1881_v34  ;;  %v1874_v34 = vld [vmem:[%s2741_s4] sm:$0xff] }
 0x151   :  { %v798_v25 = vsel %vm62_vm0, 0.0, %v782_v18  ;;  %v758_v31 = vmul.f32 %v2353_v38, %v748_v50  ;;  %v799_v15 = vsel %vm62_vm0, 0.0, %v1689_v59  ;;  %1394 = vmatpush.bf16.msrb.mxu2 %v1889_v41  ;;  %v1888_v18 = vld [vmem:[%s2741_s4 + $0x70] sm:$0xff]  ;;  %v1905_v50 = vld [vmem:[%s2741_s4 + $0xf8] sm:$0xff]  ;;  %v1882_v41 = vld [vmem:[%s2741_s4 + $0x40] sm:$0xff] }
 0x152   :  { %v711_v48 = vpop.f32.mrf.mxu2  ;;  %v2388_v21 = vsel %vm72_vm1, %v798_v25, 0.0  ;;  %v730_v42 = vpop.f32.mrf.mxu3  ;;  %v2407_v11 = vsel %vm72_vm1, %v799_v15, 0.0  ;;  %1432 = vmatpush.bf16.msra.mxu0 %v1905_v50  ;;  %v1896_v59 = vld [vmem:[%s2741_s4 + $0xb0] sm:$0xff]  ;;  %v1895_v15 = vld [vmem:[%s2741_s4 + $0xa8] sm:$0xff] }
 0x153   :  { %v712_v27 = vadd.f32 %v711_v48, %v693_v49  ;;  %826 = vrot.lane.b32.xlu1 %v819_v10, %s1928_s9  ;;  %892 = vrot.lane.b32.xlu2 %v842_v16, %s1928_s9  ;;  %v2397_v29 = vrot.slane %v2388_v21, 2  ;;  %v766_v33 = vadd.f32 %v2358_v53, %v758_v31  ;;  %v820_v44 = vrot.slane %v2388_v21, 1  ;;  %v1897_v49 = vld [vmem:[%s2741_s4 + $0xb8] sm:$0xff]  ;;  %v1879_v48 = vld [vmem:[%s2741_s4 + $0x28] sm:$0xff] }
 0x154   :  { %v880_v54 = vrot.slane %v2407_v11, 1  ;;  %v890_v55 = vrot.slane %v2407_v11, 2  ;;  %1376 = vmatpush.bf16.msrb.mxu1 %v1880_v46  ;;  %1413 = vmatpush.bf16.msrb.mxu3 %v1897_v49  ;;  %v1904_v31 = vld [vmem:[%s2741_s4 + $0xf0] sm:$0xff]  ;;  %v1891_v46 = vld [vmem:[%s2741_s4 + $0x88] sm:$0xff] }
 0x155   :  { %894 = vrot.lane.b32.xlu0 %v2378_v17, %s1928_s9  ;;  %1010 = vst [vmem:[#allocation1 + $0x21] ss:$2 sm:$0xff] %v2397_v29  ;;  %v731_v52 = vadd.f32 %v730_v42, %v712_v27  ;;  %v770_v39 = vmax.f32 %v766_v33, 0.0  ;;  %1395 = vmatpush.bf16.msrb.mxu2 %v1888_v18  ;;  %v1887_v27 = vld [vmem:[%s2741_s4 + $0x68] sm:$0xff]  ;;  %v1878_v42 = vld [vmem:[%s2741_s4 + $0x20] sm:$0xff] }
 0x156   :  { %v749_v47 = vpop.f32.mrf.mxu0  ;;  %1433 = vmatpush.bf16.msra.mxu0 %v1904_v31  ;;  %v1899_v18 = vld [vmem:[%s2741_s4 + $0xc8] sm:$0xff] }
 0x157   :  { %v750_v22 = vadd.f32 %v749_v47, %v731_v52  ;;  %v784_v24 = vrot.slane %v770_v39, 7  ;;  %v1690_v56 = vrot.slane %v770_v39, 11  ;;  %v1886_v52 = vld [vmem:[%s2741_s4 + $0x60] sm:$0xff]  ;;  %v1903_v47 = vld [vmem:[%s2741_s4 + $0xe8] sm:$0xff]  ;;  %v1885_v39 = vld [vmem:[%s2741_s4 + $0x58] sm:$0xff] }
 0x158   :  { %1377 = vmatpush.bf16.msrb.mxu1 %v1879_v48  ;;  %1414 = vmatpush.bf16.msrb.mxu3 %v1896_v59 }
 0x159   :  { %v759_v40 = vmul.f32 %v2353_v38, %v750_v22  ;;  %v800_v38 = vsel %vm62_vm0, 0.0, %v784_v24  ;;  %v801_v58 = vsel %vm62_vm0, 0.0, %v1690_v56  ;;  %1396 = vmatpush.bf16.msrb.mxu2 %v1887_v27  ;;  %v1877_v22 = vld [vmem:[%s2741_s4 + $0x18] sm:$0xff]  ;;  %v1902_v24 = vld [vmem:[%s2741_s4 + $0xe0] sm:$0xff]  ;;  %v1884_v56 = vld [vmem:[%s2741_s4 + $0x50] sm:$0xff] }
 0x15a   :  { %v2434_v36 = vsel %vm72_vm1, %v801_v58, 0.0  ;;  %1434 = vmatpush.bf16.msra.mxu0 %v1903_v47 }
 0x15b   :  { %862 = vrot.lane.b32.xlu1 %v2407_v11, %s1928_s9  ;;  %828 = vrot.lane.b32.xlu2 %v820_v44, %s1928_s9  ;;  %v767_v43 = vadd.f32 %v2358_v53, %v759_v40  ;;  %v2431_v53 = vsel %vm72_vm1, %v800_v38, 0.0  ;;  %v822_v45 = vrot.slane %v2434_v36, 1  ;;  %v2476_v9 = vrot.slane %v2434_v36, 2  ;;  %v1894_v40 = vld [vmem:[%s2741_s4 + $0xa0] sm:$0xff]  ;;  %v1893_v38 = vld [vmem:[%s2741_s4 + $0x98] sm:$0xff] }
 0x15c   :  { %v821_v30 = vrot.slane %v2431_v53, 1  ;;  %v845_v14 = vrot.slane %v2431_v53, 2  ;;  %1378 = vmatpush.bf16.msrb.mxu1 %v1878_v42  ;;  %1415 = vmatpush.bf16.msrb.mxu3 %v1895_v15 }
 0x15d   :  { %860 = vrot.lane.b32.xlu0 %v2388_v21, %s1928_s9  ;;  %v771_v57 = vmax.f32 %v767_v43, 0.0  ;;  %1397 = vmatpush.bf16.msrb.mxu2 %v1886_v52  ;;  %v1876_v43 = vld [vmem:[%s2741_s4 + $0x10] sm:$0xff] }
 0x15e   :  { %1435 = vmatpush.bf16.msra.mxu0 %v1902_v24 }
 0x15f   :  { %v1691_v60 = vrot.slane %v771_v57, 11  ;;  %v786_v61 = vrot.slane %v771_v57, 7  ;;  %v1901_v57 = vld [vmem:[%s2741_s4 + $0xd8] sm:$0xff] }
 0x160   :  { %1379 = vmatpush.bf16.msrb.mxu1 %v1877_v22  ;;  %1416 = vmatpush.bf16.msrb.mxu3 %v1894_v40 }
 0x161   :  { %v803_v62 = vsel %vm62_vm0, 0.0, %v1691_v60  ;;  %v802_v3 = vsel %vm62_vm0, 0.0, %v786_v61  ;;  %1398 = vmatpush.bf16.msrb.mxu2 %v1885_v39  ;;  %v1875_v60 = vld [vmem:[%s2741_s4 + $0x8] sm:$0xff] }
 0x162   :  { %v2447_v4 = vsel %vm72_vm1, %v803_v62, 0.0  ;;  %v2450_v19 = vsel %vm72_vm1, %v802_v3, 0.0  ;;  %1436 = vmatpush.bf16.msra.mxu0 %v1901_v57  ;;  %v1883_v61 = vld [vmem:[%s2741_s4 + $0x48] sm:$0xff]  ;;  %v1892_v62 = vld [vmem:[%s2741_s4 + $0x90] sm:$0xff] }
 0x163   :  { %916 = vrot.lane.b32.xlu1 %v880_v54, %s1928_s9  ;;  %896 = vrot.lane.b32.xlu2 %v2397_v29, %s1928_s9  ;;  %v881_v5 = vrot.slane %v2447_v4, 1  ;;  %v823_v13 = vrot.slane %v2450_v19, 1  ;;  %v2473_v7 = vrot.slane %v2450_v19, 2  ;;  %v891_v37 = vrot.slane %v2447_v4, 2  ;;  %v1900_v3 = vld [vmem:[%s2741_s4 + $0xd0] sm:$0xff] }
 0x164   :  { %1380 = vmatpush.bf16.msrb.mxu1 %v1876_v43  ;;  %1417 = vmatpush.bf16.msrb.mxu3 %v1893_v38 }
 0x165   :  { %898 = vrot.lane.b32.xlu0 %v890_v55, %s1928_s9  ;;  %1399 = vmatpush.bf16.msrb.mxu2 %v1884_v56 }
 0x166   :  { %1437 = vmatpush.bf16.msra.mxu0 %v1900_v3 }
 0x168   :  { %1381 = vmatpush.bf16.msrb.mxu1 %v1875_v60  ;;  %1418 = vmatpush.bf16.msrb.mxu3 %v1892_v62 }
 0x169   :  { %1400 = vmatpush.bf16.msrb.mxu2 %v1883_v61 }
 0x16a   :  { %1438 = vmatpush.bf16.msra.mxu0 %v1899_v18 }
 0x16b   :  { %864 = vrot.lane.b32.xlu1 %v2431_v53, %s1928_s9  ;;  %866 = vrot.lane.b32.xlu2 %v2434_v36, %s1928_s9 }
 0x16c   :  { %1382 = vmatpush.bf16.msrb.mxu1 %v1874_v34  ;;  %1419 = vmatpush.bf16.msrb.mxu3 %v1891_v46 }
 0x16d   :  { %830 = vrot.lane.b32.xlu0 %v821_v30, %s1928_s9  ;;  %1401 = vmatpush.bf16.msrb.mxu2 %v1882_v41 }
 0x171   :  { %1910 = vmatpush.bf16.msra.mxu2 %v1905_v50  ;;  %v1898_v50 = vld [vmem:[%s2741_s4 + $0xc0] sm:$0xff] }
 0x172   :  { %1439 = vmatpush.bf16.msra.mxu0 %v1898_v50 }
 0x173   :  { %870 = vrot.lane.b32.xlu2 %v2447_v4, %s1928_s9  ;;  %868 = vrot.lane.b32.xlu1 %v2450_v19, %s1928_s9 }
 0x175   :  { %832 = vrot.lane.b32.xlu0 %v822_v45, %s1928_s9  ;;  %1911 = vmatpush.bf16.msra.mxu2 %v1904_v31 }
 0x179   :  { %1912 = vmatpush.bf16.msra.mxu2 %v1903_v47 }
 0x17b   :  { %918 = vrot.lane.b32.xlu2 %v881_v5, %s1928_s9  ;;  %834 = vrot.lane.b32.xlu1 %v823_v13, %s1928_s9 }
 0x17d   :  { %900 = vrot.lane.b32.xlu0 %v845_v14, %s1928_s9  ;;  %1913 = vmatpush.bf16.msra.mxu2 %v1902_v24  ;;  %v1909_v24 = vld [vmem:[%s2741_s4 + $0x118] sm:$0xff] }
 0x17e   :  { %1455 = vmatpush.bf16.msra.mxu1 %v1909_v24 }
 0x181   :  { %1914 = vmatpush.bf16.msra.mxu2 %v1901_v57 }
 0x183   :  { %904 = vrot.lane.b32.xlu2 %v2473_v7, %s1928_s9  ;;  %902 = vrot.lane.b32.xlu1 %v2476_v9, %s1928_s9 }
 0x185   :  { %906 = vrot.lane.b32.xlu0 %v891_v37, %s1928_s9  ;;  %1915 = vmatpush.bf16.msra.mxu2 %v1900_v3 }
 0x189   :  { %1916 = vmatpush.bf16.msra.mxu2 %v1899_v18 }
 0x18d   :  { %1917 = vmatpush.bf16.msra.mxu2 %v1898_v50 }
 0x1a5   :  { %v859_v25 = vpop.permute.xlu2 %858 }
 0x1a6   :  { %v929_v49 = vsel %vm199_vm2, %v842_v16, %v859_v25  ;;  %v1890_v25 = vld [vmem:[%s2741_s4 + $0x80] sm:$0xff] }
 0x1a7   :  { %v972_v42 = vrot.slane %v929_v49, 4  ;;  %1420 = vmatpush.bf16.msrb.mxu3 %v1890_v25 }
 0x1ab   :  { %1918 = vmatpush.bf16.msra.mxu3 %v1909_v24 }
 0x1ad   :  { %v2528_v33 = vpop.permute.xlu2 %892 }
 0x1ae   :  { %v936_v31 = vsel %vm199_vm2, %v818_v8, %v2528_v33 }
 0x1b5   :  { %v829_v58 = vpop.permute.xlu2 %828 }
 0x1b6   :  { %v924_v40 = vsel %vm199_vm2, %v2388_v21, %v829_v58 }
 0x1b7   :  { %v973_v38 = vrot.slane %v924_v40, 4 }
 0x1bd   :  { %v857_v48 = vpop.permute.xlu1 %856  ;;  %v897_v27 = vpop.permute.xlu2 %896 }
 0x1be   :  { %v928_v59 = vsel %vm199_vm2, %v2224_v63, %v857_v48  ;;  %v938_v3 = vsel %vm199_vm2, %v820_v44, %v897_v27 }
 0x1bf   :  { %v970_v52 = vrot.slane %v928_v59, 4  ;;  %v825_v15 = vpop.permute.xlu0 %824 }
 0x1c0   :  { %v922_v22 = vsel %vm199_vm2, %v2369_v20, %v825_v15 }
 0x1c1   :  { %v984_v39 = vsel %vm265_vm3, %v2254_v28, %v970_v52  ;;  %v986_v16 = vsel %vm265_vm3, %v922_v22, %v972_v42 }
 0x1c2   :  { %1000 = vst [vmem:[#allocation1] ss:$2 sm:$0xff] %v984_v39 }
 0x1c3   :  { %1002 = vst [vmem:[#allocation1 + $0x1] ss:$2 sm:$0xff] %v986_v16 }
 0x1c5   :  { %v827_v43 = vpop.permute.xlu1 %826  ;;  %v867_v61 = vpop.permute.xlu2 %866 }
 0x1c6   :  { %v923_v56 = vsel %vm199_vm2, %v2366_v12, %v827_v43  ;;  %v933_v21 = vsel %vm199_vm2, %v845_v14, %v867_v61  ;;  %v1907_v14 = vld [vmem:[%s2741_s4 + $0x108] sm:$0xff]  ;;  %v2645_v61 = vld.sshfl [vmem:[#allocation1 + $0x20] sm:$0xff pattern:$0x75316420] }
 0x1c7   :  { %v971_v60 = vrot.slane %v923_v56, 4  ;;  %v895_v62 = vpop.permute.xlu0 %894  ;;  %v979_v50 = vrot.slane %v933_v21, 4 }
 0x1c8   :  { %v937_v34 = vsel %vm199_vm2, %v819_v10, %v895_v62 }
 0x1c9   :  { %v985_v58 = vsel %vm265_vm3, %v936_v31, %v971_v60  ;;  %v987_v41 = vsel %vm265_vm3, %v937_v34, %v973_v38 }
 0x1ca   :  { %1004 = vst [vmem:[#allocation1 + $0x10] ss:$2 sm:$0xff] %v985_v58  ;;  %v1015_v39 = vld.sshfl [vmem:[#allocation1] sm:$0xff pattern:$0x75316420] }
 0x1cb   :  { %1006 = vst [vmem:[#allocation1 + $0x11] ss:$2 sm:$0xff] %v987_v41  ;;  %v1016_v16 = vld.sshfl [vmem:[#allocation1 + $0x8] sm:$0xff pattern:$0x75316420] }
 0x1cd   :  { %v863_v47 = vpop.permute.xlu1 %862  ;;  %v2612_v10 = vpop.permute.xlu2 %870 }
 0x1ce   :  { %v931_v46 = vsel %vm199_vm2, %v2397_v29, %v863_v47  ;;  %v1906_v47 = vld [vmem:[%s2741_s4 + $0x100] sm:$0xff] }
 0x1cf   :  { %v976_v49 = vrot.slane %v931_v46, 4  ;;  %v861_v20 = vpop.permute.xlu0 %860 }
 0x1d0   :  { %v930_v8 = vsel %vm199_vm2, %v2378_v17, %v861_v20 }
 0x1d1   :  { %v990_v12 = vsel %vm265_vm3, %v924_v40, %v976_v49  ;;  %v974_v33 = vrot.slane %v930_v8, 4 }
 0x1d2   :  { %1014 = vst [vmem:[#allocation1 + $0x31] ss:$2 sm:$0xff] %v990_v12  ;;  %v1017_v48 = vld.sshfl [vmem:[#allocation1 + $0x10] sm:$0xff pattern:$0x75316420] }
 0x1d3   :  { %v988_v29 = vsel %vm265_vm3, %v923_v56, %v974_v33  ;;  %v1018_v57 = vld.sshfl [vmem:[#allocation1 + $0x18] sm:$0xff pattern:$0x75316420] }
 0x1d4   :  { %1012 = vst [vmem:[#allocation1 + $0x30] ss:$2 sm:$0xff] %v988_v29 }
 0x1d5   :  { %v917_v59 = vpop.permute.xlu1 %916  ;;  %1024 = vst [vmem:[#allocation1 + $0x10] ss:$2 sm:$0xff] %v890_v55  ;;  %v919_v18 = vpop.permute.xlu2 %918 }
 0x1d6   :  { %v944_v17 = vsel %vm199_vm2, %v2407_v11, %v917_v59  ;;  %1025 = vst [vmem:[#allocation1 + $0x11] ss:$2 sm:$0xff] %v2224_v63 }
 0x1d7   :  { %v975_v42 = vrot.slane %v944_v17, 4  ;;  %v899_v52 = vpop.permute.xlu0 %898 }
 0x1d8   :  { %v939_v15 = vsel %vm199_vm2, %v880_v54, %v899_v52  ;;  %v1908_v54 = vld [vmem:[%s2741_s4 + $0x110] sm:$0xff] }
 0x1d9   :  { %v989_v22 = vsel %vm265_vm3, %v938_v3, %v975_v42  ;;  %v991_v55 = vsel %vm265_vm3, %v939_v15, %v2318_v51  ;;  %1919 = vmatpush.bf16.msra.mxu3 %v1908_v54  ;;  %1456 = vmatpush.bf16.msra.mxu1 %v1908_v54 }
 0x1da   :  { %1022 = vst [vmem:[#allocation1] ss:$2 sm:$0xff] %v989_v22 }
 0x1db   :  { %v1020_v25 = vld.sshfl [vmem:[#allocation1 + $0x30] sm:$0xff pattern:$0x75316420]  ;;  %v1021_v40 = vld.sshfl [vmem:[#allocation1 + $0x38] sm:$0xff pattern:$0x75316420] }
 0x1dc   :  { %v1071_v44 = vpack.c.bf16 %v1020_v25, %v1015_v39  ;;  %1023 = vst [vmem:[#allocation1 + $0x1] ss:$2 sm:$0xff] %v991_v55  ;;  %v1072_v11 = vpack.c.bf16 %v1021_v40, %v1016_v16 }
 0x1dd   :  { %v865_v27 = vpop.permute.xlu1 %864  ;;  %1457 = vmatpush.bf16.msra.mxu1 %v1907_v14  ;;  %1920 = vmatpush.bf16.msra.mxu3 %v1907_v14  ;;  %v905_v46 = vpop.permute.xlu2 %904  ;;  %v1032_v59 = vld.sshfl [vmem:[#allocation1 + $0x10] sm:$0xff pattern:$0x75316420] }
 0x1de   :  { %v932_v43 = vsel %vm199_vm2, %v2224_v63, %v865_v27  ;;  %1383 = vmatmul.bf16.vlgmr.msrb.gmra.mxu1 %v1071_v44  ;;  %1402 = vmatmul.bf16.vlgmr.msrb.gmra.mxu2 %v1072_v11 }
 0x1df   :  { %v977_v56 = vrot.slane %v932_v43, 4  ;;  %v831_v38 = vpop.permute.xlu0 %830 }
 0x1e0   :  { %v925_v60 = vsel %vm199_vm2, %v2431_v53, %v831_v38 }
 0x1e1   :  { %v992_v62 = vsel %vm265_vm3, %v2254_v28, %v977_v56  ;;  %v994_v31 = vsel %vm265_vm3, %v925_v60, %v979_v50  ;;  %v945_v28 = vsel %vm199_vm2, %v2447_v4, %v919_v18  ;;  %1458 = vmatpush.bf16.msra.mxu1 %v1906_v47  ;;  %1921 = vmatpush.bf16.msra.mxu3 %v1906_v47 }
 0x1e2   :  { %1026 = vst [vmem:[#allocation1 + $0x20] ss:$2 sm:$0xff] %v992_v62  ;;  %v982_v29 = vrot.slane %v945_v28, 4 }
 0x1e3   :  { %1027 = vst [vmem:[#allocation1 + $0x21] ss:$2 sm:$0xff] %v994_v31  ;;  %v1030_v34 = vld.sshfl [vmem:[#allocation1] sm:$0xff pattern:$0x75316420] }
 0x1e4   :  { %v1073_v58 = vpack.c.bf16 %v1030_v34, %v1017_v48  ;;  %v1031_v41 = vld.sshfl [vmem:[#allocation1 + $0x8] sm:$0xff pattern:$0x75316420]  ;;  %v942_v48 = vsel %vm199_vm2, %v823_v13, %v905_v46  ;;  %v1927_v46 = vld [vmem:[%s2743_s6] ss:$0 sm:$0xff] }
 0x1e5   :  { %1037 = vst [vmem:[#allocation1] ss:$2 sm:$0xff] %v2476_v9  ;;  %v1074_v49 = vpack.c.bf16 %v1031_v41, %v1018_v57  ;;  %v869_v20 = vpop.permute.xlu1 %868  ;;  %v997_v42 = vsel %vm265_vm3, %v942_v48, %v982_v29 }
 0x1e6   :  { %1421 = vmatmul.bf16.vlgmr.msrb.gmra.mxu3 %v1073_v58  ;;  %1038 = vst [vmem:[#allocation1 + $0x1] ss:$2 sm:$0xff] %v2473_v7  ;;  %v934_v8 = vsel %vm199_vm2, %v2476_v9, %v869_v20  ;;  %v935_v9 = vsel %vm199_vm2, %v2473_v7, %v2612_v10 }
 0x1e7   :  { %1440 = vmatmul.bf16.vlgmr.msra.gmra.mxu0 %v1074_v49  ;;  %v981_v12 = vrot.slane %v934_v8, 4  ;;  %v833_v33 = vpop.permute.xlu0 %832  ;;  %v983_v3 = vrot.slane %v935_v9, 4 }
 0x1e8   :  { %v926_v24 = vsel %vm199_vm2, %v2434_v36, %v833_v33 }
 0x1e9   :  { %v996_v57 = vsel %vm265_vm3, %v926_v24, %v981_v12  ;;  %v978_v55 = vrot.slane %v926_v24, 4 }
 0x1ea   :  { %1039 = vst [vmem:[#allocation1 + $0x10] ss:$2 sm:$0xff] %v996_v57  ;;  %v1033_v17 = vld.sshfl [vmem:[#allocation1 + $0x20] sm:$0xff pattern:$0x75316420] }
 0x1eb   :  { %v1034_v52 = vld.sshfl [vmem:[#allocation1 + $0x28] sm:$0xff pattern:$0x75316420] }
 0x1ec   :  { %1041 = vst [vmem:[#allocation1 + $0x20] ss:$2 sm:$0xff] %v997_v42 }
 0x1ed   :  { %v835_v13 = vpop.permute.xlu1 %834  ;;  %v1045_v15 = vld.sshfl [vmem:[#allocation1] sm:$0xff pattern:$0x75316420] }
 0x1ee   :  { %v927_v22 = vsel %vm199_vm2, %v2450_v19, %v835_v13  ;;  %1486 = vst [vmem:[#allocation1] ss:$2 sm:$0xff] %v1973_v0 }
 0x1ef   :  { %v998_v39 = vsel %vm265_vm3, %v927_v22, %v983_v3  ;;  %v901_v16 = vpop.permute.xlu0 %900  ;;  %1488 = vst [vmem:[#allocation1 + $0x1] ss:$2 sm:$0xff] %v1978_v1  ;;  %v980_v18 = vrot.slane %v927_v22, 4 }
 0x1f0   :  { %1040 = vst [vmem:[#allocation1 + $0x11] ss:$2 sm:$0xff] %v998_v39  ;;  %v940_v7 = vsel %vm199_vm2, %v821_v30, %v901_v16 }
 0x1f1   :  { %v993_v10 = vsel %vm265_vm3, %v940_v7, %v978_v55 }
 0x1f2   :  { %1028 = vst [vmem:[#allocation1 + $0x30] ss:$2 sm:$0xff] %v993_v10 }
 0x1f5   :  { %v903_v25 = vpop.permute.xlu1 %902 }
 0x1f6   :  { %v941_v0 = vsel %vm199_vm2, %v822_v45, %v903_v25  ;;  %v1501_v28 = vld.sshfl [vmem:[#allocation1] sm:$0xff pattern:$0x75316420] }
 0x1f7   :  { %v995_v19 = vsel %vm265_vm3, %v941_v0, %v980_v18  ;;  %v907_v40 = vpop.permute.xlu0 %906  ;;  %v1046_v21 = vld.sshfl [vmem:[#allocation1 + $0x10] sm:$0xff pattern:$0x75316420]  ;;  %v1047_v44 = vld.sshfl [vmem:[#allocation1 + $0x18] sm:$0xff pattern:$0x75316420] }
 0x1f8   :  { %1029 = vst [vmem:[#allocation1 + $0x31] ss:$2 sm:$0xff] %v995_v19  ;;  %v943_v1 = vsel %vm199_vm2, %v881_v5, %v907_v40  ;;  %v1076_v53 = vpack.c.bf16 %v1046_v21, %v1033_v17  ;;  %v1077_v30 = vpack.c.bf16 %v1047_v44, %v1034_v52 }
 0x1f9   :  { %v999_v11 = vsel %vm265_vm3, %v943_v1, %v2318_v51  ;;  %1490 = vst [vmem:[#allocation1 + $0x10] ss:$2 sm:$0xff] %v1983_v2  ;;  %v1075_v51 = vpack.c.bf16 %v1032_v59, %v2645_v61 }
 0x1fa   :  { %1388 = vmatmul.bf16.gmra.mxu1 %v1076_v53  ;;  %1042 = vst [vmem:[#allocation1 + $0x21] ss:$2 sm:$0xff] %v999_v11  ;;  %1407 = vmatmul.bf16.gmra.mxu2 %v1077_v30 }
 0x1fb   :  { %1492 = vst [vmem:[#allocation1 + $0x11] ss:$2 sm:$0xff] %v1991_v6 }
 0x1ff   :  { %v1035_v36 = vld.sshfl [vmem:[#allocation1 + $0x30] sm:$0xff pattern:$0x75316420]  ;;  %v1036_v45 = vld.sshfl [vmem:[#allocation1 + $0x38] sm:$0xff pattern:$0x75316420] }
 0x200   :  { %1043 = vst [vmem:[#allocation1 + $0x30] ss:$2 sm:$0xff] %v891_v37 }
 0x201   :  { %v1048_v54 = vld.sshfl [vmem:[#allocation1 + $0x20] sm:$0xff pattern:$0x75316420]  ;;  %1044 = vst [vmem:[#allocation1 + $0x31] ss:$2 sm:$0xff] %v2224_v63 }
 0x202   :  { %v1078_v5 = vpack.c.bf16 %v1048_v54, %v1035_v36  ;;  %v1049_v27 = vld.sshfl [vmem:[#allocation1 + $0x28] sm:$0xff pattern:$0x75316420]  ;;  %v1502_v3 = vld.sshfl [vmem:[#allocation1 + $0x10] sm:$0xff pattern:$0x75316420] }
 0x203   :  { %1494 = vst [vmem:[#allocation1 + $0x20] ss:$2 sm:$0xff] %v2037_v23  ;;  %v1079_v2 = vpack.c.bf16 %v1049_v27, %v1036_v45 }
 0x204   :  { %1426 = vmatmul.bf16.gmra.mxu3 %v1078_v5  ;;  %1496 = vst [vmem:[#allocation1 + $0x21] ss:$2 sm:$0xff] %v2044_v26 }
 0x208   :  { %v1050_v43 = vld.sshfl [vmem:[#allocation1 + $0x30] sm:$0xff pattern:$0x75316420] }
 0x209   :  { %1498 = vst [vmem:[#allocation1 + $0x30] ss:$2 sm:$0xff] %v2073_v35  ;;  %v1080_v6 = vpack.c.bf16 %v1050_v43, %v1045_v15 }
 0x20a   :  { %1445 = vmatmul.bf16.vlgmr.msra.gmra.mxu2 %v1079_v2  ;;  %1836 = vmatmul.msk.bf16.vlgmr.msra.gmra.mxu1 %vm199_vm2, %v1075_v51  ;;  %1500 = vst [vmem:[#allocation1 + $0x31] ss:$2 sm:$0xff] %v2064_v32  ;;  %v1926_v32 = vld [vmem:[%s2742_s5] ss:$0 sm:$0xff] }
 0x20b   :  { %v1503_v19 = vld.sshfl [vmem:[#allocation1 + $0x20] sm:$0xff pattern:$0x75316420] }
 0x211   :  { %v1504_v54 = vld.sshfl [vmem:[#allocation1 + $0x30] sm:$0xff pattern:$0x75316420] }
 0x214   :  { %1837 = vmatmul.msk.bf16.vlgmr.msra.gmra.mxu3 %vm199_vm2, %v1080_v6 }
 0x25b   :  { %v1384_v63 = vpop.f32.mrf.mxu1 }
 0x261   :  { %v1403_v4 = vpop.f32.mrf.mxu2 }
 0x262   :  { %v1404_v60 = vadd.f32 %v1403_v4, %v1384_v63 }
 0x263   :  { %v1386_v23 = vpop.f32.mrf.mxu1 }
 0x264   :  { %v1441_v35 = vpop.f32.mrf.mxu0 }
 0x269   :  { %v1422_v37 = vpop.f32.mrf.mxu3  ;;  %v1405_v50 = vpop.f32.mrf.mxu2 }
 0x26a   :  { %v1423_v61 = vadd.f32 %v1422_v37, %v1404_v60  ;;  %v1406_v41 = vadd.f32 %v1405_v50, %v1386_v23 }
 0x26c   :  { %v1442_v31 = vadd.f32 %v1441_v35, %v1423_v61  ;;  %v1443_v12 = vpop.f32.mrf.mxu0 }
 0x271   :  { %v1424_v38 = vpop.f32.mrf.mxu3 }
 0x272   :  { %v1425_v49 = vadd.f32 %v1424_v38, %v1406_v41 }
 0x274   :  { %v1444_v48 = vadd.f32 %v1443_v12, %v1425_v49 }
 0x277   :  { %v1389_v26 = vpop.f32.mrf.mxu1 }
 0x27d   :  { %v1408_v56 = vpop.f32.mrf.mxu2 }
 0x27e   :  { %v1409_v17 = vadd.f32 %v1408_v56, %v1389_v26 }
 0x27f   :  { %v1391_v14 = vpop.f32.mrf.mxu1 }
 0x285   :  { %v1410_v62 = vpop.f32.mrf.mxu2 }
 0x286   :  { %v1411_v10 = vadd.f32 %v1410_v62, %v1391_v14 }
 0x287   :  { %v1427_v34 = vpop.f32.mrf.mxu3  ;;  %v1460_v58 = vpop.f32.mrf.mxu1 }
 0x288   :  { %v1461_v47 = vadd.f32 %v1460_v58, %v1442_v31  ;;  %v1428_v13 = vadd.f32 %v1427_v34, %v1409_v17 }
 0x28a   :  { %v1474_v20 = vmul.f32 %v1926_v32, %v1461_v47 }
 0x28c   :  { %v1482_v8 = vadd.f32 %v1927_v46, %v1474_v20 }
 0x28d   :  { %v1446_v9 = vpop.f32.mrf.mxu2 }
 0x28e   :  { %v1509_v33 = vadd.f32 %v1501_v28, %v1482_v8  ;;  %v1447_v22 = vadd.f32 %v1446_v9, %v1428_v13 }
 0x28f   :  { %v1429_v24 = vpop.f32.mrf.mxu3  ;;  %v1462_v29 = vpop.f32.mrf.mxu1 }
 0x290   :  { %v1513_v57 = vmax.f32 %v1509_v33, 0.0  ;;  %v1463_v59 = vadd.f32 %v1462_v29, %v1444_v48  ;;  %v1430_v40 = vadd.f32 %v1429_v24, %v1411_v10 }
 0x292   :  { %v1521_v42 = vrot.slane %v1513_v57, 4  ;;  %1530 = vst.msk [vmem:[%s2744_s7] sm:$0xf] %vm1529_vm4, %v1513_v57  ;;  %v1475_v52 = vmul.f32 %v1926_v32, %v1463_v59 }
 0x294   :  { %1531 = vst.msk [vmem:[%s2744_s7 + $0x4] sm:$0xf] %vm1529_vm4, %v1521_v42  ;;  %v1483_v15 = vadd.f32 %v1927_v46, %v1475_v52 }
 0x295   :  { %v1448_v0 = vpop.f32.mrf.mxu2 }
 0x296   :  { %v1510_v55 = vadd.f32 %v1502_v3, %v1483_v15  ;;  %v1449_v44 = vadd.f32 %v1448_v0, %v1430_v40 }
 0x297   :  { %v1465_v39 = vpop.f32.mrf.mxu3 }
 0x298   :  { %v1514_v16 = vmax.f32 %v1510_v55, 0.0  ;;  %v1466_v7 = vadd.f32 %v1465_v39, %v1447_v22 }
 0x29a   :  { %v1522_v18 = vrot.slane %v1514_v16, 4  ;;  %1532 = vst.msk [vmem:[%s2744_s7 + $0x8] sm:$0xf] %vm1529_vm4, %v1514_v16  ;;  %v1476_v25 = vmul.f32 %v1926_v32, %v1466_v7 }
 0x29c   :  { %1533 = vst.msk [vmem:[%s2744_s7 + $0xc] sm:$0xf] %vm1529_vm4, %v1522_v18  ;;  %v1484_v21 = vadd.f32 %v1927_v46, %v1476_v25 }
 0x29e   :  { %v1511_v1 = vadd.f32 %v1503_v19, %v1484_v21 }
 0x29f   :  { %v1467_v53 = vpop.f32.mrf.mxu3 }
 0x2a0   :  { %v1515_v30 = vmax.f32 %v1511_v1, 0.0  ;;  %v1468_v11 = vadd.f32 %v1467_v53, %v1449_v44 }
 0x2a2   :  { %v1523_v36 = vrot.slane %v1515_v30, 4  ;;  %1534 = vst.msk [vmem:[%s2744_s7 + $0x10] sm:$0xf] %vm1529_vm4, %v1515_v30  ;;  %v1477_v45 = vmul.f32 %v1926_v32, %v1468_v11 }
 0x2a4   :  { %1535 = vst.msk [vmem:[%s2744_s7 + $0x14] sm:$0xf] %vm1529_vm4, %v1523_v36  ;;  %v1485_v5 = vadd.f32 %v1927_v46, %v1477_v45 }
 0x2a6   :  { %v1512_v27 = vadd.f32 %v1504_v54, %v1485_v5 }
 0x2a8   :  { %v1516_v2 = vmax.f32 %v1512_v27, 0.0 }
 0x2aa   :  { %v1524_v51 = vrot.slane %v1516_v2, 4  ;;  %1536 = vst.msk [vmem:[%s2744_s7 + $0x18] sm:$0xf] %vm1529_vm4, %v1516_v2 }
 0x2ac   :  { %1537 = vst.msk [vmem:[%s2744_s7 + $0x1c] sm:$0xf] %vm1529_vm4, %v1524_v51 }

// kernel: mynet_forward.23
= control target key start
LH: loop header
LB: loop body
LE: loop exit
PB: predicated region body
PF: predicated region fallthrough
CT: control target
= control target key end

     0   :  { %v2484_v4 = vmov 0.0   ;;  %vm46_vm0 = vcmask 1040384   ;;  %vm52_vm1 = vcmask 1042432   ;;  %vm89_vm2 = vcmask 1041408   ;;  %s3123_s0 = inlined_call_operand.vmem [shape: f32[2,2,2,128], index: 0, kind: input, shape index: {}]   ;;  %s3124_s1 = inlined_call_operand.vmem [shape: bf16[1152,128], index: 1, kind: input, shape index: {}]   ;;  %s3125_s2 = inlined_call_operand.vmem [shape: f32[1,128], index: 2, kind: input, shape index: {}, may-alias: {2,5}]   ;;  %s3126_s3 = inlined_call_operand.vmem [shape: f32[1,128], index: 3, kind: input, shape index: {}, may-alias: {3,6}]   ;;  %s3127_s4 = inlined_call_operand.vmem [shape: bf16[1152,128], index: 4, kind: input, shape index: {}]   ;;  %s3128_s5 = inlined_call_operand.vmem [shape: f32[1,128], index: 5, kind: input, shape index: {}, may-alias: {2,5}]   ;;  %s3129_s6 = inlined_call_operand.vmem [shape: f32[1,128], index: 6, kind: input, shape index: {}, may-alias: {3,6}]   ;;  %s3130_s7 = inlined_call_operand.hbm [shape: f32[2,2,2,128], index: 7, kind: output, shape index: {}]  }
   0x1   :  { %v2313_v0 = vld [vmem:[%s3124_s1 + $0x38] sm:$0xff]  ;;  %v36_v5 = vrot.slane %v2484_v4, 7  ;;  %v2312_v6 = vld [vmem:[%s3124_s1 + $0x30] sm:$0xff]  ;;  %v2311_v11 = vld [vmem:[%s3124_s1 + $0x28] sm:$0xff]  ;;  %vm91_vm3 = vcmask 1045508   ;;  %vm93_vm4 = vcmask 1043456  }
   0x2   :  { %v2329_v1 = vld [vmem:[%s3124_s1 + $0xb8] sm:$0xff]  ;;  %736 = vmatpush.bf16.msra.mxu0 %v2313_v0  ;;  %v2328_v7 = vld [vmem:[%s3124_s1 + $0xb0] sm:$0xff]  ;;  %v2327_v12 = vld [vmem:[%s3124_s1 + $0xa8] sm:$0xff] }
   0x3   :  { %v2337_v2 = vld [vmem:[%s3124_s1 + $0xf8] sm:$0xff]  ;;  %762 = vmatpush.bf16.msra.mxu2 %v2329_v1  ;;  %v2336_v8 = vld [vmem:[%s3124_s1 + $0xf0] sm:$0xff]  ;;  %v47_v10 = vsel %vm46_vm0, 0.0, %v36_v5  ;;  %v2335_v13 = vld [vmem:[%s3124_s1 + $0xe8] sm:$0xff] }
   0x4   :  { %v2321_v3 = vld [vmem:[%s3124_s1 + $0x78] sm:$0xff]  ;;  %775 = vmatpush.bf16.msra.mxu3 %v2337_v2  ;;  %v2320_v9 = vld [vmem:[%s3124_s1 + $0x70] sm:$0xff]  ;;  %v2319_v14 = vld [vmem:[%s3124_s1 + $0x68] sm:$0xff]  ;;  %v2566_v15 = vsel %vm52_vm1, %v47_v10, 0.0 }
   0x5   :  { %749 = vmatpush.bf16.msra.mxu1 %v2321_v3  ;;  %v2310_v16 = vld [vmem:[%s3124_s1 + $0x20] sm:$0xff]  ;;  %v61_v18 = vrot.slane %v2566_v15, 1  ;;  %v2309_v21 = vld [vmem:[%s3124_s1 + $0x18] sm:$0xff]  ;;  %v2588_v23 = vrot.slane %v2566_v15, 2  ;;  %v2308_v35 = vld [vmem:[%s3124_s1 + $0x10] sm:$0xff]  ;;  %v81_v39 = vrot.slane %v2566_v15, 4 }
   0x6   :  { %737 = vmatpush.bf16.msra.mxu0 %v2312_v6  ;;  %v2326_v17 = vld [vmem:[%s3124_s1 + $0xa0] sm:$0xff]  ;;  %v2325_v22 = vld [vmem:[%s3124_s1 + $0x98] sm:$0xff]  ;;  %v2324_v36 = vld [vmem:[%s3124_s1 + $0x90] sm:$0xff] }
   0x7   :  { %763 = vmatpush.bf16.msra.mxu2 %v2328_v7  ;;  %v2334_v19 = vld [vmem:[%s3124_s1 + $0xe0] sm:$0xff]  ;;  %v73_v24 = vrot.slane %v61_v18, 6  ;;  %v2333_v25 = vld [vmem:[%s3124_s1 + $0xd8] sm:$0xff]  ;;  %v2627_v37 = vrot.slane %v2588_v23, 4  ;;  %v2634_v40 = vrot.slane %v61_v18, 2  ;;  %v2332_v41 = vld [vmem:[%s3124_s1 + $0xd0] sm:$0xff] }
   0x8   :  { %776 = vmatpush.bf16.msra.mxu3 %v2336_v8  ;;  %v2318_v20 = vld [vmem:[%s3124_s1 + $0x60] sm:$0xff]  ;;  %v2317_v26 = vld [vmem:[%s3124_s1 + $0x58] sm:$0xff]  ;;  %v2316_v42 = vld [vmem:[%s3124_s1 + $0x50] sm:$0xff] }
   0x9   :  { %750 = vmatpush.bf16.msra.mxu1 %v2320_v9  ;;  %v2599_v27 = vld [vmem:[%s3123_s0] sm:$0x3]  ;;  %v2604_v28 = vld [vmem:[%s3123_s0 + $0x2] sm:$0x3]  ;;  %v2609_v29 = vld [vmem:[%s3123_s0 + $0x4] sm:$0x3]  ;;  %v2631_v38 = vsel %vm89_vm2, %v2566_v15, %v73_v24 }
   0xa   :  { %738 = vmatpush.bf16.msra.mxu0 %v2311_v11  ;;  %v2614_v30 = vld [vmem:[%s3123_s0 + $0x6] sm:$0x3]  ;;  %v37_v31 = vrot.slane %v2599_v27, 7  ;;  %v38_v32 = vrot.slane %v2604_v28, 7  ;;  %v39_v33 = vrot.slane %v2609_v29, 7  ;;  %v2307_v55 = vld [vmem:[%s3124_s1 + $0x8] sm:$0xff] }
   0xb   :  { %764 = vmatpush.bf16.msra.mxu2 %v2327_v12  ;;  %v40_v34 = vrot.slane %v2614_v30, 7  ;;  %v2323_v56 = vld [vmem:[%s3124_s1 + $0x88] sm:$0xff]  ;;  %v2306_v7 = vld [vmem:[%s3124_s1] sm:$0xff] }
   0xc   :  { %777 = vmatpush.bf16.msra.mxu3 %v2335_v13  ;;  %v48_v43 = vsel %vm46_vm0, 0.0, %v37_v31  ;;  %v49_v44 = vsel %vm46_vm0, 0.0, %v38_v32  ;;  %v50_v45 = vsel %vm46_vm0, 0.0, %v39_v33  ;;  %v2331_v61 = vld [vmem:[%s3124_s1 + $0xc8] sm:$0xff]  ;;  %v2322_v12 = vld [vmem:[%s3124_s1 + $0x80] sm:$0xff]  ;;  %v2345_v13 = vld [vmem:[%s3124_s1 + $0x138] sm:$0xff] }
   0xd   :  { %751 = vmatpush.bf16.msra.mxu1 %v2319_v14  ;;  %v51_v46 = vsel %vm46_vm0, 0.0, %v40_v34  ;;  %v54_v47 = vsel %vm52_vm1, %v48_v43, 0.0  ;;  %v55_v48 = vsel %vm52_vm1, %v49_v44, 0.0  ;;  %v56_v49 = vsel %vm52_vm1, %v50_v45, 0.0  ;;  %v2315_v62 = vld [vmem:[%s3124_s1 + $0x48] sm:$0xff]  ;;  %v2361_v14 = vld [vmem:[%s3124_s1 + $0x1b8] sm:$0xff] }
   0xe   :  { %739 = vmatpush.bf16.msra.mxu0 %v2310_v16  ;;  %v2650_v50 = vsel %vm52_vm1, %v51_v46, 0.0  ;;  %v62_v51 = vrot.slane %v54_v47, 1  ;;  %v63_v52 = vrot.slane %v56_v49, 1  ;;  %v65_v53 = vrot.slane %v54_v47, 2  ;;  %v2369_v34 = vld [vmem:[%s3124_s1 + $0x1f8] sm:$0xff] }
   0xf   :  { %765 = vmatpush.bf16.msra.mxu2 %v2326_v17  ;;  %v66_v54 = vrot.slane %v56_v49, 2  ;;  %v2658_v57 = vrot.slane %v55_v48, 2  ;;  %v2661_v58 = vrot.slane %v2650_v50, 2  ;;  %v69_v59 = vrot.slane %v55_v48, 1 }
  0x10   :  { %778 = vmatpush.bf16.msra.mxu3 %v2334_v19  ;;  %v70_v60 = vrot.slane %v2650_v50, 1  ;;  %v78_v63 = vrot.slane %v62_v51, 6  ;;  %v79_v0 = vrot.slane %v65_v53, 4  ;;  %v86_v1 = vrot.slane %v63_v52, 6  ;;  %v2330_v19 = vld [vmem:[%s3124_s1 + $0xc0] sm:$0xff] }
  0x11   :  { %752 = vmatpush.bf16.msra.mxu1 %v2318_v20  ;;  %v87_v2 = vrot.slane %v66_v54, 4  ;;  %v92_v3 = vsel %vm91_vm3, %v2627_v37, %v65_v53  ;;  %v104_v4 = vsel %vm91_vm3, %v2627_v37, %v66_v54  ;;  %v75_v5 = vrot.slane %v65_v53, 6 }
  0x12   :  { %740 = vmatpush.bf16.msra.mxu0 %v2309_v21  ;;  %v76_v6 = vrot.slane %v55_v48, 4  ;;  %v94_v8 = vsel %vm93_vm4, %v2631_v38, %v92_v3  ;;  %v98_v9 = vsel %vm89_vm2, %v54_v47, %v78_v63  ;;  %v99_v10 = vsel %vm91_vm3, %v79_v0, %v2658_v57 }
  0x13   :  { %766 = vmatpush.bf16.msra.mxu2 %v2325_v22  ;;  %v105_v11 = vsel %vm93_vm4, %v2631_v38, %v104_v4  ;;  %v100_v16 = vsel %vm93_vm4, %v98_v9, %v99_v10  ;;  %v109_v17 = vsel %vm89_vm2, %v56_v49, %v86_v1  ;;  %v110_v18 = vsel %vm91_vm3, %v87_v2, %v2661_v58 }
  0x14   :  { %779 = vmatpush.bf16.msra.mxu3 %v2333_v25  ;;  %114 = vst [vmem:[#allocation1] ss:$4 sm:$0xff] %v94_v8  ;;  %v111_v20 = vsel %vm93_vm4, %v109_v17, %v110_v18  ;;  %v77_v21 = vrot.slane %v69_v59, 2  ;;  %v80_v22 = vrot.slane %v2658_v57, 6  ;;  %v83_v24 = vrot.slane %v66_v54, 6  ;;  %v2314_v25 = vld [vmem:[%s3124_s1 + $0x40] sm:$0xff] }
  0x15   :  { %753 = vmatpush.bf16.msra.mxu1 %v2317_v26  ;;  %116 = vst [vmem:[#allocation1 + $0x1] ss:$4 sm:$0xff] %v100_v16  ;;  %v84_v26 = vrot.slane %v2650_v50, 4  ;;  %v85_v31 = vrot.slane %v70_v60, 2  ;;  %v88_v32 = vrot.slane %v2661_v58, 6  ;;  %v95_v33 = vsel %vm89_vm2, %v62_v51, %v75_v5 }
  0x16   :  { %741 = vmatpush.bf16.msra.mxu0 %v2308_v35  ;;  %118 = vst [vmem:[#allocation1 + $0x2] ss:$4 sm:$0xff] %v105_v11  ;;  %v2353_v35 = vld [vmem:[%s3124_s1 + $0x178] sm:$0xff]  ;;  %v106_v43 = vsel %vm89_vm2, %v63_v52, %v83_v24 }
  0x17   :  { %767 = vmatpush.bf16.msra.mxu2 %v2324_v36  ;;  %120 = vst [vmem:[#allocation1 + $0x3] ss:$4 sm:$0xff] %v111_v20  ;;  %v96_v36 = vsel %vm91_vm3, %v76_v6, %v77_v21 }
  0x18   :  { %780 = vmatpush.bf16.msra.mxu3 %v2332_v41  ;;  %v101_v41 = vsel %vm89_vm2, %v69_v59, %v80_v22 }
  0x19   :  { %754 = vmatpush.bf16.msra.mxu1 %v2316_v42  ;;  %v2720_v42 = vsel %vm91_vm3, %v81_v39, %v2634_v40 }
  0x1a   :  { %742 = vmatpush.bf16.msra.mxu0 %v2307_v55 }
  0x1b   :  { %768 = vmatpush.bf16.msra.mxu2 %v2323_v56 }
  0x1c   :  { %781 = vmatpush.bf16.msra.mxu3 %v2331_v61 }
  0x1d   :  { %755 = vmatpush.bf16.msra.mxu1 %v2315_v62 }
  0x1e   :  { %12 = vsyncpa [#allocation3], 0  ;;  %743 = vmatpush.bf16.msra.mxu0 %v2306_v7  ;;  %v97_v44 = vsel %vm93_vm4, %v95_v33, %v96_v36  ;;  %v103_v45 = vsel %vm93_vm4, %v101_v41, %v2720_v42  ;;  %v107_v46 = vsel %vm91_vm3, %v84_v26, %v85_v31  ;;  %v2344_v15 = vld [vmem:[%s3124_s1 + $0x130] sm:$0xff]  ;;  %v112_v47 = vsel %vm89_vm2, %v70_v60, %v88_v32  ;;  %v2343_v51 = vld [vmem:[%s3124_s1 + $0x128] sm:$0xff]  ;;  %s2485_s30 = smov [#allocation2]   ;;  %s1715_s11 = sshll.u32 %s3130_s7, 4  ;;  %s1716_s11 = int_to_ptr.hbm [resolvable:$true] %s1715_s11 }
  0x1f   :  { %769 = vmatpush.bf16.msra.mxu2 %v2322_v12  ;;  %v2360_v39 = vld [vmem:[%s3124_s1 + $0x1b0] sm:$0xff]  ;;  %v108_v40 = vsel %vm93_vm4, %v106_v43, %v107_v46  ;;  %122 = vst [vmem:[#allocation1 + $0x20] ss:$4 sm:$0xff] %v97_v44  ;;  %v113_v48 = vsel %vm93_vm4, %v112_v47, %v2720_v42  ;;  %v2359_v52 = vld [vmem:[%s3124_s1 + $0x1a8] sm:$0xff]  ;;  %v2342_v1 = vld [vmem:[%s3124_s1 + $0x120] sm:$0xff]  ;;  %s1713_s8 = sshll.u32 %s2485_s30, 4  ;;  %s1714_s8 = int_to_ptr.vmem [resolvable:$true] %s1713_s8 }
  0x20   :  { %782 = vmatpush.bf16.msra.mxu3 %v2330_v19  ;;  %124 = vst [vmem:[#allocation1 + $0x21] ss:$4 sm:$0xff] %v103_v45  ;;  %v2368_v49 = vld [vmem:[%s3124_s1 + $0x1f0] sm:$0xff]  ;;  %v2367_v53 = vld [vmem:[%s3124_s1 + $0x1e8] sm:$0xff]  ;;  %v2358_v2 = vld [vmem:[%s3124_s1 + $0x1a0] sm:$0xff] }
  0x21   :  { %756 = vmatpush.bf16.msra.mxu1 %v2314_v25  ;;  %v2352_v50 = vld [vmem:[%s3124_s1 + $0x170] sm:$0xff]  ;;  %126 = vst [vmem:[#allocation1 + $0x22] ss:$4 sm:$0xff] %v108_v40  ;;  %v2351_v54 = vld [vmem:[%s3124_s1 + $0x168] sm:$0xff]  ;;  %v2350_v3 = vld [vmem:[%s3124_s1 + $0x160] sm:$0xff] }
  0x22   :  { %788 = vmatpush.bf16.msrb.mxu0 %v2345_v13  ;;  %128 = vst [vmem:[#allocation1 + $0x23] ss:$4 sm:$0xff] %v113_v48  ;;  %v131_v55 = vld.sshfl [vmem:[#allocation1 + $0x10] sm:$0xff pattern:$0x73625140]  ;;  %v2357_v4 = vld [vmem:[%s3124_s1 + $0x198] sm:$0xff] }
  0x23   :  { %814 = vmatpush.bf16.msrb.mxu2 %v2361_v14  ;;  %v129_v56 = vld.sshfl [vmem:[#allocation1] sm:$0xff pattern:$0x73625140]  ;;  %v153_v59 = vpack.c.bf16 %v131_v55, %v131_v55  ;;  %v132_v61 = vld.sshfl [vmem:[#allocation1 + $0x18] sm:$0xff pattern:$0x73625140] }
  0x24   :  { %827 = vmatpush.bf16.msrb.mxu3 %v2369_v34  ;;  %v151_v60 = vpack.c.bf16 %v129_v56, %v129_v56  ;;  %v130_v62 = vld.sshfl [vmem:[#allocation1 + $0x8] sm:$0xff pattern:$0x73625140]  ;;  %v154_v63 = vpack.c.bf16 %v132_v61, %v132_v61  ;;  %v2365_v5 = vld [vmem:[%s3124_s1 + $0x1d8] sm:$0xff]  ;;  %v2340_v7 = vld [vmem:[%s3124_s1 + $0x110] sm:$0xff] }
  0x25   :  { %801 = vmatpush.bf16.msrb.mxu1 %v2353_v35  ;;  %v152_v0 = vpack.c.bf16 %v130_v62, %v130_v62  ;;  %137 = vst [vmem:[#allocation1] ss:$4 sm:$0xff] %v2658_v57  ;;  %770 = vmatmul.bf16.vlgmr.msra.gmra.mxu2 %v153_v59  ;;  %v2366_v57 = vld [vmem:[%s3124_s1 + $0x1e0] sm:$0xff]  ;;  %v2349_v6 = vld [vmem:[%s3124_s1 + $0x158] sm:$0xff]  ;;  %v2356_v8 = vld [vmem:[%s3124_s1 + $0x190] sm:$0xff] }
  0x26   :  { %789 = vmatpush.bf16.msrb.mxu0 %v2344_v15  ;;  %138 = vst [vmem:[#allocation1 + $0x1] ss:$4 sm:$0xff] %v2588_v23  ;;  %783 = vmatmul.bf16.vlgmr.msra.gmra.mxu3 %v154_v63  ;;  %v2364_v9 = vld [vmem:[%s3124_s1 + $0x1d0] sm:$0xff]  ;;  %v2339_v11 = vld [vmem:[%s3124_s1 + $0x108] sm:$0xff]  ;;  %v2338_v16 = vld [vmem:[%s3124_s1 + $0x100] sm:$0xff] }
  0x27   :  { %815 = vmatpush.bf16.msrb.mxu2 %v2360_v39  ;;  %744 = vmatmul.bf16.vlgmr.msra.gmra.mxu0 %v151_v60  ;;  %139 = vst [vmem:[#allocation1 + $0x2] ss:$4 sm:$0xff] %v2661_v58  ;;  %v2341_v58 = vld [vmem:[%s3124_s1 + $0x118] sm:$0xff]  ;;  %v2348_v10 = vld [vmem:[%s3124_s1 + $0x150] sm:$0xff]  ;;  %v2355_v12 = vld [vmem:[%s3124_s1 + $0x188] sm:$0xff] }
  0x28   :  { %828 = vmatpush.bf16.msrb.mxu3 %v2368_v49  ;;  %140 = vst [vmem:[#allocation1 + $0x3] ss:$4 sm:$0xff] %v2588_v23  ;;  %757 = vmatmul.bf16.vlgmr.msra.gmra.mxu1 %v152_v0  ;;  %v2363_v13 = vld [vmem:[%s3124_s1 + $0x1c8] sm:$0xff]  ;;  %v2354_v17 = vld [vmem:[%s3124_s1 + $0x180] sm:$0xff]  ;;  %v2377_v20 = vld [vmem:[%s3124_s1 + $0x238] sm:$0xff] }
  0x29   :  { %802 = vmatpush.bf16.msrb.mxu1 %v2352_v50  ;;  %v2347_v14 = vld [vmem:[%s3124_s1 + $0x148] sm:$0xff]  ;;  %v135_v18 = vld.sshfl [vmem:[#allocation1 + $0x30] sm:$0xff pattern:$0x73625140]  ;;  %v2362_v21 = vld [vmem:[%s3124_s1 + $0x1c0] sm:$0xff] }
  0x2a   :  { %790 = vmatpush.bf16.msrb.mxu0 %v2343_v51  ;;  %v133_v19 = vld.sshfl [vmem:[#allocation1 + $0x20] sm:$0xff pattern:$0x73625140]  ;;  %v136_v24 = vld.sshfl [vmem:[#allocation1 + $0x38] sm:$0xff pattern:$0x73625140]  ;;  %v157_v25 = vpack.c.bf16 %v135_v18, %v135_v18 }
  0x2b   :  { %816 = vmatpush.bf16.msrb.mxu2 %v2359_v52  ;;  %v2346_v22 = vld [vmem:[%s3124_s1 + $0x140] sm:$0xff]  ;;  %v155_v26 = vpack.c.bf16 %v133_v19, %v133_v19  ;;  %v134_v31 = vld.sshfl [vmem:[#allocation1 + $0x28] sm:$0xff pattern:$0x73625140]  ;;  %v2376_v32 = vld [vmem:[%s3124_s1 + $0x230] sm:$0xff]  ;;  %v158_v33 = vpack.c.bf16 %v136_v24, %v136_v24 }
  0x2c   :  { %829 = vmatpush.bf16.msrb.mxu3 %v2367_v53  ;;  %v156_v34 = vpack.c.bf16 %v134_v31, %v134_v31  ;;  %v2375_v35 = vld [vmem:[%s3124_s1 + $0x228] sm:$0xff]  ;;  %v2374_v36 = vld [vmem:[%s3124_s1 + $0x220] sm:$0xff]  ;;  %v2373_v41 = vld [vmem:[%s3124_s1 + $0x218] sm:$0xff] }
  0x2d   :  { %803 = vmatpush.bf16.msrb.mxu1 %v2351_v54  ;;  %v2372_v43 = vld [vmem:[%s3124_s1 + $0x210] sm:$0xff]  ;;  %v2371_v44 = vld [vmem:[%s3124_s1 + $0x208] sm:$0xff]  ;;  %v2370_v45 = vld [vmem:[%s3124_s1 + $0x200] sm:$0xff] }
  0x2e   :  { %791 = vmatpush.bf16.msrb.mxu0 %v2342_v1  ;;  %v2385_v39 = vld [vmem:[%s3127_s4 + $0x38] sm:$0xff]  ;;  %v2384_v40 = vld [vmem:[%s3127_s4 + $0x30] sm:$0xff]  ;;  %v2383_v47 = vld [vmem:[%s3127_s4 + $0x28] sm:$0xff] }
  0x2f   :  { %817 = vmatpush.bf16.msrb.mxu2 %v2358_v2  ;;  %v141_v46 = vld.sshfl [vmem:[#allocation1] sm:$0xff pattern:$0x73625140]  ;;  %v2393_v49 = vld [vmem:[%s3127_s4 + $0x78] sm:$0xff]  ;;  %v2392_v53 = vld [vmem:[%s3127_s4 + $0x70] sm:$0xff] }
  0x30   :  { %830 = vmatpush.bf16.msrb.mxu3 %v2366_v57  ;;  %v159_v15 = vpack.c.bf16 %v141_v46, %v141_v46  ;;  %v2382_v48 = vld [vmem:[%s3127_s4 + $0x20] sm:$0xff]  ;;  %v2401_v50 = vld [vmem:[%s3127_s4 + $0xb8] sm:$0xff]  ;;  %v2400_v54 = vld [vmem:[%s3127_s4 + $0xb0] sm:$0xff] }
  0x31   :  { %804 = vmatpush.bf16.msrb.mxu1 %v2350_v3  ;;  %v2409_v52 = vld [vmem:[%s3127_s4 + $0xf8] sm:$0xff]  ;;  %v2408_v56 = vld [vmem:[%s3127_s4 + $0xf0] sm:$0xff]  ;;  %v2391_v60 = vld [vmem:[%s3127_s4 + $0x68] sm:$0xff] }
  0x32   :  { %792 = vmatpush.bf16.msrb.mxu0 %v2341_v58  ;;  %v2381_v59 = vld [vmem:[%s3127_s4 + $0x18] sm:$0xff]  ;;  %v2399_v61 = vld [vmem:[%s3127_s4 + $0xa8] sm:$0xff]  ;;  %v2380_v0 = vld [vmem:[%s3127_s4 + $0x10] sm:$0xff] }
  0x33   :  { %818 = vmatpush.bf16.msrb.mxu2 %v2357_v4  ;;  %v2407_v63 = vld [vmem:[%s3127_s4 + $0xe8] sm:$0xff]  ;;  %v2390_v57 = vld [vmem:[%s3127_s4 + $0x60] sm:$0xff]  ;;  %v2404_v24 = vld [vmem:[%s3127_s4 + $0xd0] sm:$0xff] }
  0x34   :  { %831 = vmatpush.bf16.msrb.mxu3 %v2365_v5  ;;  %v2398_v3 = vld [vmem:[%s3127_s4 + $0xa0] sm:$0xff]  ;;  %v2379_v5 = vld [vmem:[%s3127_s4 + $0x8] sm:$0xff] }
  0x35   :  { %805 = vmatpush.bf16.msrb.mxu1 %v2349_v6  ;;  %v2406_v4 = vld [vmem:[%s3127_s4 + $0xe0] sm:$0xff] }
  0x36   :  { %793 = vmatpush.bf16.msrb.mxu0 %v2340_v7  ;;  %v2402_v46 = vld [vmem:[%s3127_s4 + $0xc0] sm:$0xff] }
  0x37   :  { %819 = vmatpush.bf16.msrb.mxu2 %v2356_v8 }
  0x38   :  { %832 = vmatpush.bf16.msrb.mxu3 %v2364_v9 }
  0x39   :  { %806 = vmatpush.bf16.msrb.mxu1 %v2348_v10  ;;  %v2378_v10 = vld [vmem:[%s3127_s4] sm:$0xff] }
  0x3a   :  { %794 = vmatpush.bf16.msrb.mxu0 %v2339_v11 }
  0x3b   :  { %820 = vmatpush.bf16.msrb.mxu2 %v2355_v12  ;;  %v2389_v12 = vld [vmem:[%s3127_s4 + $0x58] sm:$0xff] }
  0x3c   :  { %833 = vmatpush.bf16.msrb.mxu3 %v2363_v13  ;;  %v2397_v13 = vld [vmem:[%s3127_s4 + $0x98] sm:$0xff] }
  0x3d   :  { %807 = vmatpush.bf16.msrb.mxu1 %v2347_v14  ;;  %v2405_v14 = vld [vmem:[%s3127_s4 + $0xd8] sm:$0xff] }
  0x3e   :  { %795 = vmatpush.bf16.msrb.mxu0 %v2338_v16  ;;  %v2417_v16 = vld [vmem:[%s3127_s4 + $0x138] sm:$0xff] }
  0x3f   :  { %821 = vmatpush.bf16.msrb.mxu2 %v2354_v17 }
  0x40   :  { %834 = vmatpush.bf16.msrb.mxu3 %v2362_v21  ;;  %v2388_v21 = vld [vmem:[%s3127_s4 + $0x50] sm:$0xff] }
  0x41   :  { %808 = vmatpush.bf16.msrb.mxu1 %v2346_v22  ;;  %796 = vmatmul.bf16.vlgmr.msrb.gmra.mxu0 %v155_v26  ;;  %v2396_v22 = vld [vmem:[%s3127_s4 + $0x90] sm:$0xff] }
  0x42   :  { %840 = vmatpush.bf16.msra.mxu0 %v2377_v20  ;;  %822 = vmatmul.bf16.vlgmr.msrb.gmra.mxu2 %v157_v25  ;;  %v2416_v25 = vld [vmem:[%s3127_s4 + $0x130] sm:$0xff] }
  0x43   :  { %835 = vmatmul.bf16.vlgmr.msrb.gmra.mxu3 %v158_v33  ;;  %1563 = vmatpush.bf16.msra.mxu2 %v2393_v49  ;;  %v2395_v33 = vld [vmem:[%s3127_s4 + $0x88] sm:$0xff]  ;;  %v2413_v49 = vld [vmem:[%s3127_s4 + $0x118] sm:$0xff] }
  0x44   :  { %809 = vmatmul.bf16.vlgmr.msrb.gmra.mxu1 %v156_v34  ;;  %1576 = vmatpush.bf16.msra.mxu3 %v2401_v50  ;;  %v2403_v34 = vld [vmem:[%s3127_s4 + $0xc8] sm:$0xff]  ;;  %v2424_v50 = vld [vmem:[%s3127_s4 + $0x170] sm:$0xff] }
  0x45   :  { %1550 = vmatpush.bf16.msra.mxu1 %v2385_v39  ;;  %v2425_v39 = vld [vmem:[%s3127_s4 + $0x178] sm:$0xff] }
  0x46   :  { %841 = vmatpush.bf16.msra.mxu0 %v2376_v32  ;;  %v2387_v32 = vld [vmem:[%s3127_s4 + $0x48] sm:$0xff] }
  0x47   :  { %1564 = vmatpush.bf16.msra.mxu2 %v2392_v53 }
  0x48   :  { %1577 = vmatpush.bf16.msra.mxu3 %v2400_v54  ;;  %v2412_v54 = vld [vmem:[%s3127_s4 + $0x110] sm:$0xff] }
  0x49   :  { %1551 = vmatpush.bf16.msra.mxu1 %v2384_v40  ;;  %v2433_v40 = vld [vmem:[%s3127_s4 + $0x1b8] sm:$0xff] }
  0x4a   :  { %842 = vmatpush.bf16.msra.mxu0 %v2375_v35  ;;  %v2415_v35 = vld [vmem:[%s3127_s4 + $0x128] sm:$0xff] }
  0x4b   :  { %1565 = vmatpush.bf16.msra.mxu2 %v2391_v60  ;;  %v2411_v60 = vld [vmem:[%s3127_s4 + $0x108] sm:$0xff] }
  0x4c   :  { %1578 = vmatpush.bf16.msra.mxu3 %v2399_v61 }
  0x4d   :  { %1552 = vmatpush.bf16.msra.mxu1 %v2383_v47  ;;  %v2441_v47 = vld [vmem:[%s3127_s4 + $0x1f8] sm:$0xff] }
  0x4e   :  { %843 = vmatpush.bf16.msra.mxu0 %v2374_v36 }
  0x4f   :  { %1566 = vmatpush.bf16.msra.mxu2 %v2390_v57 }
  0x50   :  { %1579 = vmatpush.bf16.msra.mxu3 %v2398_v3  ;;  %v2455_v3 = vld [vmem:[%s3126_s3] ss:$0 sm:$0xff] }
  0x51   :  { %1553 = vmatpush.bf16.msra.mxu1 %v2382_v48 }
  0x52   :  { %844 = vmatpush.bf16.msra.mxu0 %v2373_v41 }
  0x53   :  { %1567 = vmatpush.bf16.msra.mxu2 %v2389_v12 }
  0x54   :  { %1580 = vmatpush.bf16.msra.mxu3 %v2397_v13  ;;  %v2436_v13 = vld [vmem:[%s3127_s4 + $0x1d0] sm:$0xff] }
  0x55   :  { %1554 = vmatpush.bf16.msra.mxu1 %v2381_v59  ;;  %v2439_v59 = vld [vmem:[%s3127_s4 + $0x1e8] sm:$0xff] }
  0x56   :  { %845 = vmatpush.bf16.msra.mxu0 %v2372_v43 }
  0x57   :  { %1568 = vmatpush.bf16.msra.mxu2 %v2388_v21 }
  0x58   :  { %1581 = vmatpush.bf16.msra.mxu3 %v2396_v22 }
  0x59   :  { %1555 = vmatpush.bf16.msra.mxu1 %v2380_v0  ;;  %v2430_v0 = vld [vmem:[%s3127_s4 + $0x1a0] sm:$0xff] }
  0x5a   :  { %846 = vmatpush.bf16.msra.mxu0 %v2371_v44  ;;  %v2386_v44 = vld [vmem:[%s3127_s4 + $0x40] sm:$0xff] }
  0x5b   :  { %1569 = vmatpush.bf16.msra.mxu2 %v2387_v32 }
  0x5c   :  { %1582 = vmatpush.bf16.msra.mxu3 %v2395_v33 }
  0x5d   :  { %1556 = vmatpush.bf16.msra.mxu1 %v2379_v5  ;;  %v2421_v5 = vld [vmem:[%s3127_s4 + $0x158] sm:$0xff] }
  0x5e   :  { %847 = vmatpush.bf16.msra.mxu0 %v2370_v45  ;;  %v2394_v45 = vld [vmem:[%s3127_s4 + $0x80] sm:$0xff] }
  0x5f   :  { %1570 = vmatpush.bf16.msra.mxu2 %v2386_v44 }
  0x60   :  { %1583 = vmatpush.bf16.msra.mxu3 %v2394_v45 }
  0x61   :  { %848 = vmatmul.bf16.vlgmr.msra.gmra.mxu0 %v159_v15  ;;  %1557 = vmatpush.bf16.msra.mxu1 %v2378_v10  ;;  %v2414_v15 = vld [vmem:[%s3127_s4 + $0x120] sm:$0xff]  ;;  %v2420_v10 = vld [vmem:[%s3127_s4 + $0x150] sm:$0xff] }
  0x62   :  { %1589 = vmatpush.bf16.msrb.mxu0 %v2409_v52  ;;  %v2440_v52 = vld [vmem:[%s3127_s4 + $0x1f0] sm:$0xff] }
  0x63   :  { %1615 = vmatpush.bf16.msrb.mxu2 %v2425_v39 }
  0x64   :  { %1628 = vmatpush.bf16.msrb.mxu3 %v2433_v40 }
  0x65   :  { %1602 = vmatpush.bf16.msrb.mxu1 %v2417_v16 }
  0x66   :  { %1590 = vmatpush.bf16.msrb.mxu0 %v2408_v56  ;;  %v2431_v56 = vld [vmem:[%s3127_s4 + $0x1a8] sm:$0xff] }
  0x67   :  { %1616 = vmatpush.bf16.msrb.mxu2 %v2424_v50 }
  0x69   :  { %1603 = vmatpush.bf16.msrb.mxu1 %v2416_v25  ;;  %v2427_v25 = vld [vmem:[%s3127_s4 + $0x188] sm:$0xff] }
  0x6a   :  { %1591 = vmatpush.bf16.msrb.mxu0 %v2407_v63  ;;  %v2422_v63 = vld [vmem:[%s3127_s4 + $0x160] sm:$0xff] }
  0x6d   :  { %1604 = vmatpush.bf16.msrb.mxu1 %v2415_v35 }
  0x6e   :  { %1592 = vmatpush.bf16.msrb.mxu0 %v2406_v4  ;;  %v2410_v4 = vld [vmem:[%s3127_s4 + $0x100] sm:$0xff] }
  0x71   :  { %1605 = vmatpush.bf16.msrb.mxu1 %v2414_v15 }
  0x72   :  { %1593 = vmatpush.bf16.msrb.mxu0 %v2405_v14 }
  0x75   :  { %1606 = vmatpush.bf16.msrb.mxu1 %v2413_v49 }
  0x76   :  { %1594 = vmatpush.bf16.msrb.mxu0 %v2404_v24  ;;  %v2419_v24 = vld [vmem:[%s3127_s4 + $0x148] sm:$0xff] }
  0x79   :  { %1607 = vmatpush.bf16.msrb.mxu1 %v2412_v54 }
  0x7a   :  { %1595 = vmatpush.bf16.msrb.mxu0 %v2403_v34  ;;  %v2435_v34 = vld [vmem:[%s3127_s4 + $0x1c8] sm:$0xff] }
  0x7d   :  { %1608 = vmatpush.bf16.msrb.mxu1 %v2411_v60 }
  0x7e   :  { %1596 = vmatpush.bf16.msrb.mxu0 %v2402_v46 }
  0x81   :  { %1609 = vmatpush.bf16.msrb.mxu1 %v2410_v4 }
  0x82   :  { %1641 = vmatpush.bf16.msra.mxu0 %v2441_v47 }
  0x86   :  { %1642 = vmatpush.bf16.msra.mxu0 %v2440_v52 }
  0x8a   :  { %1643 = vmatpush.bf16.msra.mxu0 %v2439_v59 }
  0xa4   :  { %v745_v51 = vpop.f32.mrf.mxu0 }
  0xa5   :  { %v758_v55 = vpop.f32.mrf.mxu1 }
  0xa6   :  { %v759_v11 = vadd.f32 %v758_v55, %v745_v51  ;;  %v2432_v51 = vld [vmem:[%s3127_s4 + $0x1b0] sm:$0xff]  ;;  %v2423_v55 = vld [vmem:[%s3127_s4 + $0x168] sm:$0xff] }
  0xa7   :  { %1629 = vmatpush.bf16.msrb.mxu3 %v2432_v51  ;;  %1617 = vmatpush.bf16.msrb.mxu2 %v2423_v55 }
  0xa8   :  { %v771_v62 = vpop.f32.mrf.mxu2 }
  0xa9   :  { %v784_v1 = vpop.f32.mrf.mxu3  ;;  %v772_v18 = vadd.f32 %v771_v62, %v759_v11  ;;  %v2454_v62 = vld [vmem:[%s3125_s2] ss:$0 sm:$0xff]  ;;  %v2428_v11 = vld [vmem:[%s3127_s4 + $0x190] sm:$0xff] }
  0xab   :  { %v785_v31 = vadd.f32 %v784_v1, %v772_v18  ;;  %1630 = vmatpush.bf16.msrb.mxu3 %v2431_v56  ;;  %1618 = vmatpush.bf16.msrb.mxu2 %v2422_v63  ;;  %v2426_v63 = vld [vmem:[%s3127_s4 + $0x180] sm:$0xff] }
  0xac   :  { %v747_v2 = vpop.f32.mrf.mxu0 }
  0xad   :  { %v760_v58 = vpop.f32.mrf.mxu1  ;;  %v2438_v2 = vld [vmem:[%s3127_s4 + $0x1e0] sm:$0xff] }
  0xae   :  { %1644 = vmatpush.bf16.msra.mxu0 %v2438_v2 }
  0xaf   :  { %1631 = vmatpush.bf16.msrb.mxu3 %v2430_v0  ;;  %1619 = vmatpush.bf16.msrb.mxu2 %v2421_v5  ;;  %v2434_v0 = vld [vmem:[%s3127_s4 + $0x1c0] sm:$0xff] }
  0xb0   :  { %v773_v6 = vpop.f32.mrf.mxu2 }
  0xb1   :  { %v786_v7 = vpop.f32.mrf.mxu3  ;;  %v2429_v6 = vld [vmem:[%s3127_s4 + $0x198] sm:$0xff] }
  0xb2   :  { %v2437_v7 = vld [vmem:[%s3127_s4 + $0x1d8] sm:$0xff] }
  0xb3   :  { %1632 = vmatpush.bf16.msrb.mxu3 %v2429_v6  ;;  %1645 = vmatpush.bf16.msra.mxu0 %v2437_v7 }
  0xb4   :  { %1620 = vmatpush.bf16.msrb.mxu2 %v2420_v10 }
  0xb7   :  { %1633 = vmatpush.bf16.msrb.mxu3 %v2428_v11  ;;  %1646 = vmatpush.bf16.msra.mxu0 %v2436_v13 }
  0xb8   :  { %1621 = vmatpush.bf16.msrb.mxu2 %v2419_v24 }
  0xbb   :  { %1634 = vmatpush.bf16.msrb.mxu3 %v2427_v25  ;;  %1647 = vmatpush.bf16.msra.mxu0 %v2435_v34  ;;  %v2447_v25 = vld [vmem:[%s3127_s4 + $0x228] sm:$0xff] }
  0xbe   :  { %v797_v8 = vpop.f32.mrf.mxu0 }
  0xbf   :  { %v798_v41 = vadd.f32 %v797_v8, %v785_v31  ;;  %1635 = vmatpush.bf16.msrb.mxu3 %v2426_v63  ;;  %1648 = vmatpush.bf16.msra.mxu0 %v2434_v0 }
  0xc1   :  { %v810_v9 = vpop.f32.mrf.mxu1 }
  0xc2   :  { %v811_v48 = vadd.f32 %v810_v9, %v798_v41 }
  0xc5   :  { %v823_v17 = vpop.f32.mrf.mxu2 }
  0xc6   :  { %v836_v19 = vpop.f32.mrf.mxu3  ;;  %v799_v20 = vpop.f32.mrf.mxu0  ;;  %v824_v53 = vadd.f32 %v823_v17, %v811_v48  ;;  %v2418_v48 = vld [vmem:[%s3127_s4 + $0x140] sm:$0xff] }
  0xc7   :  { %1622 = vmatpush.bf16.msrb.mxu2 %v2418_v48 }
  0xc8   :  { %v837_v61 = vadd.f32 %v836_v19, %v824_v53 }
  0xc9   :  { %v812_v26 = vpop.f32.mrf.mxu1 }
  0xcd   :  { %v825_v36 = vpop.f32.mrf.mxu2 }
  0xce   :  { %v838_v43 = vpop.f32.mrf.mxu3 }
  0xde   :  { %v849_v1 = vpop.f32.mrf.mxu0 }
  0xdf   :  { %v850_v57 = vadd.f32 %v849_v1, %v837_v61 }
  0xe1   :  { %v857_v58 = vmul.f32 %v2454_v62, %v850_v57 }
  0xe3   :  { %v862_v8 = vadd.f32 %v2455_v3, %v857_v58 }
  0xe5   :  { %v863_v9 = vmax.f32 %v862_v8, 0.0 }
  0xe6   :  { %v851_v12 = vpop.f32.mrf.mxu0 }
  0xe7   :  { %v868_v14 = vrot.slane %v863_v9, 7  ;;  %v2015_v16 = vrot.slane %v863_v9, 9  ;;  %v2016_v17 = vrot.slane %v863_v9, 11  ;;  %v2017_v18 = vrot.slane %v863_v9, 13 }
  0xe9   :  { %v876_v19 = vsel %vm46_vm0, 0.0, %v868_v14  ;;  %v877_v20 = vsel %vm46_vm0, 0.0, %v2015_v16  ;;  %v878_v21 = vsel %vm46_vm0, 0.0, %v2016_v17  ;;  %v879_v22 = vsel %vm46_vm0, 0.0, %v2017_v18  ;;  %v2449_v14 = vld [vmem:[%s3127_s4 + $0x238] sm:$0xff] }
  0xea   :  { %v880_v26 = vsel %vm52_vm1, %v876_v19, 0.0  ;;  %v881_v31 = vsel %vm52_vm1, %v877_v20, 0.0  ;;  %v882_v32 = vsel %vm52_vm1, %v878_v21, 0.0  ;;  %v883_v33 = vsel %vm52_vm1, %v879_v22, 0.0 }
  0xeb   :  { %v886_v35 = vrot.slane %v880_v26, 1  ;;  %v887_v36 = vrot.slane %v882_v32, 1  ;;  %v888_v41 = vrot.slane %v880_v26, 2  ;;  %v889_v43 = vrot.slane %v882_v32, 2 }
  0xec   :  { %v892_v44 = vrot.slane %v881_v31, 1  ;;  %v893_v45 = vrot.slane %v883_v33, 1  ;;  %v894_v46 = vrot.slane %v881_v31, 2  ;;  %v3040_v15 = vrot.slane %v883_v33, 2 }
  0xed   :  { %v896_v39 = vrot.slane %v888_v41, 6  ;;  %v899_v40 = vrot.slane %v886_v35, 6  ;;  %v900_v47 = vrot.slane %v888_v41, 4  ;;  %v897_v49 = vrot.slane %v881_v31, 4 }
  0xee   :  { %v898_v50 = vrot.slane %v892_v44, 2  ;;  %v901_v51 = vrot.slane %v894_v46, 6  ;;  %v902_v52 = vrot.slane %v889_v43, 6  ;;  %v904_v53 = vrot.slane %v893_v45, 2 }
  0xef   :  { %v905_v54 = vrot.slane %v887_v36, 6  ;;  %v906_v55 = vrot.slane %v889_v43, 4  ;;  %v907_v56 = vrot.slane %v3040_v15, 6  ;;  %v908_v59 = vsel %vm91_vm3, %v2627_v37, %v888_v41  ;;  %v2445_v41 = vld [vmem:[%s3127_s4 + $0x218] sm:$0xff] }
  0xf0   :  { %v910_v60 = vsel %vm89_vm2, %v886_v35, %v896_v39  ;;  %v911_v61 = vsel %vm91_vm3, %v897_v49, %v898_v50  ;;  %v913_v62 = vsel %vm89_vm2, %v880_v26, %v899_v40  ;;  %v903_v1 = vrot.slane %v883_v33, 4 }
  0xf1   :  { %v909_v2 = vsel %vm93_vm4, %v2631_v38, %v908_v59  ;;  %v914_v57 = vsel %vm91_vm3, %v900_v47, %v894_v46  ;;  %v916_v3 = vsel %vm89_vm2, %v892_v44, %v901_v51  ;;  %v912_v58 = vsel %vm93_vm4, %v910_v60, %v911_v61 }
  0xf2   :  { %v915_v4 = vsel %vm93_vm4, %v913_v62, %v914_v57  ;;  %v918_v5 = vsel %vm91_vm3, %v2627_v37, %v889_v43  ;;  %v920_v6 = vsel %vm89_vm2, %v887_v36, %v902_v52  ;;  %928 = vst [vmem:[#allocation1] ss:$4 sm:$0xff] %v909_v2  ;;  %v921_v8 = vsel %vm91_vm3, %v903_v1, %v904_v53 }
  0xf3   :  { %v919_v7 = vsel %vm93_vm4, %v2631_v38, %v918_v5  ;;  %v923_v9 = vsel %vm89_vm2, %v882_v32, %v905_v54  ;;  %v924_v10 = vsel %vm91_vm3, %v906_v55, %v3040_v15  ;;  %930 = vst [vmem:[#allocation1 + $0x1] ss:$4 sm:$0xff] %v915_v4  ;;  %v917_v11 = vsel %vm93_vm4, %v916_v3, %v2720_v42  ;;  %v2446_v32 = vld [vmem:[%s3127_s4 + $0x220] sm:$0xff] }
  0xf4   :  { %v925_v12 = vsel %vm93_vm4, %v923_v9, %v924_v10  ;;  %v926_v37 = vsel %vm89_vm2, %v893_v45, %v907_v56  ;;  %932 = vst [vmem:[#allocation1 + $0x2] ss:$4 sm:$0xff] %v919_v7  ;;  %v922_v38 = vsel %vm93_vm4, %v920_v6, %v921_v8  ;;  %v2444_v45 = vld [vmem:[%s3127_s4 + $0x210] sm:$0xff]  ;;  %v2457_v5 = vld [vmem:[%s3129_s6] ss:$0 sm:$0xff]  ;;  %s2487_s6 = smov 2  }
  0xf5   :  { %934 = vst [vmem:[#allocation1 + $0x3] ss:$4 sm:$0xff] %v925_v12  ;;  %v927_v13 = vsel %vm93_vm4, %v926_v37, %v2720_v42  ;;  %v2448_v42 = vld [vmem:[%s3127_s4 + $0x230] sm:$0xff] }
  0xf6   :  { %936 = vst [vmem:[#allocation1 + $0x20] ss:$4 sm:$0xff] %v912_v58 }
  0xf7   :  { %938 = vst [vmem:[#allocation1 + $0x21] ss:$4 sm:$0xff] %v917_v11 }
  0xf8   :  { %940 = vst [vmem:[#allocation1 + $0x22] ss:$4 sm:$0xff] %v922_v38 }
  0xf9   :  { %942 = vst [vmem:[#allocation1 + $0x23] ss:$4 sm:$0xff] %v927_v13 }
  0xfc   :  { %v943_v16 = vld.sshfl [vmem:[#allocation1] sm:$0xff pattern:$0x73625140]  ;;  %v944_v17 = vld.sshfl [vmem:[#allocation1 + $0x8] sm:$0xff pattern:$0x73625140] }
  0xfd   :  { %v965_v18 = vpack.c.bf16 %v943_v16, %v943_v16  ;;  %v966_v19 = vpack.c.bf16 %v944_v17, %v944_v17  ;;  %v945_v20 = vld.sshfl [vmem:[#allocation1 + $0x10] sm:$0xff pattern:$0x73625140]  ;;  %v946_v21 = vld.sshfl [vmem:[#allocation1 + $0x18] sm:$0xff pattern:$0x73625140] }
  0xfe   :  { %v967_v22 = vpack.c.bf16 %v945_v20, %v945_v20  ;;  %v968_v24 = vpack.c.bf16 %v946_v21, %v946_v21  ;;  %951 = vst [vmem:[#allocation1] ss:$4 sm:$0xff] %v894_v46  ;;  %v2443_v46 = vld [vmem:[%s3127_s4 + $0x208] sm:$0xff] }
  0xff   :  { %1558 = vmatmul.bf16.vlgmr.msra.gmra.mxu1 %v965_v18  ;;  %1571 = vmatmul.bf16.vlgmr.msra.gmra.mxu2 %v966_v19  ;;  %952 = vst [vmem:[#allocation1 + $0x1] ss:$4 sm:$0xff] %v2588_v23 }
 0x100   :  { %1584 = vmatmul.bf16.vlgmr.msra.gmra.mxu3 %v967_v22  ;;  %1597 = vmatmul.bf16.vlgmr.msrb.gmra.mxu0 %v968_v24  ;;  %953 = vst [vmem:[#allocation1 + $0x2] ss:$4 sm:$0xff] %v3040_v15  ;;  %v947_v26 = vld.sshfl [vmem:[#allocation1 + $0x20] sm:$0xff pattern:$0x73625140] }
 0x101   :  { %954 = vst [vmem:[#allocation1 + $0x3] ss:$4 sm:$0xff] %v2588_v23  ;;  %1654 = vmatpush.bf16.msra.mxu1 %v2449_v14  ;;  %v948_v33 = vld.sshfl [vmem:[#allocation1 + $0x28] sm:$0xff pattern:$0x73625140]  ;;  %v969_v35 = vpack.c.bf16 %v947_v26, %v947_v26  ;;  %v2442_v15 = vld [vmem:[%s3127_s4 + $0x200] sm:$0xff] }
 0x102   :  { %v949_v23 = vld.sshfl [vmem:[#allocation1 + $0x30] sm:$0xff pattern:$0x73625140]  ;;  %v950_v34 = vld.sshfl [vmem:[#allocation1 + $0x38] sm:$0xff pattern:$0x73625140]  ;;  %v970_v36 = vpack.c.bf16 %v948_v33, %v948_v33 }
 0x103   :  { %v971_v43 = vpack.c.bf16 %v949_v23, %v949_v23  ;;  %v972_v44 = vpack.c.bf16 %v950_v34, %v950_v34 }
 0x105   :  { %1655 = vmatpush.bf16.msra.mxu1 %v2448_v42 }
 0x108   :  { %v955_v31 = vld.sshfl [vmem:[#allocation1] sm:$0xff pattern:$0x73625140] }
 0x109   :  { %1656 = vmatpush.bf16.msra.mxu1 %v2447_v25  ;;  %1677 = vst [vmem:[#allocation1] ss:$4 sm:$0xff] %v2599_v27  ;;  %v973_v39 = vpack.c.bf16 %v955_v31, %v955_v31 }
 0x10a   :  { %1679 = vst [vmem:[#allocation1 + $0x1] ss:$4 sm:$0xff] %v2604_v28 }
 0x10b   :  { %1681 = vst [vmem:[#allocation1 + $0x2] ss:$4 sm:$0xff] %v2609_v29 }
 0x10c   :  { %1683 = vst [vmem:[#allocation1 + $0x3] ss:$4 sm:$0xff] %v2614_v30 }
 0x10d   :  { %1657 = vmatpush.bf16.msra.mxu1 %v2446_v32 }
 0x10f   :  { %1610 = vmatmul.bf16.vlgmr.msrb.gmra.mxu1 %v969_v35  ;;  %1623 = vmatmul.bf16.vlgmr.msrb.gmra.mxu2 %v970_v36 }
 0x110   :  { %1636 = vmatmul.bf16.vlgmr.msrb.gmra.mxu3 %v971_v43  ;;  %1649 = vmatmul.bf16.vlgmr.msra.gmra.mxu0 %v972_v44 }
 0x111   :  { %1658 = vmatpush.bf16.msra.mxu1 %v2445_v41 }
 0x113   :  { %v1684_v49 = vld.sshfl [vmem:[#allocation1] sm:$0xff pattern:$0x73625140] }
 0x114   :  { %1688 = vst [vmem:[#allocation1] ss:$4 sm:$0xff] %v2599_v27 }
 0x115   :  { %1659 = vmatpush.bf16.msra.mxu1 %v2444_v45  ;;  %1690 = vst [vmem:[#allocation1 + $0x1] ss:$4 sm:$0xff] %v2604_v28 }
 0x116   :  { %1692 = vst [vmem:[#allocation1 + $0x2] ss:$4 sm:$0xff] %v2609_v29  ;;  %v2456_v29 = vld [vmem:[%s3128_s5] ss:$0 sm:$0xff]  ;;  %s2486_s5 = smov 32  }
 0x117   :  { %1694 = vst [vmem:[#allocation1 + $0x3] ss:$4 sm:$0xff] %v2614_v30 }
 0x119   :  { %1660 = vmatpush.bf16.msra.mxu1 %v2443_v46 }
 0x11d   :  { %1661 = vmatpush.bf16.msra.mxu1 %v2442_v15 }
 0x11e   :  { %v1695_v9 = vld.sshfl [vmem:[#allocation1] sm:$0xff pattern:$0x73625140] }
 0x120   :  { %1662 = vmatmul.bf16.vlgmr.msra.gmra.mxu1 %v973_v39 }
 0x17c   :  { %v1559_v40 = vpop.f32.mrf.mxu1 }
 0x17d   :  { %v1598_v47 = vpop.f32.mrf.mxu0 }
 0x182   :  { %v1572_v48 = vpop.f32.mrf.mxu2 }
 0x183   :  { %v1585_v50 = vpop.f32.mrf.mxu3  ;;  %v1573_v53 = vadd.f32 %v1572_v48, %v1559_v40 }
 0x184   :  { %v1561_v51 = vpop.f32.mrf.mxu1 }
 0x185   :  { %v1600_v52 = vpop.f32.mrf.mxu0  ;;  %v1586_v56 = vadd.f32 %v1585_v50, %v1573_v53 }
 0x187   :  { %v1599_v61 = vadd.f32 %v1598_v47, %v1586_v56 }
 0x18a   :  { %v1574_v54 = vpop.f32.mrf.mxu2 }
 0x18b   :  { %v1587_v55 = vpop.f32.mrf.mxu3 }
 0x18c   :  { %v1611_v59 = vpop.f32.mrf.mxu1 }
 0x18d   :  { %v1650_v60 = vpop.f32.mrf.mxu0  ;;  %v1612_v62 = vadd.f32 %v1611_v59, %v1599_v61 }
 0x192   :  { %v1624_v63 = vpop.f32.mrf.mxu2 }
 0x193   :  { %v1637_v0 = vpop.f32.mrf.mxu3  ;;  %v1625_v1 = vadd.f32 %v1624_v63, %v1612_v62 }
 0x194   :  { %v1613_v27 = vpop.f32.mrf.mxu1 }
 0x195   :  { %v1652_v2 = vpop.f32.mrf.mxu0  ;;  %v1638_v57 = vadd.f32 %v1637_v0, %v1625_v1 }
 0x197   :  { %v1651_v58 = vadd.f32 %v1650_v60, %v1638_v57 }
 0x19a   :  { %v1626_v28 = vpop.f32.mrf.mxu2 }
 0x19b   :  { %v1639_v3 = vpop.f32.mrf.mxu3 }
 0x19d   :  { %v1663_v30 = vpop.f32.mrf.mxu1 }
 0x19e   :  { %v1664_v4 = vadd.f32 %v1663_v30, %v1651_v58 }
 0x1a0   :  { %v1671_v6 = vmul.f32 %v2456_v29, %v1664_v4 }
 0x1a2   :  { %v1676_v7 = vadd.f32 %v2457_v5, %v1671_v6 }
 0x1a4   :  { %v1686_v8 = vadd.f32 %v1684_v49, %v1676_v7 }
 0x1a5   :  { %v1665_v10 = vpop.f32.mrf.mxu1 }
 0x1a6   :  { %v1687_v11 = vmax.f32 %v1686_v8, 0.0 }
 0x1a8   :  { %v1697_v12 = vadd.f32 %v1695_v9, %v1687_v11 }
 0x1aa   :  { %v1699_v37 = vrot.slane %v1697_v12, 2  ;;  %v1700_v38 = vrot.slane %v1697_v12, 4  ;;  %v1701_v13 = vrot.slane %v1697_v12, 6  ;;  %1705 = vst [vmem:[#allocation2] sm:$0x3] %v1697_v12 }
 0x1ac   :  { %1706 = vst [vmem:[#allocation2 + $0x2] sm:$0x3] %v1699_v37 }
 0x1ad   :  { %1707 = vst [vmem:[#allocation2 + $0x4] sm:$0x3] %v1700_v38 }
 0x1ae   :  { %1708 = vst [vmem:[#allocation2 + $0x6] sm:$0x3] %v1701_v13 }
 0x1af   :  { %1721 = dma.vmem_to_hbm [thread:$0]  %s1714_s8, 128, %s1716_s11, [#allocation3], %s2486_s5, %s2486_s5, %s2487_s6  }
 0x1b0   :  { %2482 = dma.done.wait [#allocation3], 128  }
 0x1b1   :  { %2483 = vsyncadd [#allocation3], 4294967168 }
 0x1b2   :  { %1726 = vsyncpa [#allocation3], 1 }

// kernel: mynet_forward.21
= control target key start
LH: loop header
LB: loop body
LE: loop exit
PB: predicated region body
PF: predicated region fallthrough
CT: control target
= control target key end

     0   :  { %v2430_v3 = vmov 0.0   ;;  %vm45_vm0 = vcmask 1040384   ;;  %vm51_vm1 = vcmask 1042432   ;;  %vm88_vm2 = vcmask 1041408   ;;  %s3071_s1 = inlined_call_operand.vmem [shape: bf16[1152,128], index: 1, kind: input, shape index: {}]   ;;  %s3072_s0 = inlined_call_operand.vmem [shape: f32[2,2,2,128], index: 0, kind: input, shape index: {}]   ;;  %s3073_s2 = inlined_call_operand.vmem [shape: f32[1,128], index: 2, kind: input, shape index: {}, may-alias: {2,5}]   ;;  %s3074_s3 = inlined_call_operand.vmem [shape: f32[1,128], index: 3, kind: input, shape index: {}, may-alias: {3,6}]   ;;  %s3075_s4 = inlined_call_operand.vmem [shape: bf16[1152,128], index: 4, kind: input, shape index: {}]   ;;  %s3076_s5 = inlined_call_operand.vmem [shape: f32[1,128], index: 5, kind: input, shape index: {}, may-alias: {2,5}]   ;;  %s3077_s6 = inlined_call_operand.vmem [shape: f32[1,128], index: 6, kind: input, shape index: {}, may-alias: {3,6}]   ;;  %s3078_s7 = inlined_call_operand.vmem [shape: f32[2,2,2,128], index: 7, kind: output, shape index: {}]  }
   0x1   :  { %v2288_v0 = vld [vmem:[%s3071_s1 + $0x38] sm:$0xff]  ;;  %v35_v4 = vrot.slane %v2430_v3, 7  ;;  %v2287_v6 = vld [vmem:[%s3071_s1 + $0x30] sm:$0xff]  ;;  %v2286_v11 = vld [vmem:[%s3071_s1 + $0x28] sm:$0xff]  ;;  %vm90_vm3 = vcmask 1045508   ;;  %vm92_vm4 = vcmask 1043456  }
   0x2   :  { %v2304_v1 = vld [vmem:[%s3071_s1 + $0xb8] sm:$0xff]  ;;  %735 = vmatpush.bf16.msra.mxu0 %v2288_v0  ;;  %v2303_v7 = vld [vmem:[%s3071_s1 + $0xb0] sm:$0xff]  ;;  %v2302_v12 = vld [vmem:[%s3071_s1 + $0xa8] sm:$0xff] }
   0x3   :  { %v2312_v2 = vld [vmem:[%s3071_s1 + $0xf8] sm:$0xff]  ;;  %761 = vmatpush.bf16.msra.mxu2 %v2304_v1  ;;  %v2311_v8 = vld [vmem:[%s3071_s1 + $0xf0] sm:$0xff]  ;;  %v46_v10 = vsel %vm45_vm0, 0.0, %v35_v4  ;;  %v2310_v13 = vld [vmem:[%s3071_s1 + $0xe8] sm:$0xff] }
   0x4   :  { %v2296_v5 = vld [vmem:[%s3071_s1 + $0x78] sm:$0xff]  ;;  %774 = vmatpush.bf16.msra.mxu3 %v2312_v2  ;;  %v2295_v9 = vld [vmem:[%s3071_s1 + $0x70] sm:$0xff]  ;;  %v2294_v14 = vld [vmem:[%s3071_s1 + $0x68] sm:$0xff]  ;;  %v2509_v15 = vsel %vm51_vm1, %v46_v10, 0.0 }
   0x5   :  { %748 = vmatpush.bf16.msra.mxu1 %v2296_v5  ;;  %v2285_v16 = vld [vmem:[%s3071_s1 + $0x20] sm:$0xff]  ;;  %v60_v18 = vrot.slane %v2509_v15, 1  ;;  %v2284_v21 = vld [vmem:[%s3071_s1 + $0x18] sm:$0xff]  ;;  %v2531_v23 = vrot.slane %v2509_v15, 2  ;;  %v2283_v35 = vld [vmem:[%s3071_s1 + $0x10] sm:$0xff]  ;;  %v80_v39 = vrot.slane %v2509_v15, 4 }
   0x6   :  { %736 = vmatpush.bf16.msra.mxu0 %v2287_v6  ;;  %v2301_v17 = vld [vmem:[%s3071_s1 + $0xa0] sm:$0xff]  ;;  %v2300_v22 = vld [vmem:[%s3071_s1 + $0x98] sm:$0xff]  ;;  %v2299_v36 = vld [vmem:[%s3071_s1 + $0x90] sm:$0xff] }
   0x7   :  { %762 = vmatpush.bf16.msra.mxu2 %v2303_v7  ;;  %v2309_v19 = vld [vmem:[%s3071_s1 + $0xe0] sm:$0xff]  ;;  %v72_v24 = vrot.slane %v60_v18, 6  ;;  %v2308_v25 = vld [vmem:[%s3071_s1 + $0xd8] sm:$0xff]  ;;  %v2570_v37 = vrot.slane %v2531_v23, 4  ;;  %v2577_v40 = vrot.slane %v60_v18, 2  ;;  %v2307_v41 = vld [vmem:[%s3071_s1 + $0xd0] sm:$0xff] }
   0x8   :  { %775 = vmatpush.bf16.msra.mxu3 %v2311_v8  ;;  %v2293_v20 = vld [vmem:[%s3071_s1 + $0x60] sm:$0xff]  ;;  %v2292_v26 = vld [vmem:[%s3071_s1 + $0x58] sm:$0xff]  ;;  %v2291_v42 = vld [vmem:[%s3071_s1 + $0x50] sm:$0xff] }
   0x9   :  { %749 = vmatpush.bf16.msra.mxu1 %v2295_v9  ;;  %v2542_v27 = vld [vmem:[%s3072_s0] sm:$0x3]  ;;  %v2547_v28 = vld [vmem:[%s3072_s0 + $0x2] sm:$0x3]  ;;  %v2552_v29 = vld [vmem:[%s3072_s0 + $0x4] sm:$0x3]  ;;  %v2574_v38 = vsel %vm88_vm2, %v2509_v15, %v72_v24 }
   0xa   :  { %737 = vmatpush.bf16.msra.mxu0 %v2286_v11  ;;  %v2557_v30 = vld [vmem:[%s3072_s0 + $0x6] sm:$0x3]  ;;  %v36_v31 = vrot.slane %v2542_v27, 7  ;;  %v37_v32 = vrot.slane %v2547_v28, 7  ;;  %v38_v33 = vrot.slane %v2552_v29, 7  ;;  %v2282_v55 = vld [vmem:[%s3071_s1 + $0x8] sm:$0xff] }
   0xb   :  { %763 = vmatpush.bf16.msra.mxu2 %v2302_v12  ;;  %v39_v34 = vrot.slane %v2557_v30, 7  ;;  %v2298_v56 = vld [vmem:[%s3071_s1 + $0x88] sm:$0xff]  ;;  %v2281_v7 = vld [vmem:[%s3071_s1] sm:$0xff]  ;;  %v2319_v15 = vld [vmem:[%s3071_s1 + $0x130] sm:$0xff] }
   0xc   :  { %776 = vmatpush.bf16.msra.mxu3 %v2310_v13  ;;  %v47_v43 = vsel %vm45_vm0, 0.0, %v36_v31  ;;  %v48_v44 = vsel %vm45_vm0, 0.0, %v37_v32  ;;  %v49_v45 = vsel %vm45_vm0, 0.0, %v38_v33  ;;  %v2306_v61 = vld [vmem:[%s3071_s1 + $0xc8] sm:$0xff]  ;;  %v2297_v12 = vld [vmem:[%s3071_s1 + $0x80] sm:$0xff]  ;;  %v2320_v13 = vld [vmem:[%s3071_s1 + $0x138] sm:$0xff] }
   0xd   :  { %750 = vmatpush.bf16.msra.mxu1 %v2294_v14  ;;  %v50_v46 = vsel %vm45_vm0, 0.0, %v39_v34  ;;  %v53_v47 = vsel %vm51_vm1, %v47_v43, 0.0  ;;  %v54_v48 = vsel %vm51_vm1, %v48_v44, 0.0  ;;  %v55_v49 = vsel %vm51_vm1, %v49_v45, 0.0  ;;  %v2290_v62 = vld [vmem:[%s3071_s1 + $0x48] sm:$0xff]  ;;  %v2336_v14 = vld [vmem:[%s3071_s1 + $0x1b8] sm:$0xff] }
   0xe   :  { %738 = vmatpush.bf16.msra.mxu0 %v2285_v16  ;;  %v2593_v50 = vsel %vm51_vm1, %v50_v46, 0.0  ;;  %v61_v51 = vrot.slane %v53_v47, 1  ;;  %v62_v52 = vrot.slane %v55_v49, 1  ;;  %v64_v53 = vrot.slane %v53_v47, 2  ;;  %v2344_v34 = vld [vmem:[%s3071_s1 + $0x1f8] sm:$0xff] }
   0xf   :  { %764 = vmatpush.bf16.msra.mxu2 %v2301_v17  ;;  %v65_v54 = vrot.slane %v55_v49, 2  ;;  %v2601_v57 = vrot.slane %v54_v48, 2  ;;  %v2604_v58 = vrot.slane %v2593_v50, 2  ;;  %v68_v59 = vrot.slane %v54_v48, 1 }
  0x10   :  { %777 = vmatpush.bf16.msra.mxu3 %v2309_v19  ;;  %v69_v60 = vrot.slane %v2593_v50, 1  ;;  %v77_v63 = vrot.slane %v61_v51, 6  ;;  %v78_v0 = vrot.slane %v64_v53, 4  ;;  %v85_v1 = vrot.slane %v62_v52, 6  ;;  %v2305_v19 = vld [vmem:[%s3071_s1 + $0xc0] sm:$0xff] }
  0x11   :  { %751 = vmatpush.bf16.msra.mxu1 %v2293_v20  ;;  %v86_v2 = vrot.slane %v65_v54, 4  ;;  %v91_v3 = vsel %vm90_vm3, %v2570_v37, %v64_v53  ;;  %v103_v4 = vsel %vm90_vm3, %v2570_v37, %v65_v54  ;;  %v74_v5 = vrot.slane %v64_v53, 6  ;;  %v2342_v53 = vld [vmem:[%s3071_s1 + $0x1e8] sm:$0xff] }
  0x12   :  { %739 = vmatpush.bf16.msra.mxu0 %v2284_v21  ;;  %v75_v6 = vrot.slane %v54_v48, 4  ;;  %v93_v8 = vsel %vm92_vm4, %v2574_v38, %v91_v3  ;;  %v97_v9 = vsel %vm88_vm2, %v53_v47, %v77_v63  ;;  %v98_v10 = vsel %vm90_vm3, %v78_v0, %v2601_v57  ;;  %v2325_v3 = vld [vmem:[%s3071_s1 + $0x160] sm:$0xff] }
  0x13   :  { %765 = vmatpush.bf16.msra.mxu2 %v2300_v22  ;;  %v104_v11 = vsel %vm92_vm4, %v2574_v38, %v103_v4  ;;  %v99_v16 = vsel %vm92_vm4, %v97_v9, %v98_v10  ;;  %v108_v17 = vsel %vm88_vm2, %v55_v49, %v85_v1  ;;  %v109_v18 = vsel %vm90_vm3, %v86_v2, %v2604_v58  ;;  %v2343_v49 = vld [vmem:[%s3071_s1 + $0x1f0] sm:$0xff]  ;;  %v2317_v1 = vld [vmem:[%s3071_s1 + $0x120] sm:$0xff]  ;;  %v2332_v4 = vld [vmem:[%s3071_s1 + $0x198] sm:$0xff] }
  0x14   :  { %778 = vmatpush.bf16.msra.mxu3 %v2308_v25  ;;  %113 = vst [vmem:[#allocation1] ss:$4 sm:$0xff] %v93_v8  ;;  %v110_v20 = vsel %vm92_vm4, %v108_v17, %v109_v18  ;;  %v76_v21 = vrot.slane %v68_v59, 2  ;;  %v79_v22 = vrot.slane %v2601_v57, 6  ;;  %v82_v24 = vrot.slane %v65_v54, 6  ;;  %v2289_v25 = vld [vmem:[%s3071_s1 + $0x40] sm:$0xff] }
  0x15   :  { %752 = vmatpush.bf16.msra.mxu1 %v2292_v26  ;;  %115 = vst [vmem:[#allocation1 + $0x1] ss:$4 sm:$0xff] %v99_v16  ;;  %v83_v26 = vrot.slane %v2593_v50, 4  ;;  %v84_v31 = vrot.slane %v69_v60, 2  ;;  %v87_v32 = vrot.slane %v2604_v58, 6  ;;  %v94_v33 = vsel %vm88_vm2, %v61_v51, %v74_v5  ;;  %v2327_v50 = vld [vmem:[%s3071_s1 + $0x170] sm:$0xff] }
  0x16   :  { %740 = vmatpush.bf16.msra.mxu0 %v2283_v35  ;;  %117 = vst [vmem:[#allocation1 + $0x2] ss:$4 sm:$0xff] %v104_v11  ;;  %v2328_v35 = vld [vmem:[%s3071_s1 + $0x178] sm:$0xff]  ;;  %v105_v43 = vsel %vm88_vm2, %v62_v52, %v82_v24  ;;  %v2318_v51 = vld [vmem:[%s3071_s1 + $0x128] sm:$0xff]  ;;  %v2333_v2 = vld [vmem:[%s3071_s1 + $0x1a0] sm:$0xff] }
  0x17   :  { %766 = vmatpush.bf16.msra.mxu2 %v2299_v36  ;;  %119 = vst [vmem:[#allocation1 + $0x3] ss:$4 sm:$0xff] %v110_v20  ;;  %v95_v36 = vsel %vm90_vm3, %v75_v6, %v76_v21  ;;  %v106_v46 = vsel %vm90_vm3, %v83_v26, %v84_v31  ;;  %v111_v47 = vsel %vm88_vm2, %v69_v60, %v87_v32  ;;  %v2334_v52 = vld [vmem:[%s3071_s1 + $0x1a8] sm:$0xff]  ;;  %v2340_v5 = vld [vmem:[%s3071_s1 + $0x1d8] sm:$0xff]  ;;  %v2331_v8 = vld [vmem:[%s3071_s1 + $0x190] sm:$0xff] }
  0x18   :  { %779 = vmatpush.bf16.msra.mxu3 %v2307_v41  ;;  %v100_v41 = vsel %vm88_vm2, %v68_v59, %v79_v22  ;;  %v96_v44 = vsel %vm92_vm4, %v94_v33, %v95_v36  ;;  %v2326_v54 = vld [vmem:[%s3071_s1 + $0x168] sm:$0xff]  ;;  %v2324_v6 = vld [vmem:[%s3071_s1 + $0x158] sm:$0xff]  ;;  %v2339_v9 = vld [vmem:[%s3071_s1 + $0x1d0] sm:$0xff] }
  0x19   :  { %753 = vmatpush.bf16.msra.mxu1 %v2291_v42  ;;  %v2663_v42 = vsel %vm90_vm3, %v80_v39, %v2577_v40  ;;  %v2335_v39 = vld [vmem:[%s3071_s1 + $0x1b0] sm:$0xff]  ;;  %v107_v40 = vsel %vm92_vm4, %v105_v43, %v106_v46  ;;  %121 = vst [vmem:[#allocation1 + $0x20] ss:$4 sm:$0xff] %v96_v44  ;;  %v2314_v11 = vld [vmem:[%s3071_s1 + $0x108] sm:$0xff]  ;;  %v2313_v16 = vld [vmem:[%s3071_s1 + $0x100] sm:$0xff] }
  0x1a   :  { %741 = vmatpush.bf16.msra.mxu0 %v2282_v55  ;;  %v102_v45 = vsel %vm92_vm4, %v100_v41, %v2663_v42  ;;  %v112_v48 = vsel %vm92_vm4, %v111_v47, %v2663_v42  ;;  %125 = vst [vmem:[#allocation1 + $0x22] ss:$4 sm:$0xff] %v107_v40  ;;  %v2323_v10 = vld [vmem:[%s3071_s1 + $0x150] sm:$0xff]  ;;  %v2329_v17 = vld [vmem:[%s3071_s1 + $0x180] sm:$0xff]  ;;  %v2352_v20 = vld [vmem:[%s3071_s1 + $0x238] sm:$0xff] }
  0x1b   :  { %767 = vmatpush.bf16.msra.mxu2 %v2298_v56  ;;  %123 = vst [vmem:[#allocation1 + $0x21] ss:$4 sm:$0xff] %v102_v45  ;;  %v2337_v21 = vld [vmem:[%s3071_s1 + $0x1c0] sm:$0xff]  ;;  %v2351_v32 = vld [vmem:[%s3071_s1 + $0x230] sm:$0xff]  ;;  %v2348_v41 = vld [vmem:[%s3071_s1 + $0x218] sm:$0xff] }
  0x1c   :  { %780 = vmatpush.bf16.msra.mxu3 %v2306_v61  ;;  %127 = vst [vmem:[#allocation1 + $0x23] ss:$4 sm:$0xff] %v112_v48  ;;  %v2321_v22 = vld [vmem:[%s3071_s1 + $0x140] sm:$0xff]  ;;  %v2347_v43 = vld [vmem:[%s3071_s1 + $0x210] sm:$0xff]  ;;  %v2346_v44 = vld [vmem:[%s3071_s1 + $0x208] sm:$0xff] }
  0x1d   :  { %754 = vmatpush.bf16.msra.mxu1 %v2290_v62  ;;  %v2349_v36 = vld [vmem:[%s3071_s1 + $0x220] sm:$0xff]  ;;  %v2359_v40 = vld [vmem:[%s3075_s4 + $0x30] sm:$0xff]  ;;  %v2358_v47 = vld [vmem:[%s3075_s4 + $0x28] sm:$0xff] }
  0x1e   :  { %742 = vmatpush.bf16.msra.mxu0 %v2281_v7  ;;  %v130_v55 = vld.sshfl [vmem:[#allocation1 + $0x10] sm:$0xff pattern:$0x73625140]  ;;  %v128_v56 = vld.sshfl [vmem:[#allocation1] sm:$0xff pattern:$0x73625140] }
  0x1f   :  { %768 = vmatpush.bf16.msra.mxu2 %v2297_v12  ;;  %v152_v59 = vpack.c.bf16 %v130_v55, %v130_v55  ;;  %v150_v60 = vpack.c.bf16 %v128_v56, %v128_v56  ;;  %v131_v61 = vld.sshfl [vmem:[#allocation1 + $0x18] sm:$0xff pattern:$0x73625140]  ;;  %v129_v62 = vld.sshfl [vmem:[#allocation1 + $0x8] sm:$0xff pattern:$0x73625140] }
  0x20   :  { %781 = vmatpush.bf16.msra.mxu3 %v2305_v19  ;;  %v153_v63 = vpack.c.bf16 %v131_v61, %v131_v61  ;;  %v151_v0 = vpack.c.bf16 %v129_v62, %v129_v62  ;;  %136 = vst [vmem:[#allocation1] ss:$4 sm:$0xff] %v2601_v57  ;;  %v2341_v57 = vld [vmem:[%s3071_s1 + $0x1e0] sm:$0xff]  ;;  %v2315_v7 = vld [vmem:[%s3071_s1 + $0x110] sm:$0xff]  ;;  %v2330_v12 = vld [vmem:[%s3071_s1 + $0x188] sm:$0xff] }
  0x21   :  { %755 = vmatpush.bf16.msra.mxu1 %v2289_v25  ;;  %137 = vst [vmem:[#allocation1 + $0x1] ss:$4 sm:$0xff] %v2531_v23  ;;  %743 = vmatmul.bf16.vlgmr.msra.gmra.mxu0 %v150_v60  ;;  %v2345_v45 = vld [vmem:[%s3071_s1 + $0x200] sm:$0xff]  ;;  %v2383_v56 = vld [vmem:[%s3075_s4 + $0xf0] sm:$0xff]  ;;  %v2366_v60 = vld [vmem:[%s3075_s4 + $0x68] sm:$0xff] }
  0x22   :  { %787 = vmatpush.bf16.msrb.mxu0 %v2320_v13  ;;  %769 = vmatmul.bf16.vlgmr.msra.gmra.mxu2 %v152_v59  ;;  %138 = vst [vmem:[#allocation1 + $0x2] ss:$4 sm:$0xff] %v2604_v58  ;;  %v2316_v58 = vld [vmem:[%s3071_s1 + $0x118] sm:$0xff]  ;;  %v2338_v13 = vld [vmem:[%s3071_s1 + $0x1c8] sm:$0xff]  ;;  %v2357_v48 = vld [vmem:[%s3075_s4 + $0x20] sm:$0xff] }
  0x23   :  { %813 = vmatpush.bf16.msrb.mxu2 %v2336_v14  ;;  %139 = vst [vmem:[#allocation1 + $0x3] ss:$4 sm:$0xff] %v2531_v23  ;;  %782 = vmatmul.bf16.vlgmr.msra.gmra.mxu3 %v153_v63  ;;  %v2322_v14 = vld [vmem:[%s3071_s1 + $0x148] sm:$0xff]  ;;  %v134_v18 = vld.sshfl [vmem:[#allocation1 + $0x30] sm:$0xff pattern:$0x73625140] }
  0x24   :  { %826 = vmatpush.bf16.msrb.mxu3 %v2344_v34  ;;  %756 = vmatmul.bf16.vlgmr.msra.gmra.mxu1 %v151_v0  ;;  %v132_v19 = vld.sshfl [vmem:[#allocation1 + $0x20] sm:$0xff pattern:$0x73625140]  ;;  %v135_v24 = vld.sshfl [vmem:[#allocation1 + $0x38] sm:$0xff pattern:$0x73625140]  ;;  %v156_v25 = vpack.c.bf16 %v134_v18, %v134_v18 }
  0x25   :  { %800 = vmatpush.bf16.msrb.mxu1 %v2328_v35  ;;  %v154_v26 = vpack.c.bf16 %v132_v19, %v132_v19  ;;  %v133_v31 = vld.sshfl [vmem:[#allocation1 + $0x28] sm:$0xff pattern:$0x73625140]  ;;  %v157_v33 = vpack.c.bf16 %v135_v24, %v135_v24  ;;  %v2356_v59 = vld [vmem:[%s3075_s4 + $0x18] sm:$0xff]  ;;  %v2355_v0 = vld [vmem:[%s3075_s4 + $0x10] sm:$0xff] }
  0x26   :  { %788 = vmatpush.bf16.msrb.mxu0 %v2319_v15  ;;  %v155_v34 = vpack.c.bf16 %v133_v31, %v133_v31  ;;  %v2350_v35 = vld [vmem:[%s3071_s1 + $0x228] sm:$0xff]  ;;  %v2379_v24 = vld [vmem:[%s3075_s4 + $0xd0] sm:$0xff] }
  0x27   :  { %814 = vmatpush.bf16.msrb.mxu2 %v2335_v39  ;;  %v2360_v39 = vld [vmem:[%s3075_s4 + $0x38] sm:$0xff]  ;;  %v2374_v61 = vld [vmem:[%s3075_s4 + $0xa8] sm:$0xff] }
  0x28   :  { %827 = vmatpush.bf16.msrb.mxu3 %v2343_v49  ;;  %v2368_v49 = vld [vmem:[%s3075_s4 + $0x78] sm:$0xff]  ;;  %v2382_v63 = vld [vmem:[%s3075_s4 + $0xe8] sm:$0xff] }
  0x29   :  { %801 = vmatpush.bf16.msrb.mxu1 %v2327_v50  ;;  %v2376_v50 = vld [vmem:[%s3075_s4 + $0xb8] sm:$0xff] }
  0x2a   :  { %789 = vmatpush.bf16.msrb.mxu0 %v2318_v51  ;;  %v140_v46 = vld.sshfl [vmem:[#allocation1] sm:$0xff pattern:$0x73625140] }
  0x2b   :  { %815 = vmatpush.bf16.msrb.mxu2 %v2334_v52  ;;  %v158_v15 = vpack.c.bf16 %v140_v46, %v140_v46  ;;  %v2384_v52 = vld [vmem:[%s3075_s4 + $0xf8] sm:$0xff]  ;;  %v2377_v46 = vld [vmem:[%s3075_s4 + $0xc0] sm:$0xff] }
  0x2c   :  { %828 = vmatpush.bf16.msrb.mxu3 %v2342_v53  ;;  %v2367_v53 = vld [vmem:[%s3075_s4 + $0x70] sm:$0xff] }
  0x2d   :  { %802 = vmatpush.bf16.msrb.mxu1 %v2326_v54  ;;  %v2375_v54 = vld [vmem:[%s3075_s4 + $0xb0] sm:$0xff] }
  0x2e   :  { %790 = vmatpush.bf16.msrb.mxu0 %v2317_v1 }
  0x2f   :  { %816 = vmatpush.bf16.msrb.mxu2 %v2333_v2 }
  0x30   :  { %829 = vmatpush.bf16.msrb.mxu3 %v2341_v57  ;;  %v2365_v57 = vld [vmem:[%s3075_s4 + $0x60] sm:$0xff] }
  0x31   :  { %803 = vmatpush.bf16.msrb.mxu1 %v2325_v3  ;;  %v2373_v3 = vld [vmem:[%s3075_s4 + $0xa0] sm:$0xff] }
  0x32   :  { %791 = vmatpush.bf16.msrb.mxu0 %v2316_v58 }
  0x33   :  { %817 = vmatpush.bf16.msrb.mxu2 %v2332_v4  ;;  %v2381_v4 = vld [vmem:[%s3075_s4 + $0xe0] sm:$0xff] }
  0x34   :  { %830 = vmatpush.bf16.msrb.mxu3 %v2340_v5  ;;  %v2354_v5 = vld [vmem:[%s3075_s4 + $0x8] sm:$0xff] }
  0x35   :  { %804 = vmatpush.bf16.msrb.mxu1 %v2324_v6 }
  0x36   :  { %792 = vmatpush.bf16.msrb.mxu0 %v2315_v7 }
  0x37   :  { %818 = vmatpush.bf16.msrb.mxu2 %v2331_v8 }
  0x38   :  { %831 = vmatpush.bf16.msrb.mxu3 %v2339_v9 }
  0x39   :  { %805 = vmatpush.bf16.msrb.mxu1 %v2323_v10  ;;  %v2353_v10 = vld [vmem:[%s3075_s4] sm:$0xff] }
  0x3a   :  { %793 = vmatpush.bf16.msrb.mxu0 %v2314_v11 }
  0x3b   :  { %819 = vmatpush.bf16.msrb.mxu2 %v2330_v12  ;;  %v2364_v12 = vld [vmem:[%s3075_s4 + $0x58] sm:$0xff] }
  0x3c   :  { %832 = vmatpush.bf16.msrb.mxu3 %v2338_v13  ;;  %v2372_v13 = vld [vmem:[%s3075_s4 + $0x98] sm:$0xff] }
  0x3d   :  { %806 = vmatpush.bf16.msrb.mxu1 %v2322_v14  ;;  %v2380_v14 = vld [vmem:[%s3075_s4 + $0xd8] sm:$0xff] }
  0x3e   :  { %794 = vmatpush.bf16.msrb.mxu0 %v2313_v16  ;;  %v2392_v16 = vld [vmem:[%s3075_s4 + $0x138] sm:$0xff] }
  0x3f   :  { %820 = vmatpush.bf16.msrb.mxu2 %v2329_v17 }
  0x40   :  { %833 = vmatpush.bf16.msrb.mxu3 %v2337_v21  ;;  %v2363_v21 = vld [vmem:[%s3075_s4 + $0x50] sm:$0xff] }
  0x41   :  { %807 = vmatpush.bf16.msrb.mxu1 %v2321_v22  ;;  %795 = vmatmul.bf16.vlgmr.msrb.gmra.mxu0 %v154_v26  ;;  %v2371_v22 = vld [vmem:[%s3075_s4 + $0x90] sm:$0xff] }
  0x42   :  { %839 = vmatpush.bf16.msra.mxu0 %v2352_v20  ;;  %821 = vmatmul.bf16.vlgmr.msrb.gmra.mxu2 %v156_v25  ;;  %v2391_v25 = vld [vmem:[%s3075_s4 + $0x130] sm:$0xff] }
  0x43   :  { %834 = vmatmul.bf16.vlgmr.msrb.gmra.mxu3 %v157_v33  ;;  %1562 = vmatpush.bf16.msra.mxu2 %v2368_v49  ;;  %v2370_v33 = vld [vmem:[%s3075_s4 + $0x88] sm:$0xff]  ;;  %v2388_v49 = vld [vmem:[%s3075_s4 + $0x118] sm:$0xff] }
  0x44   :  { %808 = vmatmul.bf16.vlgmr.msrb.gmra.mxu1 %v155_v34  ;;  %1575 = vmatpush.bf16.msra.mxu3 %v2376_v50  ;;  %v2378_v34 = vld [vmem:[%s3075_s4 + $0xc8] sm:$0xff]  ;;  %v2399_v50 = vld [vmem:[%s3075_s4 + $0x170] sm:$0xff] }
  0x45   :  { %1549 = vmatpush.bf16.msra.mxu1 %v2360_v39  ;;  %v2400_v39 = vld [vmem:[%s3075_s4 + $0x178] sm:$0xff] }
  0x46   :  { %840 = vmatpush.bf16.msra.mxu0 %v2351_v32  ;;  %v2362_v32 = vld [vmem:[%s3075_s4 + $0x48] sm:$0xff] }
  0x47   :  { %1563 = vmatpush.bf16.msra.mxu2 %v2367_v53 }
  0x48   :  { %1576 = vmatpush.bf16.msra.mxu3 %v2375_v54  ;;  %v2387_v54 = vld [vmem:[%s3075_s4 + $0x110] sm:$0xff] }
  0x49   :  { %1550 = vmatpush.bf16.msra.mxu1 %v2359_v40  ;;  %v2408_v40 = vld [vmem:[%s3075_s4 + $0x1b8] sm:$0xff] }
  0x4a   :  { %841 = vmatpush.bf16.msra.mxu0 %v2350_v35  ;;  %v2390_v35 = vld [vmem:[%s3075_s4 + $0x128] sm:$0xff] }
  0x4b   :  { %1564 = vmatpush.bf16.msra.mxu2 %v2366_v60  ;;  %v2386_v60 = vld [vmem:[%s3075_s4 + $0x108] sm:$0xff] }
  0x4c   :  { %1577 = vmatpush.bf16.msra.mxu3 %v2374_v61 }
  0x4d   :  { %1551 = vmatpush.bf16.msra.mxu1 %v2358_v47  ;;  %v2416_v47 = vld [vmem:[%s3075_s4 + $0x1f8] sm:$0xff] }
  0x4e   :  { %842 = vmatpush.bf16.msra.mxu0 %v2349_v36 }
  0x4f   :  { %1565 = vmatpush.bf16.msra.mxu2 %v2365_v57 }
  0x50   :  { %1578 = vmatpush.bf16.msra.mxu3 %v2373_v3  ;;  %v2427_v3 = vld [vmem:[%s3074_s3] ss:$0 sm:$0xff] }
  0x51   :  { %1552 = vmatpush.bf16.msra.mxu1 %v2357_v48 }
  0x52   :  { %843 = vmatpush.bf16.msra.mxu0 %v2348_v41 }
  0x53   :  { %1566 = vmatpush.bf16.msra.mxu2 %v2364_v12 }
  0x54   :  { %1579 = vmatpush.bf16.msra.mxu3 %v2372_v13  ;;  %v2411_v13 = vld [vmem:[%s3075_s4 + $0x1d0] sm:$0xff] }
  0x55   :  { %1553 = vmatpush.bf16.msra.mxu1 %v2356_v59  ;;  %v2414_v59 = vld [vmem:[%s3075_s4 + $0x1e8] sm:$0xff] }
  0x56   :  { %844 = vmatpush.bf16.msra.mxu0 %v2347_v43 }
  0x57   :  { %1567 = vmatpush.bf16.msra.mxu2 %v2363_v21 }
  0x58   :  { %1580 = vmatpush.bf16.msra.mxu3 %v2371_v22 }
  0x59   :  { %1554 = vmatpush.bf16.msra.mxu1 %v2355_v0  ;;  %v2405_v0 = vld [vmem:[%s3075_s4 + $0x1a0] sm:$0xff] }
  0x5a   :  { %845 = vmatpush.bf16.msra.mxu0 %v2346_v44  ;;  %v2361_v44 = vld [vmem:[%s3075_s4 + $0x40] sm:$0xff] }
  0x5b   :  { %1568 = vmatpush.bf16.msra.mxu2 %v2362_v32 }
  0x5c   :  { %1581 = vmatpush.bf16.msra.mxu3 %v2370_v33 }
  0x5d   :  { %1555 = vmatpush.bf16.msra.mxu1 %v2354_v5  ;;  %v2396_v5 = vld [vmem:[%s3075_s4 + $0x158] sm:$0xff] }
  0x5e   :  { %846 = vmatpush.bf16.msra.mxu0 %v2345_v45  ;;  %v2369_v45 = vld [vmem:[%s3075_s4 + $0x80] sm:$0xff] }
  0x5f   :  { %1569 = vmatpush.bf16.msra.mxu2 %v2361_v44 }
  0x60   :  { %1582 = vmatpush.bf16.msra.mxu3 %v2369_v45 }
  0x61   :  { %847 = vmatmul.bf16.vlgmr.msra.gmra.mxu0 %v158_v15  ;;  %1556 = vmatpush.bf16.msra.mxu1 %v2353_v10  ;;  %v2389_v15 = vld [vmem:[%s3075_s4 + $0x120] sm:$0xff]  ;;  %v2395_v10 = vld [vmem:[%s3075_s4 + $0x150] sm:$0xff] }
  0x62   :  { %1588 = vmatpush.bf16.msrb.mxu0 %v2384_v52  ;;  %v2415_v52 = vld [vmem:[%s3075_s4 + $0x1f0] sm:$0xff] }
  0x63   :  { %1614 = vmatpush.bf16.msrb.mxu2 %v2400_v39 }
  0x64   :  { %1627 = vmatpush.bf16.msrb.mxu3 %v2408_v40 }
  0x65   :  { %1601 = vmatpush.bf16.msrb.mxu1 %v2392_v16 }
  0x66   :  { %1589 = vmatpush.bf16.msrb.mxu0 %v2383_v56  ;;  %v2406_v56 = vld [vmem:[%s3075_s4 + $0x1a8] sm:$0xff] }
  0x67   :  { %1615 = vmatpush.bf16.msrb.mxu2 %v2399_v50 }
  0x69   :  { %1602 = vmatpush.bf16.msrb.mxu1 %v2391_v25  ;;  %v2402_v25 = vld [vmem:[%s3075_s4 + $0x188] sm:$0xff] }
  0x6a   :  { %1590 = vmatpush.bf16.msrb.mxu0 %v2382_v63  ;;  %v2397_v63 = vld [vmem:[%s3075_s4 + $0x160] sm:$0xff] }
  0x6d   :  { %1603 = vmatpush.bf16.msrb.mxu1 %v2390_v35 }
  0x6e   :  { %1591 = vmatpush.bf16.msrb.mxu0 %v2381_v4  ;;  %v2385_v4 = vld [vmem:[%s3075_s4 + $0x100] sm:$0xff] }
  0x71   :  { %1604 = vmatpush.bf16.msrb.mxu1 %v2389_v15 }
  0x72   :  { %1592 = vmatpush.bf16.msrb.mxu0 %v2380_v14 }
  0x75   :  { %1605 = vmatpush.bf16.msrb.mxu1 %v2388_v49 }
  0x76   :  { %1593 = vmatpush.bf16.msrb.mxu0 %v2379_v24  ;;  %v2394_v24 = vld [vmem:[%s3075_s4 + $0x148] sm:$0xff] }
  0x79   :  { %1606 = vmatpush.bf16.msrb.mxu1 %v2387_v54 }
  0x7a   :  { %1594 = vmatpush.bf16.msrb.mxu0 %v2378_v34  ;;  %v2410_v34 = vld [vmem:[%s3075_s4 + $0x1c8] sm:$0xff] }
  0x7d   :  { %1607 = vmatpush.bf16.msrb.mxu1 %v2386_v60 }
  0x7e   :  { %1595 = vmatpush.bf16.msrb.mxu0 %v2377_v46 }
  0x81   :  { %1608 = vmatpush.bf16.msrb.mxu1 %v2385_v4 }
  0x82   :  { %1640 = vmatpush.bf16.msra.mxu0 %v2416_v47 }
  0x86   :  { %1641 = vmatpush.bf16.msra.mxu0 %v2415_v52 }
  0x8a   :  { %1642 = vmatpush.bf16.msra.mxu0 %v2414_v59 }
  0x9e   :  { %v744_v51 = vpop.f32.mrf.mxu0 }
  0xa1   :  { %v757_v55 = vpop.f32.mrf.mxu1 }
  0xa2   :  { %v758_v11 = vadd.f32 %v757_v55, %v744_v51  ;;  %v2407_v51 = vld [vmem:[%s3075_s4 + $0x1b0] sm:$0xff]  ;;  %v2398_v55 = vld [vmem:[%s3075_s4 + $0x168] sm:$0xff] }
  0xa3   :  { %1628 = vmatpush.bf16.msrb.mxu3 %v2407_v51  ;;  %1616 = vmatpush.bf16.msrb.mxu2 %v2398_v55 }
  0xa5   :  { %v770_v62 = vpop.f32.mrf.mxu2 }
  0xa6   :  { %v783_v1 = vpop.f32.mrf.mxu3  ;;  %v746_v2 = vpop.f32.mrf.mxu0  ;;  %v771_v18 = vadd.f32 %v770_v62, %v758_v11  ;;  %v2426_v62 = vld [vmem:[%s3073_s2] ss:$0 sm:$0xff]  ;;  %v2403_v11 = vld [vmem:[%s3075_s4 + $0x190] sm:$0xff] }
  0xa7   :  { %1629 = vmatpush.bf16.msrb.mxu3 %v2406_v56  ;;  %v2413_v2 = vld [vmem:[%s3075_s4 + $0x1e0] sm:$0xff]  ;;  %1617 = vmatpush.bf16.msrb.mxu2 %v2397_v63 }
  0xa8   :  { %v784_v31 = vadd.f32 %v783_v1, %v771_v18  ;;  %1643 = vmatpush.bf16.msra.mxu0 %v2413_v2  ;;  %v2401_v63 = vld [vmem:[%s3075_s4 + $0x180] sm:$0xff] }
  0xa9   :  { %v759_v58 = vpop.f32.mrf.mxu1 }
  0xab   :  { %1630 = vmatpush.bf16.msrb.mxu3 %v2405_v0  ;;  %1618 = vmatpush.bf16.msrb.mxu2 %v2396_v5  ;;  %v2409_v0 = vld [vmem:[%s3075_s4 + $0x1c0] sm:$0xff] }
  0xad   :  { %v772_v6 = vpop.f32.mrf.mxu2 }
  0xae   :  { %v785_v7 = vpop.f32.mrf.mxu3  ;;  %v2404_v6 = vld [vmem:[%s3075_s4 + $0x198] sm:$0xff] }
  0xaf   :  { %v2412_v7 = vld [vmem:[%s3075_s4 + $0x1d8] sm:$0xff]  ;;  %1631 = vmatpush.bf16.msrb.mxu3 %v2404_v6  ;;  %1619 = vmatpush.bf16.msrb.mxu2 %v2395_v10 }
  0xb0   :  { %1644 = vmatpush.bf16.msra.mxu0 %v2412_v7 }
  0xb3   :  { %1632 = vmatpush.bf16.msrb.mxu3 %v2403_v11  ;;  %1620 = vmatpush.bf16.msrb.mxu2 %v2394_v24 }
  0xb4   :  { %1645 = vmatpush.bf16.msra.mxu0 %v2411_v13 }
  0xb7   :  { %1633 = vmatpush.bf16.msrb.mxu3 %v2402_v25  ;;  %v2422_v25 = vld [vmem:[%s3075_s4 + $0x228] sm:$0xff] }
  0xb8   :  { %1646 = vmatpush.bf16.msra.mxu0 %v2410_v34 }
  0xbb   :  { %1634 = vmatpush.bf16.msrb.mxu3 %v2401_v63 }
  0xbc   :  { %1647 = vmatpush.bf16.msra.mxu0 %v2409_v0 }
  0xbe   :  { %v796_v8 = vpop.f32.mrf.mxu0 }
  0xbf   :  { %v797_v41 = vadd.f32 %v796_v8, %v784_v31 }
  0xc1   :  { %v809_v9 = vpop.f32.mrf.mxu1 }
  0xc2   :  { %v810_v48 = vadd.f32 %v809_v9, %v797_v41 }
  0xc5   :  { %v822_v17 = vpop.f32.mrf.mxu2 }
  0xc6   :  { %v835_v19 = vpop.f32.mrf.mxu3  ;;  %v798_v20 = vpop.f32.mrf.mxu0  ;;  %v823_v53 = vadd.f32 %v822_v17, %v810_v48  ;;  %v2393_v48 = vld [vmem:[%s3075_s4 + $0x140] sm:$0xff] }
  0xc7   :  { %1621 = vmatpush.bf16.msrb.mxu2 %v2393_v48 }
  0xc8   :  { %v836_v61 = vadd.f32 %v835_v19, %v823_v53 }
  0xc9   :  { %v811_v26 = vpop.f32.mrf.mxu1 }
  0xcd   :  { %v824_v36 = vpop.f32.mrf.mxu2 }
  0xce   :  { %v837_v43 = vpop.f32.mrf.mxu3 }
  0xde   :  { %v848_v1 = vpop.f32.mrf.mxu0 }
  0xdf   :  { %v849_v57 = vadd.f32 %v848_v1, %v836_v61 }
  0xe1   :  { %v856_v58 = vmul.f32 %v2426_v62, %v849_v57 }
  0xe3   :  { %v861_v8 = vadd.f32 %v2427_v3, %v856_v58 }
  0xe5   :  { %v862_v9 = vmax.f32 %v861_v8, 0.0 }
  0xe6   :  { %v850_v12 = vpop.f32.mrf.mxu0 }
  0xe7   :  { %v867_v14 = vrot.slane %v862_v9, 7  ;;  %v1990_v16 = vrot.slane %v862_v9, 9  ;;  %v1991_v17 = vrot.slane %v862_v9, 11  ;;  %v1992_v18 = vrot.slane %v862_v9, 13 }
  0xe9   :  { %v875_v19 = vsel %vm45_vm0, 0.0, %v867_v14  ;;  %v876_v20 = vsel %vm45_vm0, 0.0, %v1990_v16  ;;  %v877_v21 = vsel %vm45_vm0, 0.0, %v1991_v17  ;;  %v878_v22 = vsel %vm45_vm0, 0.0, %v1992_v18  ;;  %v2424_v14 = vld [vmem:[%s3075_s4 + $0x238] sm:$0xff] }
  0xea   :  { %v879_v26 = vsel %vm51_vm1, %v875_v19, 0.0  ;;  %v880_v31 = vsel %vm51_vm1, %v876_v20, 0.0  ;;  %v881_v32 = vsel %vm51_vm1, %v877_v21, 0.0  ;;  %v882_v33 = vsel %vm51_vm1, %v878_v22, 0.0 }
  0xeb   :  { %v885_v35 = vrot.slane %v879_v26, 1  ;;  %v886_v36 = vrot.slane %v881_v32, 1  ;;  %v887_v41 = vrot.slane %v879_v26, 2  ;;  %v888_v43 = vrot.slane %v881_v32, 2 }
  0xec   :  { %v891_v44 = vrot.slane %v880_v31, 1  ;;  %v892_v45 = vrot.slane %v882_v33, 1  ;;  %v893_v46 = vrot.slane %v880_v31, 2  ;;  %v2983_v15 = vrot.slane %v882_v33, 2 }
  0xed   :  { %v895_v39 = vrot.slane %v887_v41, 6  ;;  %v898_v40 = vrot.slane %v885_v35, 6  ;;  %v899_v47 = vrot.slane %v887_v41, 4  ;;  %v896_v49 = vrot.slane %v880_v31, 4 }
  0xee   :  { %v897_v50 = vrot.slane %v891_v44, 2  ;;  %v900_v51 = vrot.slane %v893_v46, 6  ;;  %v901_v52 = vrot.slane %v888_v43, 6  ;;  %v903_v53 = vrot.slane %v892_v45, 2 }
  0xef   :  { %v904_v54 = vrot.slane %v886_v36, 6  ;;  %v905_v55 = vrot.slane %v888_v43, 4  ;;  %v906_v56 = vrot.slane %v2983_v15, 6  ;;  %v907_v59 = vsel %vm90_vm3, %v2570_v37, %v887_v41  ;;  %v2420_v41 = vld [vmem:[%s3075_s4 + $0x218] sm:$0xff] }
  0xf0   :  { %v909_v60 = vsel %vm88_vm2, %v885_v35, %v895_v39  ;;  %v910_v61 = vsel %vm90_vm3, %v896_v49, %v897_v50  ;;  %v912_v62 = vsel %vm88_vm2, %v879_v26, %v898_v40  ;;  %v902_v1 = vrot.slane %v882_v33, 4 }
  0xf1   :  { %v908_v2 = vsel %vm92_vm4, %v2574_v38, %v907_v59  ;;  %v913_v57 = vsel %vm90_vm3, %v899_v47, %v893_v46  ;;  %v915_v3 = vsel %vm88_vm2, %v891_v44, %v900_v51  ;;  %v911_v58 = vsel %vm92_vm4, %v909_v60, %v910_v61 }
  0xf2   :  { %v914_v4 = vsel %vm92_vm4, %v912_v62, %v913_v57  ;;  %v917_v5 = vsel %vm90_vm3, %v2570_v37, %v888_v43  ;;  %v919_v6 = vsel %vm88_vm2, %v886_v36, %v901_v52  ;;  %927 = vst [vmem:[#allocation1] ss:$4 sm:$0xff] %v908_v2  ;;  %v920_v8 = vsel %vm90_vm3, %v902_v1, %v903_v53  ;;  %v2428_v57 = vld [vmem:[%s3076_s5] ss:$0 sm:$0xff] }
  0xf3   :  { %v918_v7 = vsel %vm92_vm4, %v2574_v38, %v917_v5  ;;  %v922_v9 = vsel %vm88_vm2, %v881_v32, %v904_v54  ;;  %v923_v10 = vsel %vm90_vm3, %v905_v55, %v2983_v15  ;;  %929 = vst [vmem:[#allocation1 + $0x1] ss:$4 sm:$0xff] %v914_v4  ;;  %v916_v11 = vsel %vm92_vm4, %v915_v3, %v2663_v42  ;;  %v2421_v32 = vld [vmem:[%s3075_s4 + $0x220] sm:$0xff] }
  0xf4   :  { %v924_v12 = vsel %vm92_vm4, %v922_v9, %v923_v10  ;;  %v925_v37 = vsel %vm88_vm2, %v892_v45, %v906_v56  ;;  %931 = vst [vmem:[#allocation1 + $0x2] ss:$4 sm:$0xff] %v918_v7  ;;  %v921_v38 = vsel %vm92_vm4, %v919_v6, %v920_v8  ;;  %v2429_v4 = vld [vmem:[%s3077_s6] ss:$0 sm:$0xff] }
  0xf5   :  { %933 = vst [vmem:[#allocation1 + $0x3] ss:$4 sm:$0xff] %v924_v12  ;;  %v926_v13 = vsel %vm92_vm4, %v925_v37, %v2663_v42  ;;  %v2423_v42 = vld [vmem:[%s3075_s4 + $0x230] sm:$0xff] }
  0xf6   :  { %935 = vst [vmem:[#allocation1 + $0x20] ss:$4 sm:$0xff] %v911_v58 }
  0xf7   :  { %937 = vst [vmem:[#allocation1 + $0x21] ss:$4 sm:$0xff] %v916_v11 }
  0xf8   :  { %939 = vst [vmem:[#allocation1 + $0x22] ss:$4 sm:$0xff] %v921_v38 }
  0xf9   :  { %941 = vst [vmem:[#allocation1 + $0x23] ss:$4 sm:$0xff] %v926_v13 }
  0xfc   :  { %v942_v16 = vld.sshfl [vmem:[#allocation1] sm:$0xff pattern:$0x73625140]  ;;  %v943_v17 = vld.sshfl [vmem:[#allocation1 + $0x8] sm:$0xff pattern:$0x73625140] }
  0xfd   :  { %v964_v18 = vpack.c.bf16 %v942_v16, %v942_v16  ;;  %v965_v19 = vpack.c.bf16 %v943_v17, %v943_v17  ;;  %v944_v20 = vld.sshfl [vmem:[#allocation1 + $0x10] sm:$0xff pattern:$0x73625140]  ;;  %v945_v21 = vld.sshfl [vmem:[#allocation1 + $0x18] sm:$0xff pattern:$0x73625140] }
  0xfe   :  { %v966_v22 = vpack.c.bf16 %v944_v20, %v944_v20  ;;  %v967_v24 = vpack.c.bf16 %v945_v21, %v945_v21  ;;  %950 = vst [vmem:[#allocation1] ss:$4 sm:$0xff] %v893_v46 }
  0xff   :  { %1557 = vmatmul.bf16.vlgmr.msra.gmra.mxu1 %v964_v18  ;;  %1570 = vmatmul.bf16.vlgmr.msra.gmra.mxu2 %v965_v19  ;;  %951 = vst [vmem:[#allocation1 + $0x1] ss:$4 sm:$0xff] %v2531_v23 }
 0x100   :  { %1583 = vmatmul.bf16.vlgmr.msra.gmra.mxu3 %v966_v22  ;;  %1596 = vmatmul.bf16.vlgmr.msrb.gmra.mxu0 %v967_v24  ;;  %952 = vst [vmem:[#allocation1 + $0x2] ss:$4 sm:$0xff] %v2983_v15  ;;  %v946_v26 = vld.sshfl [vmem:[#allocation1 + $0x20] sm:$0xff pattern:$0x73625140] }
 0x101   :  { %953 = vst [vmem:[#allocation1 + $0x3] ss:$4 sm:$0xff] %v2531_v23  ;;  %1653 = vmatpush.bf16.msra.mxu1 %v2424_v14  ;;  %v947_v33 = vld.sshfl [vmem:[#allocation1 + $0x28] sm:$0xff pattern:$0x73625140]  ;;  %v968_v35 = vpack.c.bf16 %v946_v26, %v946_v26 }
 0x102   :  { %v948_v23 = vld.sshfl [vmem:[#allocation1 + $0x30] sm:$0xff pattern:$0x73625140]  ;;  %v949_v34 = vld.sshfl [vmem:[#allocation1 + $0x38] sm:$0xff pattern:$0x73625140]  ;;  %v969_v36 = vpack.c.bf16 %v947_v33, %v947_v33 }
 0x103   :  { %v970_v43 = vpack.c.bf16 %v948_v23, %v948_v23  ;;  %v971_v44 = vpack.c.bf16 %v949_v34, %v949_v34 }
 0x105   :  { %1654 = vmatpush.bf16.msra.mxu1 %v2423_v42 }
 0x108   :  { %v954_v31 = vld.sshfl [vmem:[#allocation1] sm:$0xff pattern:$0x73625140] }
 0x109   :  { %1655 = vmatpush.bf16.msra.mxu1 %v2422_v25  ;;  %1676 = vst [vmem:[#allocation1] ss:$4 sm:$0xff] %v2542_v27  ;;  %v2419_v27 = vld [vmem:[%s3075_s4 + $0x210] sm:$0xff] }
 0x10a   :  { %1678 = vst [vmem:[#allocation1 + $0x1] ss:$4 sm:$0xff] %v2547_v28  ;;  %v2418_v28 = vld [vmem:[%s3075_s4 + $0x208] sm:$0xff] }
 0x10b   :  { %1680 = vst [vmem:[#allocation1 + $0x2] ss:$4 sm:$0xff] %v2552_v29  ;;  %v2417_v29 = vld [vmem:[%s3075_s4 + $0x200] sm:$0xff] }
 0x10c   :  { %1682 = vst [vmem:[#allocation1 + $0x3] ss:$4 sm:$0xff] %v2557_v30  ;;  %v972_v30 = vpack.c.bf16 %v954_v31, %v954_v31 }
 0x10d   :  { %1656 = vmatpush.bf16.msra.mxu1 %v2421_v32 }
 0x10f   :  { %1609 = vmatmul.bf16.vlgmr.msrb.gmra.mxu1 %v968_v35  ;;  %1622 = vmatmul.bf16.vlgmr.msrb.gmra.mxu2 %v969_v36 }
 0x110   :  { %1635 = vmatmul.bf16.vlgmr.msrb.gmra.mxu3 %v970_v43  ;;  %1648 = vmatmul.bf16.vlgmr.msra.gmra.mxu0 %v971_v44 }
 0x111   :  { %1657 = vmatpush.bf16.msra.mxu1 %v2420_v41 }
 0x113   :  { %v1683_v6 = vld.sshfl [vmem:[#allocation1] sm:$0xff pattern:$0x73625140] }
 0x115   :  { %1658 = vmatpush.bf16.msra.mxu1 %v2419_v27 }
 0x119   :  { %1659 = vmatpush.bf16.msra.mxu1 %v2418_v28 }
 0x11d   :  { %1660 = vmatpush.bf16.msra.mxu1 %v2417_v29 }
 0x120   :  { %1661 = vmatmul.bf16.vlgmr.msra.gmra.mxu1 %v972_v30 }
 0x17c   :  { %v1558_v45 = vpop.f32.mrf.mxu1 }
 0x17d   :  { %v1597_v46 = vpop.f32.mrf.mxu0 }
 0x182   :  { %v1571_v15 = vpop.f32.mrf.mxu2 }
 0x183   :  { %v1584_v39 = vpop.f32.mrf.mxu3  ;;  %v1572_v48 = vadd.f32 %v1571_v15, %v1558_v45 }
 0x184   :  { %v1560_v40 = vpop.f32.mrf.mxu1 }
 0x185   :  { %v1599_v47 = vpop.f32.mrf.mxu0  ;;  %v1585_v51 = vadd.f32 %v1584_v39, %v1572_v48 }
 0x187   :  { %v1598_v54 = vadd.f32 %v1597_v46, %v1585_v51 }
 0x18a   :  { %v1573_v49 = vpop.f32.mrf.mxu2 }
 0x18b   :  { %v1586_v50 = vpop.f32.mrf.mxu3 }
 0x18c   :  { %v1610_v52 = vpop.f32.mrf.mxu1 }
 0x18d   :  { %v1649_v53 = vpop.f32.mrf.mxu0  ;;  %v1611_v55 = vadd.f32 %v1610_v52, %v1598_v54 }
 0x192   :  { %v1623_v56 = vpop.f32.mrf.mxu2 }
 0x193   :  { %v1636_v59 = vpop.f32.mrf.mxu3  ;;  %v1624_v60 = vadd.f32 %v1623_v56, %v1611_v55 }
 0x194   :  { %v1612_v61 = vpop.f32.mrf.mxu1 }
 0x195   :  { %v1651_v62 = vpop.f32.mrf.mxu0  ;;  %v1637_v63 = vadd.f32 %v1636_v59, %v1624_v60 }
 0x197   :  { %v1650_v2 = vadd.f32 %v1649_v53, %v1637_v63 }
 0x19a   :  { %v1625_v0 = vpop.f32.mrf.mxu2 }
 0x19b   :  { %v1638_v1 = vpop.f32.mrf.mxu3 }
 0x19d   :  { %v1662_v3 = vpop.f32.mrf.mxu1 }
 0x19e   :  { %v1663_v58 = vadd.f32 %v1662_v3, %v1650_v2 }
 0x1a0   :  { %v1670_v5 = vmul.f32 %v2428_v57, %v1663_v58 }
 0x1a2   :  { %v1675_v7 = vadd.f32 %v2429_v4, %v1670_v5 }
 0x1a4   :  { %v1685_v8 = vadd.f32 %v1683_v6, %v1675_v7 }
 0x1a5   :  { %v1664_v9 = vpop.f32.mrf.mxu1 }
 0x1a6   :  { %v1686_v10 = vmax.f32 %v1685_v8, 0.0 }
 0x1a8   :  { %v1688_v11 = vrot.slane %v1686_v10, 2  ;;  %v1689_v12 = vrot.slane %v1686_v10, 4  ;;  %v1690_v37 = vrot.slane %v1686_v10, 6  ;;  %1694 = vst [vmem:[%s3078_s7] sm:$0x3] %v1686_v10 }
 0x1aa   :  { %1695 = vst [vmem:[%s3078_s7 + $0x2] sm:$0x3] %v1688_v11 }
 0x1ab   :  { %1696 = vst [vmem:[%s3078_s7 + $0x4] sm:$0x3] %v1689_v12 }
 0x1ac   :  { %1697 = vst [vmem:[%s3078_s7 + $0x6] sm:$0x3] %v1690_v37 }

</bundles_post_ra>
